<compile_context>
chip_gen: v7x
topology: tpu7x:2x2x1
jax: 0.10.0
libtpu: 0.0.40
codegen_flags: <defaults>
</compile_context>

<pallas_src>
import numpy as np
import jax
import jax.numpy as jnp
from jax.experimental import pallas as pl
from jax.experimental.pallas import tpu as pltpu

# ----------------------------- hyper-parameters -----------------------------
P = {
    'max_num_nodes': 9,        # the forward hardcodes the (8, 9) edge view -> N must be 9
    'embedding_dim': 4,
    'units1': 16,
    'rnn1_layers': 1,
    'bidirectional': True,
    'position_emb': 4,
    'dropout1': 0.0,
    'layer_number': 1,
    'projection_style': 'tie',
    'non-linear': 'tanh',
    'non-linear1': 'tanh',
}
VOCAB = 50
WORD_DIM = 16
MAX_SENT_LEN = 8
N_OUT = 7
BATCH = 2

N = P['max_num_nodes']              # 9
D = P['embedding_dim']              # 4
TWO_D = 2 * D                       # 8
D2 = TWO_D * TWO_D                  # 64
M = TWO_D * N                       # 72
E = N * (N - 1)                     # 72 edges
H = P['units1']                     # 16
G = 8 * H                           # 128 fused gate width (4 gates x 2 directions)
POS = P['position_emb']             # 4
DIN = WORD_DIM + POS                # 20
L = MAX_SENT_LEN                    # 8
OUT_PAD = 8                         # n_out (7) padded to 8 lanes for unmasked stores

# ------------------------- weight-slab row layout ----------------------------
# Single (224, 128) f32 slab; every offset 8-aligned for clean sublane slices.
ROW_WHH = 0                         # (32, 128) block-diagonal recurrent weights
ROW_WADJ = 32                       # (32, 128) representation_to_adj, lanes>=64 zero
ROW_BADJ = 64                       # (1, 128)  its bias, lanes>=64 zero
ROW_IDC = 72                        # (1, 16)   [id_lo | id_hi] identity column sums
ROW_B3 = 80                         # (1, 8)    linear3 bias (lane 7 zero)
ROW_W3 = 88                         # (8, 8)    linear3 weight (col 7 zero)
ROW_SEL = 96                        # (128, 16) [R_hi | R_lo] block-colsum selector
SLAB_ROWS = ROW_SEL + G             # 224


# ------------------------ GP-GNN structural constants -----------------------
def make_start_embedding(n, d):
    emb = np.zeros((n * (n - 1), 2 * n * d), dtype=np.float32)
    e = 0
    for i in range(n):
        for j in range(n):
            if i == j:
                continue
            emb[e, i * 2 * d: i * 2 * d + d] = 1.0
            emb[e, j * 2 * d + d: j * 2 * d + 2 * d] = 1.0
            e += 1
    return emb  # (E, 2*n*d)


def get_head_indices(n, d):
    idx = []
    for i in range(n):
        for j in range(n):
            if i == j:
                continue
            idx.append(list(range(i * 2 * d, i * 2 * d + 2 * d)))
    return np.asarray(idx, dtype=np.int32)  # (E, 2d)


def get_tail_indices(n, d):
    idx = []
    for i in range(n):
        for j in range(n):
            if i == j:
                continue
            idx.append(list(range(j * 2 * d, j * 2 * d + 2 * d)))
    return np.asarray(idx, dtype=np.int32)  # (E, 2d)


def _edge_index(i, j, n):
    return i * (n - 1) + (j if j < i else j - 1)


def make_reverse_edge_perm(n):
    """perm[e, rev(e)] = 1 so that (perm @ X)[e] == X[rev(e)]."""
    perm = np.zeros((n * (n - 1), n * (n - 1)), dtype=np.float32)
    for i in range(n):
        for j in range(n):
            if i == j:
                continue
            perm[_edge_index(i, j, n), _edge_index(j, i, n)] = 1.0
    return perm


def make_block_colsum_selectors(two_d, d):
    """r_lo sums cols 0..d-1 of each 8x8 block row; r_hi sums cols d..2d-1."""
    r_lo = np.zeros((two_d * two_d, two_d), dtype=np.float32)
    r_hi = np.zeros((two_d * two_d, two_d), dtype=np.float32)
    for a in range(two_d):
        for b in range(two_d):
            (r_lo if b < d else r_hi)[a * two_d + b, a] = 1.0
    return r_lo, r_hi


R_LO, R_HI = make_block_colsum_selectors(TWO_D, D)   # (64, 8) each
REV_PERM = make_reverse_edge_perm(N)                 # (72, 72)


# --------------------------- weight packing helpers --------------------------
def _interleave_gates(wf, wb):
    """Per-direction gate blocks [i,f,g,o] (H wide each) -> 128 columns grouped
    as [i_f i_b f_f f_b g_f g_b o_f o_b]."""
    rows = wf.shape[0]
    return jnp.stack(
        [wf.reshape(rows, 4, H), wb.reshape(rows, 4, H)], axis=2
    ).reshape(rows, 8 * H)


def _blockdiag_whh(whh_f, whh_b):
    zf = jnp.zeros_like(whh_f)
    top = _interleave_gates(whh_f, zf)   # h_fwd rows feed only fwd gate columns
    bot = _interleave_gates(zf, whh_b)   # h_bwd rows feed only bwd gate columns
    return jnp.concatenate([top, bot], axis=0)          # (2H, 8H)


def pack_params(params):
    """One-time repack: fold the input-to-hidden projections into the embedding
    tables and pack every small weight/constant into a single (224, 128) slab."""
    hp = jax.lax.Precision.HIGHEST
    wih_cat = _interleave_gates(params['wih_f'], params['wih_b'])        # (DIN, 128)
    b_cat = _interleave_gates(params['b_f'], params['b_b'])              # (1, 128)

    # embedding -> gate-preactivation tables; bias folded into the word table ONCE
    # (padding_idx=0 row becomes b_cat, matching the unconditional bias add).
    word_gate_tab = jnp.dot(params['word_emb'], wih_cat[:WORD_DIM], precision=hp) + b_cat
    pos_gate_tab = jnp.dot(params['pos_emb'], wih_cat[WORD_DIM:], precision=hp)

    ident = params['identity']
    id_cat = jnp.concatenate(
        [ident[:, :D].sum(axis=1).reshape(1, TWO_D),     # sum_{b<d}  Id[a,b]
         ident[:, D:].sum(axis=1).reshape(1, TWO_D)],    # sum_{b>=d} Id[a,b]
        axis=1)                                          # (1, 16)

    sel = np.zeros((G, 2 * TWO_D), np.float32)           # [R_hi | R_lo], K padded to 128
    sel[:D2, :TWO_D] = R_HI
    sel[:D2, TWO_D:] = R_LO

    slab = jnp.zeros((SLAB_ROWS, G), jnp.float32)
    slab = slab.at[ROW_WHH:ROW_WHH + 2 * H, :].set(
        _blockdiag_whh(params['whh_f'], params['whh_b']))
    slab = slab.at[ROW_WADJ:ROW_WADJ + 2 * H, :D2].set(params['w_adj'])
    slab = slab.at[ROW_BADJ, :D2].set(params['b_adj'][0])
    slab = slab.at[ROW_IDC, :2 * TWO_D].set(id_cat[0])
    slab = slab.at[ROW_B3, :N_OUT].set(params['b3'][0])
    slab = slab.at[ROW_W3:ROW_W3 + TWO_D, :N_OUT].set(params['w3'])
    slab = slab.at[ROW_SEL:ROW_SEL + G, :2 * TWO_D].set(jnp.asarray(sel))

    return {'word_gate_tab': word_gate_tab,              # (VOCAB, 128)
            'pos_gate_tab': pos_gate_tab,                 # (4, 128)
            'w_slab': slab}                               # (224, 128)


# ------------------------------ fused kernel ---------------------------------
def _gpgnn_fused_kernel(xg_ref, ws_ref, perm_ref, out_ref):
    f32 = jnp.float32
    rows = out_ref.shape[0]                                    # BT * E

    # static slices of the single weight slab (no extra DMAs, free addressing)
    whh = ws_ref[ROW_WHH:ROW_WHH + 2 * H, :]                   # (32, 128)
    wadj = ws_ref[ROW_WADJ:ROW_WADJ + 2 * H, :]                # (32, 128)
    badj = ws_ref[ROW_BADJ:ROW_BADJ + 1, :]                    # (1, 128)
    idc = ws_ref[ROW_IDC:ROW_IDC + 1, :2 * TWO_D]              # (1, 16)
    b3p = ws_ref[ROW_B3:ROW_B3 + 1, :OUT_PAD]                  # (1, 8)
    w3p = ws_ref[ROW_W3:ROW_W3 + TWO_D, :OUT_PAD]              # (8, 8)
    sel = ws_ref[ROW_SEL:ROW_SEL + G, :2 * TWO_D]              # (128, 16)

    # ---- fused fwd+bwd LSTM recurrence.  Gate preactivations (word+pos+bias, with
    # the fwd/bwd time-reversal interleave) were precomputed in the wrapper, so each
    # step is one aligned (rows,128) load + one (rows,32)x(32,128) MXU matmul.
    h = jnp.zeros((rows, 2 * H), f32)      # [h_fwd | h_bwd]
    c = jnp.zeros((rows, 2 * H), f32)
    for t in range(L):   # static unroll; switch to lax.fori_loop(unroll=True) if spills show
        g = xg_ref[0, t * rows:(t + 1) * rows, :] + jnp.dot(
            h, whh, preferred_element_type=f32)                # (rows, 128)
        sg = jax.nn.sigmoid(g)   # one full-width EUP pass (i, f, o gates)
        tg = jnp.tanh(g)         # one full-width EUP pass (g gate)
        c = sg[:, 2 * H:4 * H] * c + sg[:, 0:2 * H] * tg[:, 4 * H:6 * H]
        h = sg[:, 6 * H:8 * H] * jnp.tanh(c)
    # h == rnn_result = [fwd final hidden | bwd final hidden]   (rows, 32)

    # ---- K2: representation_to_adj + tanh (lanes >= 64 are zero padding) ----
    proj = jnp.tanh(jnp.dot(h, wadj, preferred_element_type=f32) + badj)  # (rows, 128)

    # ---- K3 + head/tail gathers, via the exact structural identity:
    #   heads[e] = tanh( sum_{b>=d} ProjBlk[e][:,b]      + id_lo )
    #   tails[e] = tanh( sum_{b<d}  ProjBlk[rev(e)][:,b] + id_hi )
    s16 = jnp.dot(proj, sel, preferred_element_type=f32)            # [sum_hi | sum_lo]
    s16_rev = jnp.dot(perm_ref[...], s16, preferred_element_type=f32)  # reverse-edge rows
    lane = jax.lax.broadcasted_iota(jnp.int32, (rows, 2 * TWO_D), 1)
    ht = jnp.tanh(jnp.where(lane < TWO_D, s16, s16_rev) + idc)      # [heads | tails]
    relation = ht[:, :TWO_D] * ht[:, TWO_D:]

    # ---- K4: linear3, written directly in final (rows, 8) layout (lane 7 = 0) ----
    out_ref[...] = jnp.dot(relation, w3p, preferred_element_type=f32) + b3p


def _fused_pallas_call(n_tiles, bt):
    rows = bt * E
    # advisory cost so XLA overlaps the wrapper-side gathers/reshapes with the call
    flops = 2 * n_tiles * rows * (L * 2 * H * G + 2 * H * G + G * 2 * TWO_D
                                  + rows * 2 * TWO_D + TWO_D * OUT_PAD)
    trans = n_tiles * rows * (L * (2 * G + 2 * H) + G + 2 * TWO_D)
    byts = 4 * n_tiles * (L * rows * G + SLAB_ROWS * G + rows * rows + rows * OUT_PAD)
    return pl.pallas_call(
        _gpgnn_fused_kernel,
        out_shape=jax.ShapeDtypeStruct((n_tiles * rows, OUT_PAD), jnp.float32),
        grid=(n_tiles,),
        in_specs=[
            pl.BlockSpec((1, L * rows, G), lambda i: (i, 0, 0)),   # gate preactivations
            pl.BlockSpec((SLAB_ROWS, G), lambda i: (0, 0)),        # fused weight slab
            pl.BlockSpec((rows, rows), lambda i: (0, 0)),          # reverse-edge perm
        ],
        out_specs=pl.BlockSpec((rows, OUT_PAD), lambda i: (i, 0)),
        compiler_params=pltpu.CompilerParams(
            dimension_semantics=("parallel",)),   # grid steps -> both v7x TensorCores
        cost_estimate=pl.CostEstimate(
            flops=int(flops), transcendentals=int(trans), bytes_accessed=int(byts)),
    )


def gpgnn_forward_pallas(packed, sentence_input, entity_markers, num_entities,
                         batch_tile=None):
    del num_entities                          # unused by the original forward as well
    b, seq_len = sentence_input.shape
    # default batch tile: keep >= 2 grid steps (v7x megacore) while amortizing the
    # per-step pipeline overhead; pass batch_tile=b on v5e/v6e for one fat step.
    bt = batch_tile if batch_tile is not None else max(1, (b + 1) // 2)
    n_tiles = -(-b // bt)
    b_pad = n_tiles * bt
    rows = bt * E

    # ---- tiny gathers of the precomputed 128-wide gate tables (left in XLA) ----
    word_g = packed['word_gate_tab'][sentence_input]                     # (B, L, 128)
    pos_g = packed['pos_gate_tab'][jnp.swapaxes(entity_markers, 1, 2)]   # (B, L, E, 128)
    full = pos_g + word_g[:, :, None, :]                                 # (B, L, E, 128)
    # fwd/bwd time-reversal interleave done HERE so the kernel recurrence is minimal:
    # forward-gate columns read time t, backward-gate columns read time L-1-t.
    fwd_cols = ((jnp.arange(G) // H) % 2) == 0
    xg = jnp.where(fwd_cols, full, full[:, ::-1])                        # (B, L, E, 128)
    if b_pad != b:
        xg = jnp.pad(xg, ((0, b_pad - b), (0, 0), (0, 0), (0, 0)))
    xg = xg.reshape(n_tiles, bt, L, E, G).transpose(0, 2, 1, 3, 4)
    xg = xg.reshape(n_tiles, L * rows, G)            # time-major, contiguous per step

    # reverse-edge permutation, block-diagonal over the bt batch elements of a tile
    perm_bd = jnp.asarray(np.kron(np.eye(bt, dtype=np.float32), REV_PERM))

    out = _fused_pallas_call(n_tiles, bt)(xg, packed['w_slab'], perm_bd)
    return out[:b * E, :N_OUT]


# --------------------------- faithful pure-JAX reference ----------------------
def _ref_bilstm(x, wih_f, whh_f, b_f, wih_b, whh_b, b_b):
    be, seq_len, _ = x.shape

    def run(wih, whh, b, ts):
        h = jnp.zeros((be, H), jnp.float32)
        c = jnp.zeros((be, H), jnp.float32)
        for t in ts:
            g = x[:, t, :] @ wih + h @ whh + b
            i_g = jax.nn.sigmoid(g[:, :H])
            f_g = jax.nn.sigmoid(g[:, H:2 * H])
            g_g = jnp.tanh(g[:, 2 * H:3 * H])
            o_g = jax.nn.sigmoid(g[:, 3 * H:])
            c = f_g * c + i_g * g_g
            h = o_g * jnp.tanh(c)
        return h

    return jnp.concatenate([run(wih_f, whh_f, b_f, range(seq_len)),
                            run(wih_b, whh_b, b_b, range(seq_len - 1, -1, -1))], axis=1)


def gpgnn_forward_ref(params, sentence_input, entity_markers):
    """Full-path reference: explicit adjacency assembly, propagation and gathers."""
    b, seq_len = sentence_input.shape
    we = params['word_emb'][sentence_input]
    we = jnp.broadcast_to(we[:, None], (b, E, seq_len, WORD_DIM))
    pe = params['pos_emb'][entity_markers]
    merged = jnp.concatenate([we, pe], axis=-1).reshape(b * E, seq_len, DIN)
    rnn = _ref_bilstm(merged.astype(jnp.float32),
                      params['wih_f'], params['whh_f'], params['b_f'],
                      params['wih_b'], params['whh_b'], params['b_b'])
    proj = jnp.tanh(rnn @ params['w_adj'] + params['b_adj']).reshape(b, N - 1, N, D2)
    eye_flat = params['identity'].reshape(-1)
    id_rows = jnp.broadcast_to(eye_flat.reshape(1, 1, 1, D2), (b, N - 1, 1, D2))
    stuffed = jnp.concatenate([id_rows, proj], axis=2).reshape(b, N * N - 1, D2)
    id_last = jnp.broadcast_to(eye_flat.reshape(1, 1, D2), (b, 1, D2))
    adj = jnp.concatenate([stuffed, id_last], axis=1).reshape(b, N, N, TWO_D, TWO_D)
    adj = jnp.transpose(adj, (0, 1, 3, 2, 4)).reshape(b, M, M)
    layer_1 = jnp.tanh(jnp.einsum('ej,bij->bei', params['start_emb'], adj))
    head_idx = jnp.broadcast_to(params['head_idx'][None], (b, E, TWO_D))
    tail_idx = jnp.broadcast_to(params['tail_idx'][None], (b, E, TWO_D))
    heads = jnp.take_along_axis(layer_1, head_idx, axis=2)
    tails = jnp.take_along_axis(layer_1, tail_idx, axis=2)
    relation = (heads * tails).reshape(b * E, TWO_D)
    return relation @ params['w3'] + params['b3']


# ----------------------------------- main ------------------------------------
if __name__ == "__main__":
    key = jax.random.PRNGKey(0)
    ks = jax.random.split(key, 16)

    def normal(k, shape, scale=0.1):
        return scale * jax.random.normal(k, shape, dtype=jnp.float32)

    word_emb = normal(ks[0], (VOCAB, WORD_DIM)).at[0].set(0.0)    # padding_idx=0
    pos_emb = normal(ks[1], (4, POS))   # TODO(synk): orthogonal init approximated by gaussian

    params = {
        'word_emb': word_emb,
        'pos_emb': pos_emb,
        # LSTM weights pre-transposed to (in, 4H) / (H, 4H); biases combined b_ih + b_hh
        'wih_f': normal(ks[2], (DIN, 4 * H)),
        'whh_f': normal(ks[3], (H, 4 * H)),
        'b_f': normal(ks[4], (1, 4 * H)),
        'wih_b': normal(ks[5], (DIN, 4 * H)),
        'whh_b': normal(ks[6], (H, 4 * H)),
        'b_b': normal(ks[7], (1, 4 * H)),
        # representation_to_adj (pre-transposed) + bias
        'w_adj': normal(ks[8], (2 * H, D2)),
        'b_adj': normal(ks[9], (1, D2)),
        'identity': jnp.eye(TWO_D, dtype=jnp.float32),            # learnable, eye-init
        'start_emb': jnp.asarray(make_start_embedding(N, D)),
        'head_idx': jnp.asarray(get_head_indices(N, D)),
        'tail_idx': jnp.asarray(get_tail_indices(N, D)),
        # linear3 (pre-transposed) + bias
        'w3': normal(ks[10], (TWO_D * P['layer_number'], N_OUT)),
        'b3': normal(ks[11], (1, N_OUT)),
    }

    sentence_input = jax.random.randint(ks[12], (BATCH, MAX_SENT_LEN), 0, VOCAB)
    entity_markers = jax.random.randint(ks[13], (BATCH, E, MAX_SENT_LEN), 0, 4)
    num_entities = jnp.full((BATCH,), N, dtype=jnp.int32)

    with jax.default_matmul_precision("highest"):
        packed = pack_params(params)

    fwd = jax.jit(gpgnn_forward_pallas)
    out = jax.block_until_ready(fwd(packed, sentence_input, entity_markers, num_entities))
    assert out.shape == (BATCH * E, N_OUT), out.shape

    with jax.default_matmul_precision("highest"):
        ref = gpgnn_forward_ref(params, sentence_input, entity_markers)
    np.testing.assert_allclose(np.asarray(out), np.asarray(ref), atol=2e-3, rtol=2e-3)

    print("KERNEL_OK")
</pallas_src>

<mosaic_0001>
module attributes {stable_mosaic.version = 11 : i64} {
  func.func @_gpgnn_fused_kernel(%arg0: i32, %arg1: memref<1x576x128xf32, #tpu.memory_space<vmem>>, %arg2: memref<224x128xf32, #tpu.memory_space<vmem>>, %arg3: memref<72x72xf32, #tpu.memory_space<vmem>>, %arg4: memref<72x8xf32, #tpu.memory_space<vmem>>) attributes {dimension_semantics = [#tpu.dimension_semantics<parallel>], iteration_bounds = array<i64: 2>, scalar_prefetch = 0 : i64, scratch_operands = 0 : i64, tpu.core_type = #tpu.core_type<tc>, window_params = [{transform_indices = @transform_0, window_bounds = array<i64: 1, 576, 128>}, {pipeline_mode = #tpu.pipeline_mode<synchronous>, transform_indices = @transform_1, window_bounds = array<i64: 224, 128>}, {pipeline_mode = #tpu.pipeline_mode<synchronous>, transform_indices = @transform_2, window_bounds = array<i64: 72, 72>}, {transform_indices = @transform_3, window_bounds = array<i64: 72, 8>}]} {
    %c0 = arith.constant 0 : index
    %c0_0 = arith.constant 0 : index
    %0 = vector.load %arg2[%c0, %c0_0] : memref<224x128xf32, #tpu.memory_space<vmem>>, vector<32x128xf32>
    %c32 = arith.constant 32 : index
    %c0_1 = arith.constant 0 : index
    %1 = vector.load %arg2[%c32, %c0_1] : memref<224x128xf32, #tpu.memory_space<vmem>>, vector<32x128xf32>
    %c64 = arith.constant 64 : index
    %c0_2 = arith.constant 0 : index
    %2 = vector.load %arg2[%c64, %c0_2] : memref<224x128xf32, #tpu.memory_space<vmem>>, vector<1x128xf32>
    %c72 = arith.constant 72 : index
    %c0_3 = arith.constant 0 : index
    %3 = vector.load %arg2[%c72, %c0_3] : memref<224x128xf32, #tpu.memory_space<vmem>>, vector<1x16xf32>
    %c80 = arith.constant 80 : index
    %c0_4 = arith.constant 0 : index
    %4 = vector.load %arg2[%c80, %c0_4] : memref<224x128xf32, #tpu.memory_space<vmem>>, vector<1x8xf32>
    %c88 = arith.constant 88 : index
    %c0_5 = arith.constant 0 : index
    %5 = vector.load %arg2[%c88, %c0_5] : memref<224x128xf32, #tpu.memory_space<vmem>>, vector<8x8xf32>
    %c96 = arith.constant 96 : index
    %c0_6 = arith.constant 0 : index
    %6 = vector.load %arg2[%c96, %c0_6] : memref<224x128xf32, #tpu.memory_space<vmem>>, vector<128x16xf32>
    %cst = arith.constant 0.000000e+00 : f32
    %7 = vector.broadcast %cst : f32 to vector<72x32xf32>
    %cst_7 = arith.constant 0.000000e+00 : f32
    %8 = vector.broadcast %cst_7 : f32 to vector<72x32xf32>
    %c0_8 = arith.constant 0 : index
    %c0_9 = arith.constant 0 : index
    %c0_10 = arith.constant 0 : index
    %9 = vector.load %arg1[%c0_8, %c0_9, %c0_10] : memref<1x576x128xf32, #tpu.memory_space<vmem>>, vector<1x72x128xf32>
    %10 = vector.shape_cast %9 : vector<1x72x128xf32> to vector<72x128xf32>
    %cst_11 = arith.constant dense<0.000000e+00> : vector<72x128xf32>
    %11 = tpu.matmul %7, %0, %cst_11 {dimension_numbers = #tpu.dot_dimension_numbers<[1], [0], [0], [1], [0, 0, 1, 1], [], []>} : vector<72x32xf32>, vector<32x128xf32>, vector<72x128xf32> -> vector<72x128xf32>
    %12 = arith.addf %10, %11 : vector<72x128xf32>
    %13 = arith.negf %12 : vector<72x128xf32>
    %14 = math.exp %13 : vector<72x128xf32>
    %cst_12 = arith.constant 1.000000e+00 : f32
    %15 = vector.broadcast %cst_12 : f32 to vector<72x128xf32>
    %16 = arith.addf %15, %14 : vector<72x128xf32>
    %17 = arith.divf %15, %16 : vector<72x128xf32>
    %18 = math.tanh %12 : vector<72x128xf32>
    %19 = vector.extract_strided_slice %17 {offsets = [0, 32], sizes = [72, 32], strides = [1, 1]} : vector<72x128xf32> to vector<72x32xf32>
    %20 = arith.mulf %19, %8 : vector<72x32xf32>
    %21 = vector.extract_strided_slice %17 {offsets = [0, 0], sizes = [72, 32], strides = [1, 1]} : vector<72x128xf32> to vector<72x32xf32>
    %22 = vector.extract_strided_slice %18 {offsets = [0, 64], sizes = [72, 32], strides = [1, 1]} : vector<72x128xf32> to vector<72x32xf32>
    %23 = arith.mulf %21, %22 : vector<72x32xf32>
    %24 = arith.addf %20, %23 : vector<72x32xf32>
    %25 = vector.extract_strided_slice %17 {offsets = [0, 96], sizes = [72, 32], strides = [1, 1]} : vector<72x128xf32> to vector<72x32xf32>
    %26 = math.tanh %24 : vector<72x32xf32>
    %27 = arith.mulf %25, %26 : vector<72x32xf32>
    %c0_13 = arith.constant 0 : index
    %c72_14 = arith.constant 72 : index
    %c0_15 = arith.constant 0 : index
    %28 = vector.load %arg1[%c0_13, %c72_14, %c0_15] : memref<1x576x128xf32, #tpu.memory_space<vmem>>, vector<1x72x128xf32>
    %29 = vector.shape_cast %28 : vector<1x72x128xf32> to vector<72x128xf32>
    %cst_16 = arith.constant dense<0.000000e+00> : vector<72x128xf32>
    %30 = tpu.matmul %27, %0, %cst_16 {dimension_numbers = #tpu.dot_dimension_numbers<[1], [0], [0], [1], [0, 0, 1, 1], [], []>} : vector<72x32xf32>, vector<32x128xf32>, vector<72x128xf32> -> vector<72x128xf32>
    %31 = arith.addf %29, %30 : vector<72x128xf32>
    %32 = arith.negf %31 : vector<72x128xf32>
    %33 = math.exp %32 : vector<72x128xf32>
    %cst_17 = arith.constant 1.000000e+00 : f32
    %34 = vector.broadcast %cst_17 : f32 to vector<72x128xf32>
    %35 = arith.addf %34, %33 : vector<72x128xf32>
    %36 = arith.divf %34, %35 : vector<72x128xf32>
    %37 = math.tanh %31 : vector<72x128xf32>
    %38 = vector.extract_strided_slice %36 {offsets = [0, 32], sizes = [72, 32], strides = [1, 1]} : vector<72x128xf32> to vector<72x32xf32>
    %39 = arith.mulf %38, %24 : vector<72x32xf32>
    %40 = vector.extract_strided_slice %36 {offsets = [0, 0], sizes = [72, 32], strides = [1, 1]} : vector<72x128xf32> to vector<72x32xf32>
    %41 = vector.extract_strided_slice %37 {offsets = [0, 64], sizes = [72, 32], strides = [1, 1]} : vector<72x128xf32> to vector<72x32xf32>
    %42 = arith.mulf %40, %41 : vector<72x32xf32>
    %43 = arith.addf %39, %42 : vector<72x32xf32>
    %44 = vector.extract_strided_slice %36 {offsets = [0, 96], sizes = [72, 32], strides = [1, 1]} : vector<72x128xf32> to vector<72x32xf32>
    %45 = math.tanh %43 : vector<72x32xf32>
    %46 = arith.mulf %44, %45 : vector<72x32xf32>
    %c0_18 = arith.constant 0 : index
    %c144 = arith.constant 144 : index
    %c0_19 = arith.constant 0 : index
    %47 = vector.load %arg1[%c0_18, %c144, %c0_19] : memref<1x576x128xf32, #tpu.memory_space<vmem>>, vector<1x72x128xf32>
    %48 = vector.shape_cast %47 : vector<1x72x128xf32> to vector<72x128xf32>
    %cst_20 = arith.constant dense<0.000000e+00> : vector<72x128xf32>
    %49 = tpu.matmul %46, %0, %cst_20 {dimension_numbers = #tpu.dot_dimension_numbers<[1], [0], [0], [1], [0, 0, 1, 1], [], []>} : vector<72x32xf32>, vector<32x128xf32>, vector<72x128xf32> -> vector<72x128xf32>
    %50 = arith.addf %48, %49 : vector<72x128xf32>
    %51 = arith.negf %50 : vector<72x128xf32>
    %52 = math.exp %51 : vector<72x128xf32>
    %cst_21 = arith.constant 1.000000e+00 : f32
    %53 = vector.broadcast %cst_21 : f32 to vector<72x128xf32>
    %54 = arith.addf %53, %52 : vector<72x128xf32>
    %55 = arith.divf %53, %54 : vector<72x128xf32>
    %56 = math.tanh %50 : vector<72x128xf32>
    %57 = vector.extract_strided_slice %55 {offsets = [0, 32], sizes = [72, 32], strides = [1, 1]} : vector<72x128xf32> to vector<72x32xf32>
    %58 = arith.mulf %57, %43 : vector<72x32xf32>
    %59 = vector.extract_strided_slice %55 {offsets = [0, 0], sizes = [72, 32], strides = [1, 1]} : vector<72x128xf32> to vector<72x32xf32>
    %60 = vector.extract_strided_slice %56 {offsets = [0, 64], sizes = [72, 32], strides = [1, 1]} : vector<72x128xf32> to vector<72x32xf32>
    %61 = arith.mulf %59, %60 : vector<72x32xf32>
    %62 = arith.addf %58, %61 : vector<72x32xf32>
    %63 = vector.extract_strided_slice %55 {offsets = [0, 96], sizes = [72, 32], strides = [1, 1]} : vector<72x128xf32> to vector<72x32xf32>
    %64 = math.tanh %62 : vector<72x32xf32>
    %65 = arith.mulf %63, %64 : vector<72x32xf32>
    %c0_22 = arith.constant 0 : index
    %c216 = arith.constant 216 : index
    %c0_23 = arith.constant 0 : index
    %66 = vector.load %arg1[%c0_22, %c216, %c0_23] : memref<1x576x128xf32, #tpu.memory_space<vmem>>, vector<1x72x128xf32>
    %67 = vector.shape_cast %66 : vector<1x72x128xf32> to vector<72x128xf32>
    %cst_24 = arith.constant dense<0.000000e+00> : vector<72x128xf32>
    %68 = tpu.matmul %65, %0, %cst_24 {dimension_numbers = #tpu.dot_dimension_numbers<[1], [0], [0], [1], [0, 0, 1, 1], [], []>} : vector<72x32xf32>, vector<32x128xf32>, vector<72x128xf32> -> vector<72x128xf32>
    %69 = arith.addf %67, %68 : vector<72x128xf32>
    %70 = arith.negf %69 : vector<72x128xf32>
    %71 = math.exp %70 : vector<72x128xf32>
    %cst_25 = arith.constant 1.000000e+00 : f32
    %72 = vector.broadcast %cst_25 : f32 to vector<72x128xf32>
    %73 = arith.addf %72, %71 : vector<72x128xf32>
    %74 = arith.divf %72, %73 : vector<72x128xf32>
    %75 = math.tanh %69 : vector<72x128xf32>
    %76 = vector.extract_strided_slice %74 {offsets = [0, 32], sizes = [72, 32], strides = [1, 1]} : vector<72x128xf32> to vector<72x32xf32>
    %77 = arith.mulf %76, %62 : vector<72x32xf32>
    %78 = vector.extract_strided_slice %74 {offsets = [0, 0], sizes = [72, 32], strides = [1, 1]} : vector<72x128xf32> to vector<72x32xf32>
    %79 = vector.extract_strided_slice %75 {offsets = [0, 64], sizes = [72, 32], strides = [1, 1]} : vector<72x128xf32> to vector<72x32xf32>
    %80 = arith.mulf %78, %79 : vector<72x32xf32>
    %81 = arith.addf %77, %80 : vector<72x32xf32>
    %82 = vector.extract_strided_slice %74 {offsets = [0, 96], sizes = [72, 32], strides = [1, 1]} : vector<72x128xf32> to vector<72x32xf32>
    %83 = math.tanh %81 : vector<72x32xf32>
    %84 = arith.mulf %82, %83 : vector<72x32xf32>
    %c0_26 = arith.constant 0 : index
    %c288 = arith.constant 288 : index
    %c0_27 = arith.constant 0 : index
    %85 = vector.load %arg1[%c0_26, %c288, %c0_27] : memref<1x576x128xf32, #tpu.memory_space<vmem>>, vector<1x72x128xf32>
    %86 = vector.shape_cast %85 : vector<1x72x128xf32> to vector<72x128xf32>
    %cst_28 = arith.constant dense<0.000000e+00> : vector<72x128xf32>
    %87 = tpu.matmul %84, %0, %cst_28 {dimension_numbers = #tpu.dot_dimension_numbers<[1], [0], [0], [1], [0, 0, 1, 1], [], []>} : vector<72x32xf32>, vector<32x128xf32>, vector<72x128xf32> -> vector<72x128xf32>
    %88 = arith.addf %86, %87 : vector<72x128xf32>
    %89 = arith.negf %88 : vector<72x128xf32>
    %90 = math.exp %89 : vector<72x128xf32>
    %cst_29 = arith.constant 1.000000e+00 : f32
    %91 = vector.broadcast %cst_29 : f32 to vector<72x128xf32>
    %92 = arith.addf %91, %90 : vector<72x128xf32>
    %93 = arith.divf %91, %92 : vector<72x128xf32>
    %94 = math.tanh %88 : vector<72x128xf32>
    %95 = vector.extract_strided_slice %93 {offsets = [0, 32], sizes = [72, 32], strides = [1, 1]} : vector<72x128xf32> to vector<72x32xf32>
    %96 = arith.mulf %95, %81 : vector<72x32xf32>
    %97 = vector.extract_strided_slice %93 {offsets = [0, 0], sizes = [72, 32], strides = [1, 1]} : vector<72x128xf32> to vector<72x32xf32>
    %98 = vector.extract_strided_slice %94 {offsets = [0, 64], sizes = [72, 32], strides = [1, 1]} : vector<72x128xf32> to vector<72x32xf32>
    %99 = arith.mulf %97, %98 : vector<72x32xf32>
    %100 = arith.addf %96, %99 : vector<72x32xf32>
    %101 = vector.extract_strided_slice %93 {offsets = [0, 96], sizes = [72, 32], strides = [1, 1]} : vector<72x128xf32> to vector<72x32xf32>
    %102 = math.tanh %100 : vector<72x32xf32>
    %103 = arith.mulf %101, %102 : vector<72x32xf32>
    %c0_30 = arith.constant 0 : index
    %c360 = arith.constant 360 : index
    %c0_31 = arith.constant 0 : index
    %104 = vector.load %arg1[%c0_30, %c360, %c0_31] : memref<1x576x128xf32, #tpu.memory_space<vmem>>, vector<1x72x128xf32>
    %105 = vector.shape_cast %104 : vector<1x72x128xf32> to vector<72x128xf32>
    %cst_32 = arith.constant dense<0.000000e+00> : vector<72x128xf32>
    %106 = tpu.matmul %103, %0, %cst_32 {dimension_numbers = #tpu.dot_dimension_numbers<[1], [0], [0], [1], [0, 0, 1, 1], [], []>} : vector<72x32xf32>, vector<32x128xf32>, vector<72x128xf32> -> vector<72x128xf32>
    %107 = arith.addf %105, %106 : vector<72x128xf32>
    %108 = arith.negf %107 : vector<72x128xf32>
    %109 = math.exp %108 : vector<72x128xf32>
    %cst_33 = arith.constant 1.000000e+00 : f32
    %110 = vector.broadcast %cst_33 : f32 to vector<72x128xf32>
    %111 = arith.addf %110, %109 : vector<72x128xf32>
    %112 = arith.divf %110, %111 : vector<72x128xf32>
    %113 = math.tanh %107 : vector<72x128xf32>
    %114 = vector.extract_strided_slice %112 {offsets = [0, 32], sizes = [72, 32], strides = [1, 1]} : vector<72x128xf32> to vector<72x32xf32>
    %115 = arith.mulf %114, %100 : vector<72x32xf32>
    %116 = vector.extract_strided_slice %112 {offsets = [0, 0], sizes = [72, 32], strides = [1, 1]} : vector<72x128xf32> to vector<72x32xf32>
    %117 = vector.extract_strided_slice %113 {offsets = [0, 64], sizes = [72, 32], strides = [1, 1]} : vector<72x128xf32> to vector<72x32xf32>
    %118 = arith.mulf %116, %117 : vector<72x32xf32>
    %119 = arith.addf %115, %118 : vector<72x32xf32>
    %120 = vector.extract_strided_slice %112 {offsets = [0, 96], sizes = [72, 32], strides = [1, 1]} : vector<72x128xf32> to vector<72x32xf32>
    %121 = math.tanh %119 : vector<72x32xf32>
    %122 = arith.mulf %120, %121 : vector<72x32xf32>
    %c0_34 = arith.constant 0 : index
    %c432 = arith.constant 432 : index
    %c0_35 = arith.constant 0 : index
    %123 = vector.load %arg1[%c0_34, %c432, %c0_35] : memref<1x576x128xf32, #tpu.memory_space<vmem>>, vector<1x72x128xf32>
    %124 = vector.shape_cast %123 : vector<1x72x128xf32> to vector<72x128xf32>
    %cst_36 = arith.constant dense<0.000000e+00> : vector<72x128xf32>
    %125 = tpu.matmul %122, %0, %cst_36 {dimension_numbers = #tpu.dot_dimension_numbers<[1], [0], [0], [1], [0, 0, 1, 1], [], []>} : vector<72x32xf32>, vector<32x128xf32>, vector<72x128xf32> -> vector<72x128xf32>
    %126 = arith.addf %124, %125 : vector<72x128xf32>
    %127 = arith.negf %126 : vector<72x128xf32>
    %128 = math.exp %127 : vector<72x128xf32>
    %cst_37 = arith.constant 1.000000e+00 : f32
    %129 = vector.broadcast %cst_37 : f32 to vector<72x128xf32>
    %130 = arith.addf %129, %128 : vector<72x128xf32>
    %131 = arith.divf %129, %130 : vector<72x128xf32>
    %132 = math.tanh %126 : vector<72x128xf32>
    %133 = vector.extract_strided_slice %131 {offsets = [0, 32], sizes = [72, 32], strides = [1, 1]} : vector<72x128xf32> to vector<72x32xf32>
    %134 = arith.mulf %133, %119 : vector<72x32xf32>
    %135 = vector.extract_strided_slice %131 {offsets = [0, 0], sizes = [72, 32], strides = [1, 1]} : vector<72x128xf32> to vector<72x32xf32>
    %136 = vector.extract_strided_slice %132 {offsets = [0, 64], sizes = [72, 32], strides = [1, 1]} : vector<72x128xf32> to vector<72x32xf32>
    %137 = arith.mulf %135, %136 : vector<72x32xf32>
    %138 = arith.addf %134, %137 : vector<72x32xf32>
    %139 = vector.extract_strided_slice %131 {offsets = [0, 96], sizes = [72, 32], strides = [1, 1]} : vector<72x128xf32> to vector<72x32xf32>
    %140 = math.tanh %138 : vector<72x32xf32>
    %141 = arith.mulf %139, %140 : vector<72x32xf32>
    %c0_38 = arith.constant 0 : index
    %c504 = arith.constant 504 : index
    %c0_39 = arith.constant 0 : index
    %142 = vector.load %arg1[%c0_38, %c504, %c0_39] : memref<1x576x128xf32, #tpu.memory_space<vmem>>, vector<1x72x128xf32>
    %143 = vector.shape_cast %142 : vector<1x72x128xf32> to vector<72x128xf32>
    %cst_40 = arith.constant dense<0.000000e+00> : vector<72x128xf32>
    %144 = tpu.matmul %141, %0, %cst_40 {dimension_numbers = #tpu.dot_dimension_numbers<[1], [0], [0], [1], [0, 0, 1, 1], [], []>} : vector<72x32xf32>, vector<32x128xf32>, vector<72x128xf32> -> vector<72x128xf32>
    %145 = arith.addf %143, %144 : vector<72x128xf32>
    %146 = arith.negf %145 : vector<72x128xf32>
    %147 = math.exp %146 : vector<72x128xf32>
    %cst_41 = arith.constant 1.000000e+00 : f32
    %148 = vector.broadcast %cst_41 : f32 to vector<72x128xf32>
    %149 = arith.addf %148, %147 : vector<72x128xf32>
    %150 = arith.divf %148, %149 : vector<72x128xf32>
    %151 = math.tanh %145 : vector<72x128xf32>
    %152 = vector.extract_strided_slice %150 {offsets = [0, 32], sizes = [72, 32], strides = [1, 1]} : vector<72x128xf32> to vector<72x32xf32>
    %153 = arith.mulf %152, %138 : vector<72x32xf32>
    %154 = vector.extract_strided_slice %150 {offsets = [0, 0], sizes = [72, 32], strides = [1, 1]} : vector<72x128xf32> to vector<72x32xf32>
    %155 = vector.extract_strided_slice %151 {offsets = [0, 64], sizes = [72, 32], strides = [1, 1]} : vector<72x128xf32> to vector<72x32xf32>
    %156 = arith.mulf %154, %155 : vector<72x32xf32>
    %157 = arith.addf %153, %156 : vector<72x32xf32>
    %158 = vector.extract_strided_slice %150 {offsets = [0, 96], sizes = [72, 32], strides = [1, 1]} : vector<72x128xf32> to vector<72x32xf32>
    %159 = math.tanh %157 : vector<72x32xf32>
    %160 = arith.mulf %158, %159 : vector<72x32xf32>
    %cst_42 = arith.constant dense<0.000000e+00> : vector<72x128xf32>
    %161 = tpu.matmul %160, %1, %cst_42 {dimension_numbers = #tpu.dot_dimension_numbers<[1], [0], [0], [1], [0, 0, 1, 1], [], []>} : vector<72x32xf32>, vector<32x128xf32>, vector<72x128xf32> -> vector<72x128xf32>
    %162 = vector.broadcast %2 : vector<1x128xf32> to vector<72x128xf32>
    %163 = arith.addf %161, %162 : vector<72x128xf32>
    %164 = math.tanh %163 : vector<72x128xf32>
    %cst_43 = arith.constant dense<0.000000e+00> : vector<72x16xf32>
    %165 = tpu.matmul %164, %6, %cst_43 {dimension_numbers = #tpu.dot_dimension_numbers<[1], [0], [0], [1], [0, 0, 1, 1], [], []>} : vector<72x128xf32>, vector<128x16xf32>, vector<72x16xf32> -> vector<72x16xf32>
    %c0_44 = arith.constant 0 : index
    %c0_45 = arith.constant 0 : index
    %166 = vector.load %arg3[%c0_44, %c0_45] : memref<72x72xf32, #tpu.memory_space<vmem>>, vector<72x72xf32>
    %cst_46 = arith.constant dense<0.000000e+00> : vector<72x16xf32>
    %167 = tpu.matmul %166, %165, %cst_46 {dimension_numbers = #tpu.dot_dimension_numbers<[1], [0], [0], [1], [0, 0, 1, 1], [], []>} : vector<72x72xf32>, vector<72x16xf32>, vector<72x16xf32> -> vector<72x16xf32>
    %168 = tpu.iota {dimensions = array<i32: 1>} : vector<72x16xi32>
    %c8_i32 = arith.constant 8 : i32
    %169 = vector.broadcast %c8_i32 : i32 to vector<72x16xi32>
    %170 = arith.cmpi slt, %168, %169 : vector<72x16xi32>
    %171 = arith.select %170, %165, %167 : vector<72x16xi1>, vector<72x16xf32>
    %172 = vector.broadcast %3 : vector<1x16xf32> to vector<72x16xf32>
    %173 = arith.addf %171, %172 : vector<72x16xf32>
    %174 = math.tanh %173 : vector<72x16xf32>
    %175 = vector.extract_strided_slice %174 {offsets = [0, 0], sizes = [72, 8], strides = [1, 1]} : vector<72x16xf32> to vector<72x8xf32>
    %176 = vector.extract_strided_slice %174 {offsets = [0, 8], sizes = [72, 8], strides = [1, 1]} : vector<72x16xf32> to vector<72x8xf32>
    %177 = arith.mulf %175, %176 : vector<72x8xf32>
    %cst_47 = arith.constant dense<0.000000e+00> : vector<72x8xf32>
    %178 = tpu.matmul %177, %5, %cst_47 {dimension_numbers = #tpu.dot_dimension_numbers<[1], [0], [0], [1], [0, 0, 1, 1], [], []>} : vector<72x8xf32>, vector<8x8xf32>, vector<72x8xf32> -> vector<72x8xf32>
    %179 = vector.broadcast %4 : vector<1x8xf32> to vector<72x8xf32>
    %180 = arith.addf %178, %179 : vector<72x8xf32>
    %c0_48 = arith.constant 0 : index
    %c0_49 = arith.constant 0 : index
    %181 = vector.load %arg4[%c0_48, %c0_49] : memref<72x8xf32, #tpu.memory_space<vmem>>, vector<72x8xf32>
    tpu.vector_store %arg4[%c0_48, %c0_49], %180 {strides = array<i32>} : memref<72x8xf32, #tpu.memory_space<vmem>>, vector<72x8xf32>,
    return
  }
  func.func @transform_0(%arg0: i32) -> (i32, i32, i32) {
    %c0_i32 = arith.constant 0 : i32
    %c0_i32_0 = arith.constant 0 : i32
    %c0_i32_1 = arith.constant 0 : i32
    return %arg0, %c0_i32, %c0_i32_0 : i32, i32, i32
  }
  func.func @transform_1(%arg0: i32) -> (i32, i32) {
    %c0_i32 = arith.constant 0 : i32
    %c0_i32_0 = arith.constant 0 : i32
    %c0_i32_1 = arith.constant 0 : i32
    return %c0_i32, %c0_i32_0 : i32, i32
  }
  func.func @transform_2(%arg0: i32) -> (i32, i32) {
    %c0_i32 = arith.constant 0 : i32
    %c0_i32_0 = arith.constant 0 : i32
    %c0_i32_1 = arith.constant 0 : i32
    return %c0_i32, %c0_i32_0 : i32, i32
  }
  func.func @transform_3(%arg0: i32) -> (i32, i32) {
    %c0_i32 = arith.constant 0 : i32
    %c0_i32_0 = arith.constant 0 : i32
    return %arg0, %c0_i32 : i32, i32
  }
}

</mosaic_0001>

<bundles_post_ra>
// kernel: gpgnn_forward_pallas.1
= control target key start
LH: loop header
LB: loop body
LE: loop exit
PB: predicated region body
PF: predicated region fallthrough
CT: control target
= control target key end

     0   :  { %s5525_s12 = smov 0   ;;  %s7073_s0 = inlined_call_operand.vmem [shape: f32[2,576,128], index: 0, kind: input, shape index: {}]   ;;  %s7074_s1 = inlined_call_operand.vmem [shape: f32[224,128], index: 1, kind: input, shape index: {}]   ;;  %s7075_s2 = inlined_call_operand.vmem [shape: f32[72,72], index: 2, kind: input, shape index: {}]   ;;  %s7076_s3 = inlined_call_operand.vmem [shape: f32[144,8], index: 3, kind: output, shape index: {}]  }
   0x1 LB: > { %s5531_s13 = sadd.s32 4294967295, %s5497_s12   ;;  %p3986_p0 = scmp.ge.s32.totalorder %s5497_s12, 1  ;;  %s5497_s12 = sphi %s5525_s12, %s13_s12  }
   0x2   : > { %p137_p1 = scmp.lt.s32.totalorder %s5497_s12, 3 }
   0x4   : > { %p138_p2 = pnand %p3986_p0, %p137_p1 }
   0x5   : > { %v172_v0 = vld [vmem:[%s7074_s1] sm:$0xff] (!%p138_p2)  ;;  %v173_v1 = vld [vmem:[%s7074_s1 + $0x8] sm:$0xff] (!%p138_p2)  ;;  %v174_v2 = vld [vmem:[%s7074_s1 + $0x10] sm:$0xff] (!%p138_p2)  ;;  %v5499_v3 = vmov (!%p138_p2), 0.0|0.0   ;;  %vm5500_vm0 = vmmov (!%p138_p2), 0   ;;  %v5501_v6 = vmov (!%p138_p2), 0.0  }
   0x6   : > { %141 = sbr.rel (%p138_p2) target bundleno = 6693 (0x1a25), region = 32  ;;  %4774 = vmatprep.subr.bf16.mxu0 (!%p138_p2), %v5499_v3  ;;  %v5545_v4 = vpack.c.bf16 (!%p138_p2), %v173_v1, %v172_v0  ;;  %v175_v5 = vld [vmem:[%s7074_s1 + $0x18] sm:$0xff] (!%p138_p2)  ;;  %4334 = vmatprep.mubr.msk.f32.mxu0 (!%p138_p2), %vm5500_vm0, %v5501_v6  ;;  %p161_p3 = scmp.lt.s32.totalorder (!%p138_p2), %s5531_s13, 1  ;;  %vm209_vm1 = vcmask (!%p138_p2), 261120   ;;  %vm3558_vm2 = vcmask (!%p138_p2), 588800   ;;  %vm3779_vm4 = vcmask (!%p138_p2), 64512  }
   0x7   : > { %4780 = vmatprep.subr.bf16.mxu1 (!%p138_p2), %v5499_v3  ;;  %4369 = vmatprep.mubr.msk.f32.mxu1 (!%p138_p2), %vm5500_vm0, %v5501_v6  ;;  %v5556_v7 = vpack.c.bf16 (!%p138_p2), %v175_v5, %v174_v2  ;;  %s5502_s27 = smov (!%p138_p2), 64   ;;  %s5503_s28 = smov (!%p138_p2), 32  }
   0x8   : > { %4776 = vmatpush3.bf16.msra.mxu0 (!%p138_p2), %v5545_v4  ;;  %4782 = vmatpush3.bf16.msra.mxu1 (!%p138_p2), %v5545_v4  ;;  %s5504_s18 = smov (!%p138_p2), 120   ;;  %s166_s19 = smul.u32 (!%p138_p2), 9, %s5531_s13 }
   0x9   : > { %4777 = vmatprep.subr.bf16.mxu0 (!%p138_p2), %v5499_v3  ;;  %4783 = vmatprep.subr.bf16.mxu1 (!%p138_p2), %v5499_v3 }
   0xa   : > { %p167_p4 = scmp.lt.s32.totalorder (!%p138_p2), %s166_s19, 17 }
   0xc   : > { %4779 = vmatpush3.bf16.msra.mxu0 (!%p138_p2), %v5556_v7  ;;  %4785 = vmatpush3.bf16.msra.mxu1 (!%p138_p2), %v5556_v7 }
   0xd   : > { %4786 = vmatprep.subr.bf16.mxu0 %v5499_v3  ;;  %4792 = vmatprep.subr.bf16.mxu1 %v5499_v3  ;;  %s162_s22 = scalar_select %p161_p3, %s5531_s13, 1 }
   0xe   : > { %s7078_s19 = smov (!%p167_p4, %s166_s19), 17 }
   0xf   : > { %4335 = vmatmul.mubr.f32.vlgmr.msra.gmra.mrb[0].mxu0 %v5501_v6  ;;  %s4864_s23 = smul.u32 576, %s162_s22  ;;  %s3988_s20 = sshll.u32 %s7078_s19, 3 }
  0x10   : > { %4337 = vmatprep.mubr.msk.f32.mxu0 %vm5500_vm0, %v5501_v6  ;;  %4788 = vmatpush3.bf16.msra.mxu0 %v5545_v4  ;;  %s7050_s25 = scalar_lea.vmem %s7076_s3, %s3988_s20 }
  0x11   : > { %4789 = vmatprep.subr.bf16.mxu0 %v5499_v3  ;;  %s5601_s26 = scalar_lea.vmem %s7073_s0, %s4864_s23 }
  0x12   : > { %v200_v8 = vld [vmem:[%s5601_s26] sm:$0xff]  ;;  %v201_v12 = vld [vmem:[%s5601_s26 + $0x8] sm:$0xff]  ;;  %v202_v16 = vld [vmem:[%s5601_s26 + $0x10] sm:$0xff] }
  0x13   : > { %4338 = vmatmul.mubr.f32.gmra.mrb[2].mxu0 %v5501_v6  ;;  %v203_v20 = vld [vmem:[%s5601_s26 + $0x18] sm:$0xff]  ;;  %v204_v25 = vld [vmem:[%s5601_s26 + $0x20] sm:$0xff]  ;;  %v205_v30 = vld [vmem:[%s5601_s26 + $0x28] sm:$0xff] }
  0x14   : > { %4340 = vmatprep.mubr.msk.f32.mxu0 %vm5500_vm0, %v5501_v6  ;;  %4791 = vmatpush3.bf16.msra.mxu0 %v5556_v7  ;;  %v206_v35 = vld [vmem:[%s5601_s26 + $0x30] sm:$0xff]  ;;  %v207_v40 = vld [vmem:[%s5601_s26 + $0x38] sm:$0xff]  ;;  %v208_v45 = vld [vmem:[%s5601_s26 + $0x40] sm:$0xff] }
  0x15   : > { %4798 = vmatprep.subr.bf16.mxu0 %v5499_v3 }
  0x17   : > { %4341 = vmatmul.mubr.f32.gmra.mrb[4].mxu0 %v5501_v6 }
  0x18   : > { %4343 = vmatprep.mubr.msk.f32.mxu0 %vm5500_vm0, %v5501_v6 }
  0x1b   : > { %4344 = vmatmul.mubr.f32.gmra.mrb[6].mxu0 %v5501_v6 }
  0x1c   : > { %4346 = vmatprep.mubr.msk.f32.mxu0 %vm5500_vm0, %v5501_v6 }
  0x1f   : > { %4347 = vmatmul.mubr.f32.gmra.mrb[8].mxu0 %v5501_v6 }
  0x20   : > { %4349 = vmatprep.mubr.msk.f32.mxu0 %vm5500_vm0, %v5501_v6 }
  0x23   : > { %4350 = vmatmul.mubr.f32.gmra.mrb[10].mxu0 %v5501_v6 }
  0x24   : > { %4352 = vmatprep.mubr.msk.f32.mxu0 %vm5500_vm0, %v5501_v6 }
  0x27   : > { %4353 = vmatmul.mubr.f32.gmra.mrb[12].mxu0 %v5501_v6 }
  0x28   : > { %4355 = vmatprep.mubr.msk.f32.mxu0 %vm5500_vm0, %v5501_v6 }
  0x2b   : > { %4356 = vmatmul.mubr.f32.gmra.mrb[14].mxu0 %v5501_v6 }
  0x2c   : > { %4358 = vmatprep.mubr.msk.f32.mxu0 %vm5500_vm0, %v5501_v6 }
  0x2f   : > { %4359 = vmatmul.mubr.f32.gmra.mrb[16].mxu0 %v5501_v6 }
  0x30   : > { %4404 = vmatprep.mubr.msk.f32.mxu0 %vm5500_vm0, %v5501_v6 }
  0xe2   : > { %v279_v9 = vpop.f32.mrb[0].mxu0 }
  0xe3   : > { %v323_v10 = vadd.f32 %v279_v9, %v200_v8  ;;  %v4336_v11 = vpop.f32.mrb[1].mxu0 }
  0xe5   : > { %4879 = vtanh.f32 %v323_v10  ;;  %v3989_v53 = vmul.f32 -1.442695, %v323_v10 }
  0xe6   : > { %v284_v13 = vpop.f32.mrb[2].mxu0 }
  0xe7   : > { %v324_v14 = vadd.f32 %v284_v13, %v201_v12  ;;  %v4339_v15 = vpop.f32.mrb[3].mxu0 }
  0xe9   : > { %4881 = vtanh.f32 %v324_v14  ;;  %v3990_v54 = vmul.f32 -1.442695, %v324_v14 }
  0xea   : > { %v289_v17 = vpop.f32.mrb[4].mxu0 }
  0xeb   : > { %v325_v18 = vadd.f32 %v289_v17, %v202_v16  ;;  %v4342_v19 = vpop.f32.mrb[5].mxu0 }
  0xed   : > { %4883 = vtanh.f32 %v325_v18  ;;  %v3991_v55 = vmul.f32 -1.442695, %v325_v18 }
  0xee   : > { %v294_v21 = vpop.f32.mrb[6].mxu0 }
  0xef   : > { %v4880_v22 = vpop.eup %4879  ;;  %v326_v23 = vadd.f32 %v294_v21, %v203_v20  ;;  %v4345_v24 = vpop.f32.mrb[7].mxu0 }
  0xf0   : > { %413 = vrot.lane.b32.xlu0 %v4880_v22, %s5502_s27 }
  0xf1   : > { %4885 = vtanh.f32 %v326_v23  ;;  %v3992_v56 = vmul.f32 -1.442695, %v326_v23 }
  0xf2   : > { %v299_v26 = vpop.f32.mrb[8].mxu0 }
  0xf3   : > { %v4882_v27 = vpop.eup %4881  ;;  %v327_v28 = vadd.f32 %v299_v26, %v204_v25  ;;  %v4348_v29 = vpop.f32.mrb[9].mxu0 }
  0xf4   : > { %415 = vrot.lane.b32.xlu0 %v4882_v27, %s5502_s27 }
  0xf5   : > { %4887 = vtanh.f32 %v327_v28  ;;  %v3993_v58 = vmul.f32 -1.442695, %v327_v28 }
  0xf6   : > { %v304_v31 = vpop.f32.mrb[10].mxu0 }
  0xf7   : > { %v4884_v32 = vpop.eup %4883  ;;  %v328_v33 = vadd.f32 %v304_v31, %v205_v30  ;;  %v4351_v34 = vpop.f32.mrb[11].mxu0 }
  0xf8   : > { %417 = vrot.lane.b32.xlu1 %v4884_v32, %s5502_s27 }
  0xf9   : > { %4889 = vtanh.f32 %v328_v33  ;;  %v3994_v61 = vmul.f32 -1.442695, %v328_v33 }
  0xfa   : > { %v309_v36 = vpop.f32.mrb[12].mxu0 }
  0xfb   : > { %v4886_v37 = vpop.eup %4885  ;;  %v329_v38 = vadd.f32 %v309_v36, %v206_v35  ;;  %v4354_v39 = vpop.f32.mrb[13].mxu0 }
  0xfc   : > { %419 = vrot.lane.b32.xlu1 %v4886_v37, %s5502_s27 }
  0xfd   : > { %4891 = vtanh.f32 %v329_v38  ;;  %v3995_v0 = vmul.f32 -1.442695, %v329_v38 }
  0xfe   : > { %v314_v41 = vpop.f32.mrb[14].mxu0 }
  0xff   : > { %v4888_v42 = vpop.eup %4887  ;;  %v330_v43 = vadd.f32 %v314_v41, %v207_v40  ;;  %v4357_v44 = vpop.f32.mrb[15].mxu0 }
 0x100   : > { %421 = vrot.lane.b32.xlu0 %v4888_v42, %s5502_s27 }
 0x101   : > { %4893 = vtanh.f32 %v330_v43  ;;  %v3996_v5 = vmul.f32 -1.442695, %v330_v43 }
 0x102   : > { %v319_v46 = vpop.f32.mrb[16].mxu0 }
 0x103   : > { %v4890_v47 = vpop.eup %4889  ;;  %v331_v48 = vadd.f32 %v319_v46, %v208_v45  ;;  %v4360_v49 = vpop.f32.mrb[17].mxu0 }
 0x104   : > { %423 = vrot.lane.b32.xlu1 %v4890_v47, %s5502_s27 }
 0x105   : > { %4895 = vtanh.f32 %v331_v48  ;;  %v3997_v12 = vmul.f32 -1.442695, %v331_v48 }
 0x106   : > { %4897 = vpow2.f32 %v3989_v53 }
 0x107   : > { %v4892_v50 = vpop.eup %4891  ;;  %4899 = vpow2.f32 %v3990_v54 }
 0x108   : > { %425 = vrot.lane.b32.xlu0 %v4892_v50, %s5502_s27  ;;  %4901 = vpow2.f32 %v3991_v55 }
 0x109   : > { %4903 = vpow2.f32 %v3992_v56 }
 0x10a   : > { %4905 = vpow2.f32 %v3993_v58 }
 0x10b   : > { %v4894_v51 = vpop.eup %4893 }
 0x10c   : > { %427 = vrot.lane.b32.xlu1 %v4894_v51, %s5502_s27 }
 0x10f   : > { %v4896_v52 = vpop.eup %4895 }
 0x110   : > { %429 = vrot.lane.b32.xlu0 %v4896_v52, %s5502_s27  ;;  %v4898_v57 = vpop.eup %4897 }
 0x111   : > { %v359_v59 = vadd.f32 1.0, %v4898_v57  ;;  %v4900_v60 = vpop.eup %4899 }
 0x112   : > { %v360_v62 = vadd.f32 1.0, %v4900_v60  ;;  %v4902_v63 = vpop.eup %4901 }
 0x113   : > { %4907 = vrcp.f32 %v359_v59  ;;  %v361_v1 = vadd.f32 1.0, %v4902_v63  ;;  %v4904_v2 = vpop.eup %4903 }
 0x114   : > { %4909 = vpow2.f32 %v3994_v61  ;;  %v362_v8 = vadd.f32 1.0, %v4904_v2  ;;  %v4906_v9 = vpop.eup %4905 }
 0x115   : > { %4911 = vrcp.f32 %v360_v62  ;;  %v363_v14 = vadd.f32 1.0, %v4906_v9 }
 0x116   : > { %4913 = vpow2.f32 %v3995_v0 }
 0x117   : > { %4915 = vrcp.f32 %v361_v1 }
 0x118   : > { %4917 = vpow2.f32 %v3996_v5 }
 0x119   : > { %4919 = vrcp.f32 %v362_v8 }
 0x11a   : > { %4921 = vpow2.f32 %v3997_v12 }
 0x11b   : > { %4923 = vrcp.f32 %v363_v14 }
 0x11d   : > { %v5621_v10 = vpop.eup %4907 }
 0x11e   : > { %v4910_v15 = vpop.eup %4909  ;;  %v395_v47 = vmul.f32 0.0, %v5621_v10 }
 0x11f   : > { %v5625_v16 = vpop.eup %4911  ;;  %v364_v19 = vadd.f32 1.0, %v4910_v15 }
 0x120   : > { %v4914_v20 = vpop.eup %4913  ;;  %v396_v50 = vmul.f32 0.0, %v5625_v16 }
 0x121   : > { %v5629_v21 = vpop.eup %4915  ;;  %4925 = vrcp.f32 %v364_v19  ;;  %v365_v24 = vadd.f32 1.0, %v4914_v20 }
 0x122   : > { %v4918_v25 = vpop.eup %4917  ;;  %v397_v53 = vmul.f32 0.0, %v5629_v21 }
 0x123   : > { %v5633_v26 = vpop.eup %4919  ;;  %4927 = vrcp.f32 %v365_v24  ;;  %v366_v29 = vadd.f32 1.0, %v4918_v25 }
 0x124   : > { %v4922_v30 = vpop.eup %4921  ;;  %v398_v56 = vmul.f32 0.0, %v5633_v26 }
 0x125   : > { %v5637_v31 = vpop.eup %4923  ;;  %4929 = vrcp.f32 %v366_v29  ;;  %v367_v34 = vadd.f32 1.0, %v4922_v30 }
 0x126   : > { %v399_v60 = vmul.f32 0.0, %v5637_v31 }
 0x127   : > { %4931 = vrcp.f32 %v367_v34 }
 0x12b   : > { %v5641_v35 = vpop.eup %4925 }
 0x12c   : > { %v400_v0 = vmul.f32 0.0, %v5641_v35 }
 0x12d   : > { %v5645_v38 = vpop.eup %4927 }
 0x12e   : > { %v401_v8 = vmul.f32 0.0, %v5645_v38 }
 0x12f   : > { %v5649_v41 = vpop.eup %4929 }
 0x131   : > { %v5653_v44 = vpop.eup %4931 }
 0x162   : > { %v414_v11 = vpop.permute.xlu0 %413 }
 0x163   : > { %v440_v13 = vmul.f32 %v5621_v10, %v414_v11 }
 0x165   : > { %458 = vrot.lane.b32.xlu1 %v440_v13, %s5503_s28  ;;  %v402_v13 = vmul.f32 0.0, %v5649_v41 }
 0x166   : > { %v416_v17 = vpop.permute.xlu0 %415 }
 0x167   : > { %v441_v18 = vmul.f32 %v5625_v16, %v416_v17 }
 0x169   : > { %460 = vrot.lane.b32.xlu0 %v441_v18, %s5503_s28  ;;  %v403_v18 = vmul.f32 0.0, %v5653_v44 }
 0x16a   : > { %v418_v22 = vpop.permute.xlu1 %417 }
 0x16b   : > { %v442_v23 = vmul.f32 %v5629_v21, %v418_v22 }
 0x16d   : > { %462 = vrot.lane.b32.xlu1 %v442_v23, %s5503_s28 }
 0x16e   : > { %v420_v27 = vpop.permute.xlu1 %419 }
 0x16f   : > { %v443_v28 = vmul.f32 %v5633_v26, %v420_v27 }
 0x171   : > { %464 = vrot.lane.b32.xlu0 %v443_v28, %s5503_s28 }
 0x172   : > { %v422_v32 = vpop.permute.xlu0 %421 }
 0x173   : > { %v444_v33 = vmul.f32 %v5637_v31, %v422_v32 }
 0x175   : > { %466 = vrot.lane.b32.xlu1 %v444_v33, %s5503_s28 }
 0x176   : > { %v424_v36 = vpop.permute.xlu1 %423 }
 0x177   : > { %v445_v37 = vmul.f32 %v5641_v35, %v424_v36 }
 0x179   : > { %468 = vrot.lane.b32.xlu0 %v445_v37, %s5503_s28 }
 0x17a   : > { %v426_v39 = vpop.permute.xlu0 %425 }
 0x17b   : > { %v446_v40 = vmul.f32 %v5645_v38, %v426_v39 }
 0x17d   : > { %470 = vrot.lane.b32.xlu1 %v446_v40, %s5503_s28 }
 0x17e   : > { %v428_v42 = vpop.permute.xlu1 %427 }
 0x17f   : > { %v447_v43 = vmul.f32 %v5649_v41, %v428_v42 }
 0x181   : > { %472 = vrot.lane.b32.xlu0 %v447_v43, %s5503_s28 }
 0x182   : > { %v430_v45 = vpop.permute.xlu0 %429 }
 0x183   : > { %v448_v46 = vmul.f32 %v5653_v44, %v430_v45 }
 0x185   : > { %474 = vrot.lane.b32.xlu1 %v448_v46, %s5503_s28 }
 0x1d7   : > { %v459_v48 = vpop.permute.xlu1 %458 }
 0x1d8   : > { %v5658_v49 = vadd.f32 %v459_v48, %v395_v47 }
 0x1da   : > { %4933 = vtanh.f32 %v5658_v49 }
 0x1db   : > { %v461_v51 = vpop.permute.xlu0 %460 }
 0x1dc   : > { %v5662_v52 = vadd.f32 %v461_v51, %v396_v50  ;;  %v548_v51 = vld [vmem:[%s5601_s26 + $0x48] sm:$0xff] }
 0x1de   : > { %4935 = vtanh.f32 %v5662_v52 }
 0x1df   : > { %v463_v54 = vpop.permute.xlu1 %462 }
 0x1e0   : > { %v5666_v55 = vadd.f32 %v463_v54, %v397_v53 }
 0x1e2   : > { %4937 = vtanh.f32 %v5666_v55 }
 0x1e3   : > { %v465_v57 = vpop.permute.xlu0 %464 }
 0x1e4   : > { %v4934_v58 = vpop.eup %4933  ;;  %v5670_v59 = vadd.f32 %v465_v57, %v398_v56  ;;  %v549_v57 = vld [vmem:[%s5601_s26 + $0x50] sm:$0xff] }
 0x1e5   : > { %512 = vrot.lane.b32.xlu0 %v4934_v58, %s5502_s27 }
 0x1e6   : > { %4939 = vtanh.f32 %v5670_v59 }
 0x1e7   : > { %v467_v61 = vpop.permute.xlu1 %466 }
 0x1e8   : > { %v4936_v62 = vpop.eup %4935  ;;  %v5675_v63 = vadd.f32 %v467_v61, %v399_v60 }
 0x1e9   : > { %514 = vrot.lane.b32.xlu1 %v4936_v62, %s5502_s27  ;;  %v550_v62 = vld [vmem:[%s5601_s26 + $0x58] sm:$0xff] }
 0x1ea   : > { %4941 = vtanh.f32 %v5675_v63 }
 0x1eb   : > { %v469_v1 = vpop.permute.xlu0 %468 }
 0x1ec   : > { %v4938_v2 = vpop.eup %4937  ;;  %v5680_v5 = vadd.f32 %v469_v1, %v400_v0 }
 0x1ed   : > { %516 = vrot.lane.b32.xlu0 %v4938_v2, %s5502_s27 }
 0x1ee   : > { %4943 = vtanh.f32 %v5680_v5 }
 0x1ef   : > { %v471_v9 = vpop.permute.xlu1 %470 }
 0x1f0   : > { %v4940_v11 = vpop.eup %4939  ;;  %v5685_v12 = vadd.f32 %v471_v9, %v401_v8  ;;  %v551_v8 = vld [vmem:[%s5601_s26 + $0x60] sm:$0xff] }
 0x1f1   : > { %518 = vrot.lane.b32.xlu1 %v4940_v11, %s5502_s27 }
 0x1f2   : > { %4945 = vtanh.f32 %v5685_v12 }
 0x1f3   : > { %v473_v14 = vpop.permute.xlu0 %472 }
 0x1f4   : > { %v4942_v15 = vpop.eup %4941  ;;  %v5690_v17 = vadd.f32 %v473_v14, %v402_v13 }
 0x1f5   : > { %520 = vrot.lane.b32.xlu0 %v4942_v15, %s5502_s27  ;;  %v552_v15 = vld [vmem:[%s5601_s26 + $0x68] sm:$0xff] }
 0x1f6   : > { %4947 = vtanh.f32 %v5690_v17 }
 0x1f7   : > { %v475_v19 = vpop.permute.xlu1 %474 }
 0x1f8   : > { %v4944_v20 = vpop.eup %4943  ;;  %v5695_v22 = vadd.f32 %v475_v19, %v403_v18 }
 0x1f9   : > { %522 = vrot.lane.b32.xlu1 %v4944_v20, %s5502_s27 }
 0x1fa   : > { %4949 = vtanh.f32 %v5695_v22 }
 0x1fc   : > { %v4946_v23 = vpop.eup %4945 }
 0x1fd   : > { %524 = vrot.lane.b32.xlu0 %v4946_v23, %s5502_s27 }
 0x200   : > { %v4948_v24 = vpop.eup %4947 }
 0x201   : > { %526 = vrot.lane.b32.xlu1 %v4948_v24, %s5502_s27  ;;  %v553_v24 = vld [vmem:[%s5601_s26 + $0x70] sm:$0xff] }
 0x204   : > { %v4950_v25 = vpop.eup %4949 }
 0x205   : > { %528 = vrot.lane.b32.xlu0 %v4950_v25, %s5502_s27 }
 0x257   : > { %v513_v27 = vpop.permute.xlu0 %512 }
 0x258   : > { %v539_v28 = vmul.f32 %v5621_v10, %v513_v27 }
 0x25a   : > { %566 = vrot.lane.b32.xlu1 %v539_v28, %s5503_s28 }
 0x25b   : > { %v515_v29 = vpop.permute.xlu1 %514 }
 0x25c   : > { %v540_v30 = vmul.f32 %v5625_v16, %v515_v29 }
 0x25e   : > { %568 = vrot.lane.b32.xlu0 %v540_v30, %s5503_s28  ;;  %v554_v30 = vld [vmem:[%s5601_s26 + $0x78] sm:$0xff] }
 0x25f   : > { %v517_v32 = vpop.permute.xlu0 %516 }
 0x260   : > { %v541_v33 = vmul.f32 %v5629_v21, %v517_v32 }
 0x262   : > { %570 = vrot.lane.b32.xlu1 %v541_v33, %s5503_s28 }
 0x263   : > { %v519_v34 = vpop.permute.xlu1 %518 }
 0x264   : > { %v542_v36 = vmul.f32 %v5633_v26, %v519_v34 }
 0x266   : > { %572 = vrot.lane.b32.xlu0 %v542_v36, %s5503_s28 }
 0x267   : > { %v521_v37 = vpop.permute.xlu0 %520 }
 0x268   : > { %v543_v10 = vmul.f32 %v5637_v31, %v521_v37  ;;  %v555_v37 = vld [vmem:[%s5601_s26 + $0x80] sm:$0xff] }
 0x26a   : > { %574 = vrot.lane.b32.xlu1 %v543_v10, %s5503_s28 }
 0x26b   : > { %v523_v39 = vpop.permute.xlu1 %522 }
 0x26c   : > { %v544_v16 = vmul.f32 %v5641_v35, %v523_v39 }
 0x26e   : > { %576 = vrot.lane.b32.xlu0 %v544_v16, %s5503_s28 }
 0x26f   : > { %v525_v40 = vpop.permute.xlu0 %524 }
 0x270   : > { %v545_v21 = vmul.f32 %v5645_v38, %v525_v40 }
 0x272   : > { %578 = vrot.lane.b32.xlu1 %v545_v21, %s5503_s28  ;;  %v556_v21 = vld [vmem:[%s5601_s26 + $0x88] sm:$0xff] }
 0x273   : > { %v527_v42 = vpop.permute.xlu1 %526 }
 0x274   : > { %v546_v26 = vmul.f32 %v5649_v41, %v527_v42 }
 0x276   : > { %580 = vrot.lane.b32.xlu0 %v546_v26, %s5503_s28 }
 0x277   : > { %v529_v43 = vpop.permute.xlu0 %528 }
 0x278   : > { %v547_v31 = vmul.f32 %v5653_v44, %v529_v43 }
 0x27a   : > { %582 = vrot.lane.b32.xlu1 %v547_v31, %s5503_s28 }
 0x2cc   : > { %v567_v45 = vpop.permute.xlu1 %566 }
 0x2cd   : > { %4370 = vmatmul.mubr.msk.f32.vlgmr.msra.gmra.mrb[0].mxu1 %vm209_vm1, %v567_v45 }
 0x2ce   : > { %4372 = vmatprep.mubr.msk.f32.mxu1 %vm5500_vm0, %v5501_v6  ;;  %4794 = vmatpush3.bf16.msra.mxu1 %v5545_v4 }
 0x2cf   : > { %4795 = vmatprep.subr.bf16.mxu1 %v5499_v3 }
 0x2d0   : > { %v569_v35 = vpop.permute.xlu0 %568 }
 0x2d1   : > { %4373 = vmatmul.mubr.msk.f32.gmra.mrb[2].mxu1 %vm209_vm1, %v569_v35 }
 0x2d2   : > { %4375 = vmatprep.mubr.msk.f32.mxu1 %vm5500_vm0, %v5501_v6  ;;  %4797 = vmatpush3.bf16.msra.mxu1 %v5556_v7 }
 0x2d3   : > { %4804 = vmatprep.subr.bf16.mxu1 %v5499_v3 }
 0x2d4   : > { %v571_v38 = vpop.permute.xlu1 %570 }
 0x2d5   : > { %4376 = vmatmul.mubr.msk.f32.gmra.mrb[4].mxu1 %vm209_vm1, %v571_v38 }
 0x2d6   : > { %4378 = vmatprep.mubr.msk.f32.mxu1 %vm5500_vm0, %v5501_v6 }
 0x2d8   : > { %v573_v41 = vpop.permute.xlu0 %572 }
 0x2d9   : > { %4379 = vmatmul.mubr.msk.f32.gmra.mrb[6].mxu1 %vm209_vm1, %v573_v41 }
 0x2da   : > { %4381 = vmatprep.mubr.msk.f32.mxu1 %vm5500_vm0, %v5501_v6 }
 0x2dc   : > { %v575_v44 = vpop.permute.xlu1 %574 }
 0x2dd   : > { %4382 = vmatmul.mubr.msk.f32.gmra.mrb[8].mxu1 %vm209_vm1, %v575_v44 }
 0x2de   : > { %4384 = vmatprep.mubr.msk.f32.mxu1 %vm5500_vm0, %v5501_v6 }
 0x2e0   : > { %v577_v46 = vpop.permute.xlu0 %576 }
 0x2e1   : > { %4385 = vmatmul.mubr.msk.f32.gmra.mrb[10].mxu1 %vm209_vm1, %v577_v46 }
 0x2e2   : > { %4387 = vmatprep.mubr.msk.f32.mxu1 %vm5500_vm0, %v5501_v6 }
 0x2e4   : > { %v579_v47 = vpop.permute.xlu1 %578 }
 0x2e5   : > { %4388 = vmatmul.mubr.msk.f32.gmra.mrb[12].mxu1 %vm209_vm1, %v579_v47 }
 0x2e6   : > { %4390 = vmatprep.mubr.msk.f32.mxu1 %vm5500_vm0, %v5501_v6 }
 0x2e8   : > { %v581_v48 = vpop.permute.xlu0 %580 }
 0x2e9   : > { %4391 = vmatmul.mubr.msk.f32.gmra.mrb[14].mxu1 %vm209_vm1, %v581_v48 }
 0x2ea   : > { %4393 = vmatprep.mubr.msk.f32.mxu1 %vm5500_vm0, %v5501_v6 }
 0x2ec   : > { %v583_v50 = vpop.permute.xlu1 %582 }
 0x2ed   : > { %4394 = vmatmul.mubr.msk.f32.gmra.mrb[16].mxu1 %vm209_vm1, %v583_v50 }
 0x2ee   : > { %4439 = vmatprep.mubr.msk.f32.mxu1 %vm5500_vm0, %v5501_v6 }
 0x3a0   : > { %v668_v53 = vpop.f32.mrb[0].mxu1 }
 0x3a1   : > { %v712_v54 = vadd.f32 %v668_v53, %v548_v51  ;;  %v4371_v56 = vpop.f32.mrb[1].mxu1 }
 0x3a3   : > { %4951 = vtanh.f32 %v712_v54  ;;  %v4007_v41 = vmul.f32 -1.442695, %v712_v54 }
 0x3a4   : > { %v673_v58 = vpop.f32.mrb[2].mxu1 }
 0x3a5   : > { %v713_v60 = vadd.f32 %v673_v58, %v549_v57  ;;  %v4374_v61 = vpop.f32.mrb[3].mxu1 }
 0x3a7   : > { %4953 = vtanh.f32 %v713_v60  ;;  %v4008_v44 = vmul.f32 -1.442695, %v713_v60 }
 0x3a8   : > { %v678_v0 = vpop.f32.mrb[4].mxu1 }
 0x3a9   : > { %v714_v1 = vadd.f32 %v678_v0, %v550_v62  ;;  %v4377_v2 = vpop.f32.mrb[5].mxu1 }
 0x3ab   : > { %4955 = vtanh.f32 %v714_v1  ;;  %v4009_v46 = vmul.f32 -1.442695, %v714_v1 }
 0x3ac   : > { %v683_v9 = vpop.f32.mrb[6].mxu1 }
 0x3ad   : > { %v4952_v11 = vpop.eup %4951  ;;  %v715_v13 = vadd.f32 %v683_v9, %v551_v8  ;;  %v4380_v14 = vpop.f32.mrb[7].mxu1 }
 0x3ae   : > { %802 = vrot.lane.b32.xlu0 %v4952_v11, %s5502_s27 }
 0x3af   : > { %4957 = vtanh.f32 %v715_v13  ;;  %v4010_v47 = vmul.f32 -1.442695, %v715_v13 }
 0x3b0   : > { %v688_v18 = vpop.f32.mrb[8].mxu1 }
 0x3b1   : > { %v4954_v19 = vpop.eup %4953  ;;  %v716_v20 = vadd.f32 %v688_v18, %v552_v15  ;;  %v4383_v23 = vpop.f32.mrb[9].mxu1 }
 0x3b2   : > { %804 = vrot.lane.b32.xlu1 %v4954_v19, %s5502_s27 }
 0x3b3   : > { %4959 = vtanh.f32 %v716_v20  ;;  %v4011_v50 = vmul.f32 -1.442695, %v716_v20 }
 0x3b4   : > { %v693_v25 = vpop.f32.mrb[10].mxu1 }
 0x3b5   : > { %v4956_v27 = vpop.eup %4955  ;;  %v717_v28 = vadd.f32 %v693_v25, %v553_v24  ;;  %v4386_v29 = vpop.f32.mrb[11].mxu1 }
 0x3b6   : > { %806 = vrot.lane.b32.xlu0 %v4956_v27, %s5502_s27 }
 0x3b7   : > { %4961 = vtanh.f32 %v717_v28  ;;  %v4012_v56 = vmul.f32 -1.442695, %v717_v28 }
 0x3b8   : > { %v698_v32 = vpop.f32.mrb[12].mxu1 }
 0x3b9   : > { %v4958_v33 = vpop.eup %4957  ;;  %v718_v34 = vadd.f32 %v698_v32, %v554_v30  ;;  %v4389_v36 = vpop.f32.mrb[13].mxu1 }
 0x3ba   : > { %808 = vrot.lane.b32.xlu1 %v4958_v33, %s5502_s27 }
 0x3bb   : > { %4963 = vtanh.f32 %v718_v34  ;;  %v4013_v61 = vmul.f32 -1.442695, %v718_v34 }
 0x3bc   : > { %v703_v10 = vpop.f32.mrb[14].mxu1 }
 0x3bd   : > { %v4960_v39 = vpop.eup %4959  ;;  %v719_v16 = vadd.f32 %v703_v10, %v555_v37  ;;  %v4392_v40 = vpop.f32.mrb[15].mxu1 }
 0x3be   : > { %810 = vrot.lane.b32.xlu0 %v4960_v39, %s5502_s27 }
 0x3bf   : > { %4965 = vtanh.f32 %v719_v16  ;;  %v4014_v60 = vmul.f32 -1.442695, %v719_v16 }
 0x3c0   : > { %v708_v42 = vpop.f32.mrb[16].mxu1 }
 0x3c1   : > { %v4962_v26 = vpop.eup %4961  ;;  %v720_v43 = vadd.f32 %v708_v42, %v556_v21  ;;  %v4395_v31 = vpop.f32.mrb[17].mxu1 }
 0x3c2   : > { %812 = vrot.lane.b32.xlu1 %v4962_v26, %s5502_s27 }
 0x3c3   : > { %4967 = vtanh.f32 %v720_v43  ;;  %v4015_v9 = vmul.f32 -1.442695, %v720_v43 }
 0x3c4   : > { %4969 = vpow2.f32 %v4007_v41 }
 0x3c5   : > { %v4964_v45 = vpop.eup %4963  ;;  %4971 = vpow2.f32 %v4008_v44 }
 0x3c6   : > { %814 = vrot.lane.b32.xlu0 %v4964_v45, %s5502_s27  ;;  %4973 = vpow2.f32 %v4009_v46 }
 0x3c7   : > { %4975 = vpow2.f32 %v4010_v47 }
 0x3c8   : > { %4977 = vpow2.f32 %v4011_v50 }
 0x3c9   : > { %v4966_v35 = vpop.eup %4965 }
 0x3ca   : > { %816 = vrot.lane.b32.xlu1 %v4966_v35, %s5502_s27 }
 0x3cd   : > { %v4968_v38 = vpop.eup %4967 }
 0x3ce   : > { %818 = vrot.lane.b32.xlu0 %v4968_v38, %s5502_s27  ;;  %v4970_v48 = vpop.eup %4969 }
 0x3cf   : > { %v748_v51 = vadd.f32 1.0, %v4970_v48  ;;  %v4972_v53 = vpop.eup %4971 }
 0x3d0   : > { %v749_v57 = vadd.f32 1.0, %v4972_v53  ;;  %v4974_v58 = vpop.eup %4973 }
 0x3d1   : > { %4979 = vrcp.f32 %v748_v51  ;;  %v750_v54 = vadd.f32 1.0, %v4974_v58  ;;  %v4976_v62 = vpop.eup %4975 }
 0x3d2   : > { %4981 = vpow2.f32 %v4012_v56  ;;  %v751_v0 = vadd.f32 1.0, %v4976_v62  ;;  %v4978_v1 = vpop.eup %4977 }
 0x3d3   : > { %4983 = vrcp.f32 %v749_v57  ;;  %v752_v13 = vadd.f32 1.0, %v4978_v1 }
 0x3d4   : > { %4985 = vpow2.f32 %v4013_v61 }
 0x3d5   : > { %4987 = vrcp.f32 %v750_v54 }
 0x3d6   : > { %4989 = vpow2.f32 %v4014_v60 }
 0x3d7   : > { %4991 = vrcp.f32 %v751_v0 }
 0x3d8   : > { %4993 = vpow2.f32 %v4015_v9 }
 0x3d9   : > { %4995 = vrcp.f32 %v752_v13 }
 0x3db   : > { %v5769_v2 = vpop.eup %4979 }
 0x3dc   : > { %v4982_v14 = vpop.eup %4981  ;;  %v784_v47 = vmul.f32 %v5769_v2, %v5658_v49 }
 0x3dd   : > { %v5773_v15 = vpop.eup %4983  ;;  %v753_v20 = vadd.f32 1.0, %v4982_v14 }
 0x3de   : > { %v4986_v23 = vpop.eup %4985  ;;  %v785_v51 = vmul.f32 %v5773_v15, %v5662_v52 }
 0x3df   : > { %v5777_v24 = vpop.eup %4987  ;;  %4997 = vrcp.f32 %v753_v20  ;;  %v754_v28 = vadd.f32 1.0, %v4986_v23 }
 0x3e0   : > { %v4990_v29 = vpop.eup %4989  ;;  %v786_v57 = vmul.f32 %v5777_v24, %v5666_v55 }
 0x3e1   : > { %v5781_v30 = vpop.eup %4991  ;;  %4999 = vrcp.f32 %v754_v28  ;;  %v755_v34 = vadd.f32 1.0, %v4990_v29 }
 0x3e2   : > { %v4994_v36 = vpop.eup %4993  ;;  %v787_v49 = vmul.f32 %v5781_v30, %v5670_v59 }
 0x3e3   : > { %v5785_v37 = vpop.eup %4995  ;;  %5001 = vrcp.f32 %v755_v34  ;;  %v756_v16 = vadd.f32 1.0, %v4994_v36 }
 0x3e4   : > { %v788_v52 = vmul.f32 %v5785_v37, %v5675_v63 }
 0x3e5   : > { %5003 = vrcp.f32 %v756_v16 }
 0x3e9   : > { %v5789_v40 = vpop.eup %4997 }
 0x3ea   : > { %v789_v59 = vmul.f32 %v5789_v40, %v5680_v5 }
 0x3eb   : > { %v5793_v26 = vpop.eup %4999 }
 0x3ec   : > { %v790_v63 = vmul.f32 %v5793_v26, %v5685_v12 }
 0x3ed   : > { %v5797_v45 = vpop.eup %5001 }
 0x3ee   : > { %v791_v5 = vmul.f32 %v5797_v45, %v5690_v17 }
 0x3ef   : > { %v5801_v41 = vpop.eup %5003 }
 0x3f0   : > { %v792_v12 = vmul.f32 %v5801_v41, %v5695_v22 }
 0x420   : > { %v803_v8 = vpop.permute.xlu0 %802 }
 0x421   : > { %v829_v11 = vmul.f32 %v5769_v2, %v803_v8 }
 0x423   : > { %847 = vrot.lane.b32.xlu1 %v829_v11, %s5503_s28 }
 0x424   : > { %v805_v18 = vpop.permute.xlu1 %804 }
 0x425   : > { %v830_v19 = vmul.f32 %v5773_v15, %v805_v18 }
 0x427   : > { %849 = vrot.lane.b32.xlu0 %v830_v19, %s5503_s28 }
 0x428   : > { %v807_v25 = vpop.permute.xlu0 %806 }
 0x429   : > { %v831_v27 = vmul.f32 %v5777_v24, %v807_v25 }
 0x42b   : > { %851 = vrot.lane.b32.xlu1 %v831_v27, %s5503_s28 }
 0x42c   : > { %v809_v32 = vpop.permute.xlu1 %808 }
 0x42d   : > { %v832_v33 = vmul.f32 %v5781_v30, %v809_v32 }
 0x42f   : > { %853 = vrot.lane.b32.xlu0 %v832_v33, %s5503_s28 }
 0x430   : > { %v811_v10 = vpop.permute.xlu0 %810 }
 0x431   : > { %v833_v39 = vmul.f32 %v5785_v37, %v811_v10 }
 0x433   : > { %855 = vrot.lane.b32.xlu1 %v833_v39, %s5503_s28 }
 0x434   : > { %v813_v21 = vpop.permute.xlu1 %812 }
 0x435   : > { %v834_v42 = vmul.f32 %v5789_v40, %v813_v21 }
 0x437   : > { %857 = vrot.lane.b32.xlu0 %v834_v42, %s5503_s28 }
 0x438   : > { %v815_v43 = vpop.permute.xlu0 %814 }
 0x439   : > { %v835_v31 = vmul.f32 %v5793_v26, %v815_v43 }
 0x43b   : > { %859 = vrot.lane.b32.xlu1 %v835_v31, %s5503_s28 }
 0x43c   : > { %v817_v35 = vpop.permute.xlu1 %816 }
 0x43d   : > { %v836_v38 = vmul.f32 %v5797_v45, %v817_v35 }
 0x43f   : > { %861 = vrot.lane.b32.xlu0 %v836_v38, %s5503_s28 }
 0x440   : > { %v819_v44 = vpop.permute.xlu0 %818 }
 0x441   : > { %v837_v46 = vmul.f32 %v5801_v41, %v819_v44 }
 0x443   : > { %863 = vrot.lane.b32.xlu1 %v837_v46, %s5503_s28 }
 0x495   : > { %v848_v48 = vpop.permute.xlu1 %847 }
 0x496   : > { %v5807_v50 = vadd.f32 %v848_v48, %v784_v47 }
 0x498   : > { %5005 = vtanh.f32 %v5807_v50 }
 0x499   : > { %v850_v53 = vpop.permute.xlu0 %849 }
 0x49a   : > { %v5812_v56 = vadd.f32 %v850_v53, %v785_v51  ;;  %v937_v53 = vld [vmem:[%s5601_s26 + $0x90] sm:$0xff] }
 0x49c   : > { %5007 = vtanh.f32 %v5812_v56 }
 0x49d   : > { %v852_v58 = vpop.permute.xlu1 %851 }
 0x49e   : > { %v5817_v61 = vadd.f32 %v852_v58, %v786_v57 }
 0x4a0   : > { %5009 = vtanh.f32 %v5817_v61 }
 0x4a1   : > { %v854_v54 = vpop.permute.xlu0 %853 }
 0x4a2   : > { %v5006_v62 = vpop.eup %5005  ;;  %v5822_v60 = vadd.f32 %v854_v54, %v787_v49  ;;  %v938_v54 = vld [vmem:[%s5601_s26 + $0x98] sm:$0xff] }
 0x4a3   : > { %901 = vrot.lane.b32.xlu0 %v5006_v62, %s5502_s27 }
 0x4a4   : > { %5011 = vtanh.f32 %v5822_v60 }
 0x4a5   : > { %v856_v55 = vpop.permute.xlu1 %855 }
 0x4a6   : > { %v5008_v0 = vpop.eup %5007  ;;  %v5828_v1 = vadd.f32 %v856_v55, %v788_v52 }
 0x4a7   : > { %903 = vrot.lane.b32.xlu1 %v5008_v0, %s5502_s27  ;;  %v939_v0 = vld [vmem:[%s5601_s26 + $0xa0] sm:$0xff] }
 0x4a8   : > { %5013 = vtanh.f32 %v5828_v1 }
 0x4a9   : > { %v858_v8 = vpop.permute.xlu0 %857 }
 0x4aa   : > { %v5010_v9 = vpop.eup %5009  ;;  %v5834_v11 = vadd.f32 %v858_v8, %v789_v59 }
 0x4ab   : > { %905 = vrot.lane.b32.xlu0 %v5010_v9, %s5502_s27 }
 0x4ac   : > { %5015 = vtanh.f32 %v5834_v11 }
 0x4ad   : > { %v860_v13 = vpop.permute.xlu1 %859 }
 0x4ae   : > { %v5012_v14 = vpop.eup %5011  ;;  %v5840_v18 = vadd.f32 %v860_v13, %v790_v63  ;;  %v940_v63 = vld [vmem:[%s5601_s26 + $0xa8] sm:$0xff] }
 0x4af   : > { %907 = vrot.lane.b32.xlu1 %v5012_v14, %s5502_s27 }
 0x4b0   : > { %5017 = vtanh.f32 %v5840_v18 }
 0x4b1   : > { %v862_v19 = vpop.permute.xlu0 %861 }
 0x4b2   : > { %v5014_v20 = vpop.eup %5013  ;;  %v5846_v23 = vadd.f32 %v862_v19, %v791_v5 }
 0x4b3   : > { %909 = vrot.lane.b32.xlu0 %v5014_v20, %s5502_s27  ;;  %v941_v20 = vld [vmem:[%s5601_s26 + $0xb0] sm:$0xff] }
 0x4b4   : > { %5019 = vtanh.f32 %v5846_v23 }
 0x4b5   : > { %v864_v25 = vpop.permute.xlu1 %863 }
 0x4b6   : > { %v5016_v27 = vpop.eup %5015  ;;  %v5852_v28 = vadd.f32 %v864_v25, %v792_v12 }
 0x4b7   : > { %911 = vrot.lane.b32.xlu1 %v5016_v27, %s5502_s27 }
 0x4b8   : > { %5021 = vtanh.f32 %v5852_v28 }
 0x4ba   : > { %v5018_v17 = vpop.eup %5017 }
 0x4bb   : > { %913 = vrot.lane.b32.xlu0 %v5018_v17, %s5502_s27 }
 0x4be   : > { %v5020_v29 = vpop.eup %5019 }
 0x4bf   : > { %915 = vrot.lane.b32.xlu1 %v5020_v29, %s5502_s27  ;;  %v942_v29 = vld [vmem:[%s5601_s26 + $0xb8] sm:$0xff] }
 0x4c2   : > { %v5022_v32 = vpop.eup %5021 }
 0x4c3   : > { %917 = vrot.lane.b32.xlu0 %v5022_v32, %s5502_s27 }
 0x515   : > { %v902_v33 = vpop.permute.xlu0 %901 }
 0x516   : > { %v928_v22 = vmul.f32 %v5769_v2, %v902_v33 }
 0x518   : > { %955 = vrot.lane.b32.xlu1 %v928_v22, %s5503_s28 }
 0x519   : > { %v904_v34 = vpop.permute.xlu1 %903 }
 0x51a   : > { %v929_v36 = vmul.f32 %v5773_v15, %v904_v34 }
 0x51c   : > { %957 = vrot.lane.b32.xlu0 %v929_v36, %s5503_s28  ;;  %v943_v36 = vld [vmem:[%s5601_s26 + $0xc0] sm:$0xff] }
 0x51d   : > { %v906_v10 = vpop.permute.xlu0 %905 }
 0x51e   : > { %v930_v39 = vmul.f32 %v5777_v24, %v906_v10 }
 0x520   : > { %959 = vrot.lane.b32.xlu1 %v930_v39, %s5503_s28 }
 0x521   : > { %v908_v16 = vpop.permute.xlu1 %907 }
 0x522   : > { %v931_v21 = vmul.f32 %v5781_v30, %v908_v16 }
 0x524   : > { %961 = vrot.lane.b32.xlu0 %v931_v21, %s5503_s28 }
 0x525   : > { %v910_v42 = vpop.permute.xlu0 %909 }
 0x526   : > { %v932_v2 = vmul.f32 %v5785_v37, %v910_v42  ;;  %v944_v42 = vld [vmem:[%s5601_s26 + $0xc8] sm:$0xff] }
 0x528   : > { %963 = vrot.lane.b32.xlu1 %v932_v2, %s5503_s28 }
 0x529   : > { %v912_v43 = vpop.permute.xlu1 %911 }
 0x52a   : > { %v933_v15 = vmul.f32 %v5789_v40, %v912_v43 }
 0x52c   : > { %965 = vrot.lane.b32.xlu0 %v933_v15, %s5503_s28 }
 0x52d   : > { %v914_v31 = vpop.permute.xlu0 %913 }
 0x52e   : > { %v934_v24 = vmul.f32 %v5793_v26, %v914_v31 }
 0x530   : > { %967 = vrot.lane.b32.xlu1 %v934_v24, %s5503_s28  ;;  %v945_v24 = vld [vmem:[%s5601_s26 + $0xd0] sm:$0xff] }
 0x531   : > { %v916_v35 = vpop.permute.xlu1 %915 }
 0x532   : > { %v935_v30 = vmul.f32 %v5797_v45, %v916_v35 }
 0x534   : > { %969 = vrot.lane.b32.xlu0 %v935_v30, %s5503_s28 }
 0x535   : > { %v918_v38 = vpop.permute.xlu0 %917 }
 0x536   : > { %v936_v37 = vmul.f32 %v5801_v41, %v918_v38 }
 0x538   : > { %971 = vrot.lane.b32.xlu1 %v936_v37, %s5503_s28 }
 0x58a   : > { %v956_v44 = vpop.permute.xlu1 %955 }
 0x58b   : > { %4405 = vmatmul.mubr.msk.f32.vlgmr.msra.gmra.mrb[18].mxu0 %vm209_vm1, %v956_v44 }
 0x58c   : > { %4407 = vmatprep.mubr.msk.f32.mxu0 %vm5500_vm0, %v5501_v6  ;;  %4800 = vmatpush3.bf16.msra.mxu0 %v5545_v4 }
 0x58d   : > { %4801 = vmatprep.subr.bf16.mxu0 %v5499_v3 }
 0x58e   : > { %v958_v40 = vpop.permute.xlu0 %957 }
 0x58f   : > { %4408 = vmatmul.mubr.msk.f32.gmra.mrb[20].mxu0 %vm209_vm1, %v958_v40 }
 0x590   : > { %4410 = vmatprep.mubr.msk.f32.mxu0 %vm5500_vm0, %v5501_v6  ;;  %4803 = vmatpush3.bf16.msra.mxu0 %v5556_v7 }
 0x591   : > { %4810 = vmatprep.subr.bf16.mxu0 %v5499_v3 }
 0x592   : > { %v960_v26 = vpop.permute.xlu1 %959 }
 0x593   : > { %4411 = vmatmul.mubr.msk.f32.gmra.mrb[22].mxu0 %vm209_vm1, %v960_v26 }
 0x594   : > { %4413 = vmatprep.mubr.msk.f32.mxu0 %vm5500_vm0, %v5501_v6 }
 0x596   : > { %v962_v45 = vpop.permute.xlu0 %961 }
 0x597   : > { %4414 = vmatmul.mubr.msk.f32.gmra.mrb[24].mxu0 %vm209_vm1, %v962_v45 }
 0x598   : > { %4416 = vmatprep.mubr.msk.f32.mxu0 %vm5500_vm0, %v5501_v6 }
 0x59a   : > { %v964_v41 = vpop.permute.xlu1 %963 }
 0x59b   : > { %4417 = vmatmul.mubr.msk.f32.gmra.mrb[26].mxu0 %vm209_vm1, %v964_v41 }
 0x59c   : > { %4419 = vmatprep.mubr.msk.f32.mxu0 %vm5500_vm0, %v5501_v6 }
 0x59e   : > { %v966_v46 = vpop.permute.xlu0 %965 }
 0x59f   : > { %4420 = vmatmul.mubr.msk.f32.gmra.mrb[28].mxu0 %vm209_vm1, %v966_v46 }
 0x5a0   : > { %4422 = vmatprep.mubr.msk.f32.mxu0 %vm5500_vm0, %v5501_v6 }
 0x5a2   : > { %v968_v47 = vpop.permute.xlu1 %967 }
 0x5a3   : > { %4423 = vmatmul.mubr.msk.f32.gmra.mrb[30].mxu0 %vm209_vm1, %v968_v47 }
 0x5a4   : > { %4425 = vmatprep.mubr.msk.f32.mxu0 %vm5500_vm0, %v5501_v6 }
 0x5a6   : > { %v970_v48 = vpop.permute.xlu0 %969 }
 0x5a7   : > { %4426 = vmatmul.mubr.msk.f32.gmra.mrb[32].mxu0 %vm209_vm1, %v970_v48 }
 0x5a8   : > { %4428 = vmatprep.mubr.msk.f32.mxu0 %vm5500_vm0, %v5501_v6 }
 0x5aa   : > { %v972_v51 = vpop.permute.xlu1 %971 }
 0x5ab   : > { %4429 = vmatmul.mubr.msk.f32.gmra.mrb[34].mxu0 %vm209_vm1, %v972_v51 }
 0x5ac   : > { %4474 = vmatprep.mubr.msk.f32.mxu0 %vm5500_vm0, %v5501_v6 }
 0x65e   : > { %v1057_v57 = vpop.f32.mrb[18].mxu0 }
 0x65f   : > { %v1101_v58 = vadd.f32 %v1057_v57, %v937_v53  ;;  %v4406_v49 = vpop.f32.mrb[19].mxu0 }
 0x661   : > { %5023 = vtanh.f32 %v1101_v58  ;;  %v4025_v45 = vmul.f32 -1.442695, %v1101_v58 }
 0x662   : > { %v1062_v62 = vpop.f32.mrb[20].mxu0 }
 0x663   : > { %v1102_v52 = vadd.f32 %v1062_v62, %v938_v54  ;;  %v4409_v55 = vpop.f32.mrb[21].mxu0 }
 0x665   : > { %5025 = vtanh.f32 %v1102_v52  ;;  %v4026_v41 = vmul.f32 -1.442695, %v1102_v52 }
 0x666   : > { %v1067_v59 = vpop.f32.mrb[22].mxu0 }
 0x667   : > { %v1103_v8 = vadd.f32 %v1067_v59, %v939_v0  ;;  %v4412_v9 = vpop.f32.mrb[23].mxu0 }
 0x669   : > { %5027 = vtanh.f32 %v1103_v8  ;;  %v4027_v46 = vmul.f32 -1.442695, %v1103_v8 }
 0x66a   : > { %v1072_v13 = vpop.f32.mrb[24].mxu0 }
 0x66b   : > { %v5024_v14 = vpop.eup %5023  ;;  %v1104_v5 = vadd.f32 %v1072_v13, %v940_v63  ;;  %v4415_v19 = vpop.f32.mrb[25].mxu0 }
 0x66c   : > { %1191 = vrot.lane.b32.xlu0 %v5024_v14, %s5502_s27 }
 0x66d   : > { %5029 = vtanh.f32 %v1104_v5  ;;  %v4028_v47 = vmul.f32 -1.442695, %v1104_v5 }
 0x66e   : > { %v1077_v12 = vpop.f32.mrb[26].mxu0 }
 0x66f   : > { %v5026_v25 = vpop.eup %5025  ;;  %v1105_v27 = vadd.f32 %v1077_v12, %v941_v20  ;;  %v4418_v17 = vpop.f32.mrb[27].mxu0 }
 0x670   : > { %1193 = vrot.lane.b32.xlu1 %v5026_v25, %s5502_s27 }
 0x671   : > { %5031 = vtanh.f32 %v1105_v27  ;;  %v4029_v51 = vmul.f32 -1.442695, %v1105_v27 }
 0x672   : > { %v1082_v32 = vpop.f32.mrb[28].mxu0 }
 0x673   : > { %v5028_v33 = vpop.eup %5027  ;;  %v1106_v22 = vadd.f32 %v1082_v32, %v942_v29  ;;  %v4421_v34 = vpop.f32.mrb[29].mxu0 }
 0x674   : > { %1195 = vrot.lane.b32.xlu0 %v5028_v33, %s5502_s27 }
 0x675   : > { %5033 = vtanh.f32 %v1106_v22  ;;  %v4030_v49 = vmul.f32 -1.442695, %v1106_v22 }
 0x676   : > { %v1087_v10 = vpop.f32.mrb[30].mxu0 }
 0x677   : > { %v5030_v39 = vpop.eup %5029  ;;  %v1107_v16 = vadd.f32 %v1087_v10, %v943_v36  ;;  %v4424_v21 = vpop.f32.mrb[31].mxu0 }
 0x678   : > { %1197 = vrot.lane.b32.xlu1 %v5030_v39, %s5502_s27 }
 0x679   : > { %5035 = vtanh.f32 %v1107_v16  ;;  %v4031_v55 = vmul.f32 -1.442695, %v1107_v16 }
 0x67a   : > { %v1092_v2 = vpop.f32.mrb[32].mxu0 }
 0x67b   : > { %v5032_v43 = vpop.eup %5031  ;;  %v1108_v15 = vadd.f32 %v1092_v2, %v944_v42  ;;  %v4427_v31 = vpop.f32.mrb[33].mxu0 }
 0x67c   : > { %1199 = vrot.lane.b32.xlu0 %v5032_v43, %s5502_s27 }
 0x67d   : > { %5037 = vtanh.f32 %v1108_v15  ;;  %v4032_v52 = vmul.f32 -1.442695, %v1108_v15 }
 0x67e   : > { %v1097_v35 = vpop.f32.mrb[34].mxu0 }
 0x67f   : > { %v5034_v30 = vpop.eup %5033  ;;  %v1109_v38 = vadd.f32 %v1097_v35, %v945_v24  ;;  %v4430_v37 = vpop.f32.mrb[35].mxu0 }
 0x680   : > { %1201 = vrot.lane.b32.xlu1 %v5034_v30, %s5502_s27 }
 0x681   : > { %5039 = vtanh.f32 %v1109_v38  ;;  %v4033_v13 = vmul.f32 -1.442695, %v1109_v38 }
 0x682   : > { %5041 = vpow2.f32 %v4025_v45 }
 0x683   : > { %v5036_v44 = vpop.eup %5035  ;;  %5043 = vpow2.f32 %v4026_v41 }
 0x684   : > { %1203 = vrot.lane.b32.xlu0 %v5036_v44, %s5502_s27  ;;  %5045 = vpow2.f32 %v4027_v46 }
 0x685   : > { %5047 = vpow2.f32 %v4028_v47 }
 0x686   : > { %5049 = vpow2.f32 %v4029_v51 }
 0x687   : > { %v5038_v40 = vpop.eup %5037 }
 0x688   : > { %1205 = vrot.lane.b32.xlu1 %v5038_v40, %s5502_s27 }
 0x68b   : > { %v5040_v26 = vpop.eup %5039 }
 0x68c   : > { %1207 = vrot.lane.b32.xlu0 %v5040_v26, %s5502_s27  ;;  %v5042_v48 = vpop.eup %5041 }
 0x68d   : > { %v1137_v53 = vadd.f32 1.0, %v5042_v48  ;;  %v5044_v57 = vpop.eup %5043 }
 0x68e   : > { %v1138_v54 = vadd.f32 1.0, %v5044_v57  ;;  %v5046_v62 = vpop.eup %5045 }
 0x68f   : > { %5051 = vrcp.f32 %v1137_v53  ;;  %v1139_v58 = vadd.f32 1.0, %v5046_v62  ;;  %v5048_v0 = vpop.eup %5047 }
 0x690   : > { %5053 = vpow2.f32 %v4030_v49  ;;  %v1140_v59 = vadd.f32 1.0, %v5048_v0  ;;  %v5050_v8 = vpop.eup %5049 }
 0x691   : > { %5055 = vrcp.f32 %v1138_v54  ;;  %v1141_v5 = vadd.f32 1.0, %v5050_v8 }
 0x692   : > { %5057 = vpow2.f32 %v4031_v55 }
 0x693   : > { %5059 = vrcp.f32 %v1139_v58 }
 0x694   : > { %5061 = vpow2.f32 %v4032_v52 }
 0x695   : > { %5063 = vrcp.f32 %v1140_v59 }
 0x696   : > { %5065 = vpow2.f32 %v4033_v13 }
 0x697   : > { %5067 = vrcp.f32 %v1141_v5 }
 0x699   : > { %v5926_v9 = vpop.eup %5051 }
 0x69a   : > { %v5054_v19 = vpop.eup %5053  ;;  %v1173_v47 = vmul.f32 %v5926_v9, %v5807_v50 }
 0x69b   : > { %v5930_v20 = vpop.eup %5055  ;;  %v1142_v27 = vadd.f32 1.0, %v5054_v19 }
 0x69c   : > { %v5058_v17 = vpop.eup %5057  ;;  %v1174_v53 = vmul.f32 %v5930_v20, %v5812_v56 }
 0x69d   : > { %v5934_v29 = vpop.eup %5059  ;;  %5069 = vrcp.f32 %v1142_v27  ;;  %v1143_v22 = vadd.f32 1.0, %v5058_v17 }
 0x69e   : > { %v5062_v34 = vpop.eup %5061  ;;  %v1175_v54 = vmul.f32 %v5934_v29, %v5817_v61 }
 0x69f   : > { %v5938_v36 = vpop.eup %5063  ;;  %5071 = vrcp.f32 %v1143_v22  ;;  %v1144_v16 = vadd.f32 1.0, %v5062_v34 }
 0x6a0   : > { %v5066_v21 = vpop.eup %5065  ;;  %v1176_v50 = vmul.f32 %v5938_v36, %v5822_v60 }
 0x6a1   : > { %v5942_v42 = vpop.eup %5067  ;;  %5073 = vrcp.f32 %v1144_v16  ;;  %v1145_v15 = vadd.f32 1.0, %v5066_v21 }
 0x6a2   : > { %v1177_v56 = vmul.f32 %v5942_v42, %v5828_v1 }
 0x6a3   : > { %5075 = vrcp.f32 %v1145_v15 }
 0x6a7   : > { %v5946_v31 = vpop.eup %5069 }
 0x6a8   : > { %v1178_v60 = vmul.f32 %v5946_v31, %v5834_v11 }
 0x6a9   : > { %v5950_v30 = vpop.eup %5071 }
 0x6aa   : > { %v1179_v1 = vmul.f32 %v5950_v30, %v5840_v18 }
 0x6ab   : > { %v5954_v44 = vpop.eup %5073 }
 0x6ac   : > { %v1180_v11 = vmul.f32 %v5954_v44, %v5846_v23 }
 0x6ad   : > { %v5958_v45 = vpop.eup %5075 }
 0x6ae   : > { %v1181_v18 = vmul.f32 %v5958_v45, %v5852_v28 }
 0x6de   : > { %v1192_v63 = vpop.permute.xlu0 %1191 }
 0x6df   : > { %v1218_v14 = vmul.f32 %v5926_v9, %v1192_v63 }
 0x6e1   : > { %1236 = vrot.lane.b32.xlu1 %v1218_v14, %s5503_s28 }
 0x6e2   : > { %v1194_v12 = vpop.permute.xlu1 %1193 }
 0x6e3   : > { %v1219_v25 = vmul.f32 %v5930_v20, %v1194_v12 }
 0x6e5   : > { %1238 = vrot.lane.b32.xlu0 %v1219_v25, %s5503_s28 }
 0x6e6   : > { %v1196_v32 = vpop.permute.xlu0 %1195 }
 0x6e7   : > { %v1220_v33 = vmul.f32 %v5934_v29, %v1196_v32 }
 0x6e9   : > { %1240 = vrot.lane.b32.xlu1 %v1220_v33, %s5503_s28 }
 0x6ea   : > { %v1198_v10 = vpop.permute.xlu1 %1197 }
 0x6eb   : > { %v1221_v39 = vmul.f32 %v5938_v36, %v1198_v10 }
 0x6ed   : > { %1242 = vrot.lane.b32.xlu0 %v1221_v39, %s5503_s28 }
 0x6ee   : > { %v1200_v2 = vpop.permute.xlu0 %1199 }
 0x6ef   : > { %v1222_v43 = vmul.f32 %v5942_v42, %v1200_v2 }
 0x6f1   : > { %1244 = vrot.lane.b32.xlu1 %v1222_v43, %s5503_s28 }
 0x6f2   : > { %v1202_v24 = vpop.permute.xlu1 %1201 }
 0x6f3   : > { %v1223_v35 = vmul.f32 %v5946_v31, %v1202_v24 }
 0x6f5   : > { %1246 = vrot.lane.b32.xlu0 %v1223_v35, %s5503_s28 }
 0x6f6   : > { %v1204_v38 = vpop.permute.xlu0 %1203 }
 0x6f7   : > { %v1224_v37 = vmul.f32 %v5950_v30, %v1204_v38 }
 0x6f9   : > { %1248 = vrot.lane.b32.xlu1 %v1224_v37, %s5503_s28 }
 0x6fa   : > { %v1206_v40 = vpop.permute.xlu1 %1205 }
 0x6fb   : > { %v1225_v26 = vmul.f32 %v5954_v44, %v1206_v40 }
 0x6fd   : > { %1250 = vrot.lane.b32.xlu0 %v1225_v26, %s5503_s28 }
 0x6fe   : > { %v1208_v41 = vpop.permute.xlu0 %1207 }
 0x6ff   : > { %v1226_v46 = vmul.f32 %v5958_v45, %v1208_v41 }
 0x701   : > { %1252 = vrot.lane.b32.xlu1 %v1226_v46, %s5503_s28 }
 0x753   : > { %v1237_v48 = vpop.permute.xlu1 %1236 }
 0x754   : > { %v5964_v51 = vadd.f32 %v1237_v48, %v1173_v47 }
 0x756   : > { %5077 = vtanh.f32 %v5964_v51 }
 0x757   : > { %v1239_v57 = vpop.permute.xlu0 %1238 }
 0x758   : > { %v5969_v49 = vadd.f32 %v1239_v57, %v1174_v53  ;;  %v1326_v57 = vld [vmem:[%s5601_s26 + $0xd8] sm:$0xff] }
 0x75a   : > { %5079 = vtanh.f32 %v5969_v49 }
 0x75b   : > { %v1241_v62 = vpop.permute.xlu1 %1240 }
 0x75c   : > { %v5974_v55 = vadd.f32 %v1241_v62, %v1175_v54 }
 0x75e   : > { %5081 = vtanh.f32 %v5974_v55 }
 0x75f   : > { %v1243_v58 = vpop.permute.xlu0 %1242 }
 0x760   : > { %v5078_v0 = vpop.eup %5077  ;;  %v5979_v52 = vadd.f32 %v1243_v58, %v1176_v50  ;;  %v1327_v58 = vld [vmem:[%s5601_s26 + $0xe0] sm:$0xff] }
 0x761   : > { %1290 = vrot.lane.b32.xlu0 %v5078_v0, %s5502_s27 }
 0x762   : > { %5083 = vtanh.f32 %v5979_v52 }
 0x763   : > { %v1245_v61 = vpop.permute.xlu1 %1244 }
 0x764   : > { %v5080_v59 = vpop.eup %5079  ;;  %v5985_v8 = vadd.f32 %v1245_v61, %v1177_v56 }
 0x765   : > { %1292 = vrot.lane.b32.xlu1 %v5080_v59, %s5502_s27  ;;  %v1328_v59 = vld [vmem:[%s5601_s26 + $0xe8] sm:$0xff] }
 0x766   : > { %5085 = vtanh.f32 %v5985_v8 }
 0x767   : > { %v1247_v63 = vpop.permute.xlu0 %1246 }
 0x768   : > { %v5082_v13 = vpop.eup %5081  ;;  %v5991_v14 = vadd.f32 %v1247_v63, %v1178_v60 }
 0x769   : > { %1294 = vrot.lane.b32.xlu0 %v5082_v13, %s5502_s27 }
 0x76a   : > { %5087 = vtanh.f32 %v5991_v14 }
 0x76b   : > { %v1249_v5 = vpop.permute.xlu1 %1248 }
 0x76c   : > { %v5084_v19 = vpop.eup %5083  ;;  %v5997_v12 = vadd.f32 %v1249_v5, %v1179_v1  ;;  %v1329_v1 = vld [vmem:[%s5601_s26 + $0xf0] sm:$0xff] }
 0x76d   : > { %1296 = vrot.lane.b32.xlu1 %v5084_v19, %s5502_s27 }
 0x76e   : > { %5089 = vtanh.f32 %v5997_v12 }
 0x76f   : > { %v1251_v25 = vpop.permute.xlu0 %1250 }
 0x770   : > { %v5086_v27 = vpop.eup %5085  ;;  %v6003_v17 = vadd.f32 %v1251_v25, %v1180_v11 }
 0x771   : > { %1298 = vrot.lane.b32.xlu0 %v5086_v27, %s5502_s27  ;;  %v1330_v27 = vld [vmem:[%s5601_s26 + $0xf8] sm:$0xff] }
 0x772   : > { %5091 = vtanh.f32 %v6003_v17 }
 0x773   : > { %v1253_v32 = vpop.permute.xlu1 %1252 }
 0x774   : > { %v5088_v33 = vpop.eup %5087  ;;  %v6009_v22 = vadd.f32 %v1253_v32, %v1181_v18 }
 0x775   : > { %1300 = vrot.lane.b32.xlu1 %v5088_v33, %s5502_s27 }
 0x776   : > { %5093 = vtanh.f32 %v6009_v22 }
 0x778   : > { %v5090_v23 = vpop.eup %5089 }
 0x779   : > { %1302 = vrot.lane.b32.xlu0 %v5090_v23, %s5502_s27 }
 0x77c   : > { %v5092_v34 = vpop.eup %5091 }
 0x77d   : > { %1304 = vrot.lane.b32.xlu1 %v5092_v34, %s5502_s27  ;;  %v1331_v34 = vld [vmem:[%s5601_s26 + $0x100] sm:$0xff] }
 0x780   : > { %v5094_v10 = vpop.eup %5093 }
 0x781   : > { %1306 = vrot.lane.b32.xlu0 %v5094_v10, %s5502_s27 }
 0x7d3   : > { %v1291_v39 = vpop.permute.xlu0 %1290 }
 0x7d4   : > { %v1317_v28 = vmul.f32 %v5926_v9, %v1291_v39 }
 0x7d6   : > { %1344 = vrot.lane.b32.xlu1 %v1317_v28, %s5503_s28 }
 0x7d7   : > { %v1293_v16 = vpop.permute.xlu1 %1292 }
 0x7d8   : > { %v1318_v21 = vmul.f32 %v5930_v20, %v1293_v16 }
 0x7da   : > { %1346 = vrot.lane.b32.xlu0 %v1318_v21, %s5503_s28  ;;  %v1332_v21 = vld [vmem:[%s5601_s26 + $0x108] sm:$0xff] }
 0x7db   : > { %v1295_v2 = vpop.permute.xlu0 %1294 }
 0x7dc   : > { %v1319_v43 = vmul.f32 %v5934_v29, %v1295_v2 }
 0x7de   : > { %1348 = vrot.lane.b32.xlu1 %v1319_v43, %s5503_s28 }
 0x7df   : > { %v1297_v15 = vpop.permute.xlu1 %1296 }
 0x7e0   : > { %v1320_v24 = vmul.f32 %v5938_v36, %v1297_v15 }
 0x7e2   : > { %1350 = vrot.lane.b32.xlu0 %v1320_v24, %s5503_s28 }
 0x7e3   : > { %v1299_v35 = vpop.permute.xlu0 %1298 }
 0x7e4   : > { %v1321_v9 = vmul.f32 %v5942_v42, %v1299_v35  ;;  %v1333_v35 = vld [vmem:[%s5601_s26 + $0x110] sm:$0xff] }
 0x7e6   : > { %1352 = vrot.lane.b32.xlu1 %v1321_v9, %s5503_s28 }
 0x7e7   : > { %v1301_v38 = vpop.permute.xlu1 %1300 }
 0x7e8   : > { %v1322_v20 = vmul.f32 %v5946_v31, %v1301_v38 }
 0x7ea   : > { %1354 = vrot.lane.b32.xlu0 %v1322_v20, %s5503_s28 }
 0x7eb   : > { %v1303_v37 = vpop.permute.xlu0 %1302 }
 0x7ec   : > { %v1323_v29 = vmul.f32 %v5950_v30, %v1303_v37 }
 0x7ee   : > { %1356 = vrot.lane.b32.xlu1 %v1323_v29, %s5503_s28  ;;  %v1334_v29 = vld [vmem:[%s5601_s26 + $0x118] sm:$0xff] }
 0x7ef   : > { %v1305_v40 = vpop.permute.xlu1 %1304 }
 0x7f0   : > { %v1324_v36 = vmul.f32 %v5954_v44, %v1305_v40 }
 0x7f2   : > { %1358 = vrot.lane.b32.xlu0 %v1324_v36, %s5503_s28 }
 0x7f3   : > { %v1307_v26 = vpop.permute.xlu0 %1306 }
 0x7f4   : > { %v1325_v42 = vmul.f32 %v5958_v45, %v1307_v26 }
 0x7f6   : > { %1360 = vrot.lane.b32.xlu1 %v1325_v42, %s5503_s28 }
 0x848   : > { %v1345_v41 = vpop.permute.xlu1 %1344 }
 0x849   : > { %4440 = vmatmul.mubr.msk.f32.vlgmr.msra.gmra.mrb[18].mxu1 %vm209_vm1, %v1345_v41 }
 0x84a   : > { %4442 = vmatprep.mubr.msk.f32.mxu1 %vm5500_vm0, %v5501_v6  ;;  %4806 = vmatpush3.bf16.msra.mxu1 %v5545_v4 }
 0x84b   : > { %4807 = vmatprep.subr.bf16.mxu1 %v5499_v3 }
 0x84c   : > { %v1347_v31 = vpop.permute.xlu0 %1346 }
 0x84d   : > { %4443 = vmatmul.mubr.msk.f32.gmra.mrb[20].mxu1 %vm209_vm1, %v1347_v31 }
 0x84e   : > { %4445 = vmatprep.mubr.msk.f32.mxu1 %vm5500_vm0, %v5501_v6  ;;  %4809 = vmatpush3.bf16.msra.mxu1 %v5556_v7 }
 0x84f   : > { %4816 = vmatprep.subr.bf16.mxu1 %v5499_v3 }
 0x850   : > { %v1349_v30 = vpop.permute.xlu1 %1348 }
 0x851   : > { %4446 = vmatmul.mubr.msk.f32.gmra.mrb[22].mxu1 %vm209_vm1, %v1349_v30 }
 0x852   : > { %4448 = vmatprep.mubr.msk.f32.mxu1 %vm5500_vm0, %v5501_v6 }
 0x854   : > { %v1351_v44 = vpop.permute.xlu0 %1350 }
 0x855   : > { %4449 = vmatmul.mubr.msk.f32.gmra.mrb[24].mxu1 %vm209_vm1, %v1351_v44 }
 0x856   : > { %4451 = vmatprep.mubr.msk.f32.mxu1 %vm5500_vm0, %v5501_v6 }
 0x858   : > { %v1353_v45 = vpop.permute.xlu1 %1352 }
 0x859   : > { %4452 = vmatmul.mubr.msk.f32.gmra.mrb[26].mxu1 %vm209_vm1, %v1353_v45 }
 0x85a   : > { %4454 = vmatprep.mubr.msk.f32.mxu1 %vm5500_vm0, %v5501_v6 }
 0x85c   : > { %v1355_v46 = vpop.permute.xlu0 %1354 }
 0x85d   : > { %4455 = vmatmul.mubr.msk.f32.gmra.mrb[28].mxu1 %vm209_vm1, %v1355_v46 }
 0x85e   : > { %4457 = vmatprep.mubr.msk.f32.mxu1 %vm5500_vm0, %v5501_v6 }
 0x860   : > { %v1357_v47 = vpop.permute.xlu1 %1356 }
 0x861   : > { %4458 = vmatmul.mubr.msk.f32.gmra.mrb[30].mxu1 %vm209_vm1, %v1357_v47 }
 0x862   : > { %4460 = vmatprep.mubr.msk.f32.mxu1 %vm5500_vm0, %v5501_v6 }
 0x864   : > { %v1359_v48 = vpop.permute.xlu0 %1358 }
 0x865   : > { %4461 = vmatmul.mubr.msk.f32.gmra.mrb[32].mxu1 %vm209_vm1, %v1359_v48 }
 0x866   : > { %4463 = vmatprep.mubr.msk.f32.mxu1 %vm5500_vm0, %v5501_v6 }
 0x868   : > { %v1361_v53 = vpop.permute.xlu1 %1360 }
 0x869   : > { %4464 = vmatmul.mubr.msk.f32.gmra.mrb[34].mxu1 %vm209_vm1, %v1361_v53 }
 0x86a   : > { %4509 = vmatprep.mubr.msk.f32.mxu1 %vm5500_vm0, %v5501_v6 }
 0x91c   : > { %v1446_v54 = vpop.f32.mrb[18].mxu1 }
 0x91d   : > { %v1490_v62 = vadd.f32 %v1446_v54, %v1326_v57  ;;  %v4441_v50 = vpop.f32.mrb[19].mxu1 }
 0x91f   : > { %5095 = vtanh.f32 %v1490_v62  ;;  %v4043_v44 = vmul.f32 -1.442695, %v1490_v62 }
 0x920   : > { %v1451_v0 = vpop.f32.mrb[20].mxu1 }
 0x921   : > { %v1491_v56 = vadd.f32 %v1451_v0, %v1327_v58  ;;  %v4444_v61 = vpop.f32.mrb[21].mxu1 }
 0x923   : > { %5097 = vtanh.f32 %v1491_v56  ;;  %v4044_v45 = vmul.f32 -1.442695, %v1491_v56 }
 0x924   : > { %v1456_v60 = vpop.f32.mrb[22].mxu1 }
 0x925   : > { %v1492_v63 = vadd.f32 %v1456_v60, %v1328_v59  ;;  %v4447_v13 = vpop.f32.mrb[23].mxu1 }
 0x927   : > { %5099 = vtanh.f32 %v1492_v63  ;;  %v4045_v46 = vmul.f32 -1.442695, %v1492_v63 }
 0x928   : > { %v1461_v5 = vpop.f32.mrb[24].mxu1 }
 0x929   : > { %v5096_v19 = vpop.eup %5095  ;;  %v1493_v11 = vadd.f32 %v1461_v5, %v1329_v1  ;;  %v4450_v25 = vpop.f32.mrb[25].mxu1 }
 0x92a   : > { %1580 = vrot.lane.b32.xlu0 %v5096_v19, %s5502_s27 }
 0x92b   : > { %5101 = vtanh.f32 %v1493_v11  ;;  %v4046_v47 = vmul.f32 -1.442695, %v1493_v11 }
 0x92c   : > { %v1466_v18 = vpop.f32.mrb[26].mxu1 }
 0x92d   : > { %v5098_v32 = vpop.eup %5097  ;;  %v1494_v33 = vadd.f32 %v1466_v18, %v1330_v27  ;;  %v4453_v23 = vpop.f32.mrb[27].mxu1 }
 0x92e   : > { %1582 = vrot.lane.b32.xlu1 %v5098_v32, %s5502_s27 }
 0x92f   : > { %5103 = vtanh.f32 %v1494_v33  ;;  %v4047_v53 = vmul.f32 -1.442695, %v1494_v33 }
 0x930   : > { %v1471_v10 = vpop.f32.mrb[28].mxu1 }
 0x931   : > { %v5100_v39 = vpop.eup %5099  ;;  %v1495_v28 = vadd.f32 %v1471_v10, %v1331_v34  ;;  %v4456_v16 = vpop.f32.mrb[29].mxu1 }
 0x932   : > { %1584 = vrot.lane.b32.xlu0 %v5100_v39, %s5502_s27 }
 0x933   : > { %5105 = vtanh.f32 %v1495_v28  ;;  %v4048_v50 = vmul.f32 -1.442695, %v1495_v28 }
 0x934   : > { %v1476_v2 = vpop.f32.mrb[30].mxu1 }
 0x935   : > { %v5102_v43 = vpop.eup %5101  ;;  %v1496_v15 = vadd.f32 %v1476_v2, %v1332_v21  ;;  %v4459_v24 = vpop.f32.mrb[31].mxu1 }
 0x936   : > { %1586 = vrot.lane.b32.xlu1 %v5102_v43, %s5502_s27 }
 0x937   : > { %5107 = vtanh.f32 %v1496_v15  ;;  %v4049_v61 = vmul.f32 -1.442695, %v1496_v15 }
 0x938   : > { %v1481_v9 = vpop.f32.mrb[32].mxu1 }
 0x939   : > { %v5104_v38 = vpop.eup %5103  ;;  %v1497_v20 = vadd.f32 %v1481_v9, %v1333_v35  ;;  %v4462_v37 = vpop.f32.mrb[33].mxu1 }
 0x93a   : > { %1588 = vrot.lane.b32.xlu0 %v5104_v38, %s5502_s27 }
 0x93b   : > { %5109 = vtanh.f32 %v1497_v20  ;;  %v4050_v56 = vmul.f32 -1.442695, %v1497_v20 }
 0x93c   : > { %v1486_v40 = vpop.f32.mrb[34].mxu1 }
 0x93d   : > { %v5106_v36 = vpop.eup %5105  ;;  %v1498_v26 = vadd.f32 %v1486_v40, %v1334_v29  ;;  %v4465_v42 = vpop.f32.mrb[35].mxu1 }
 0x93e   : > { %1590 = vrot.lane.b32.xlu1 %v5106_v36, %s5502_s27 }
 0x93f   : > { %5111 = vtanh.f32 %v1498_v26  ;;  %v4051_v5 = vmul.f32 -1.442695, %v1498_v26 }
 0x940   : > { %5113 = vpow2.f32 %v4043_v44 }
 0x941   : > { %v5108_v41 = vpop.eup %5107  ;;  %5115 = vpow2.f32 %v4044_v45 }
 0x942   : > { %1592 = vrot.lane.b32.xlu0 %v5108_v41, %s5502_s27  ;;  %5117 = vpow2.f32 %v4045_v46 }
 0x943   : > { %5119 = vpow2.f32 %v4046_v47 }
 0x944   : > { %5121 = vpow2.f32 %v4047_v53 }
 0x945   : > { %v5110_v31 = vpop.eup %5109 }
 0x946   : > { %1594 = vrot.lane.b32.xlu1 %v5110_v31, %s5502_s27 }
 0x949   : > { %v5112_v30 = vpop.eup %5111 }
 0x94a   : > { %1596 = vrot.lane.b32.xlu0 %v5112_v30, %s5502_s27  ;;  %v5114_v48 = vpop.eup %5113 }
 0x94b   : > { %v1526_v57 = vadd.f32 1.0, %v5114_v48  ;;  %v5116_v54 = vpop.eup %5115 }
 0x94c   : > { %v1527_v58 = vadd.f32 1.0, %v5116_v54  ;;  %v5118_v0 = vpop.eup %5117 }
 0x94d   : > { %5123 = vrcp.f32 %v1526_v57  ;;  %v1528_v62 = vadd.f32 1.0, %v5118_v0  ;;  %v5120_v59 = vpop.eup %5119 }
 0x94e   : > { %5125 = vpow2.f32 %v4048_v50  ;;  %v1529_v60 = vadd.f32 1.0, %v5120_v59  ;;  %v5122_v63 = vpop.eup %5121 }
 0x94f   : > { %5127 = vrcp.f32 %v1527_v58  ;;  %v1530_v11 = vadd.f32 1.0, %v5122_v63 }
 0x950   : > { %5129 = vpow2.f32 %v4049_v61 }
 0x951   : > { %5131 = vrcp.f32 %v1528_v62 }
 0x952   : > { %5133 = vpow2.f32 %v4050_v56 }
 0x953   : > { %5135 = vrcp.f32 %v1529_v60 }
 0x954   : > { %5137 = vpow2.f32 %v4051_v5 }
 0x955   : > { %5139 = vrcp.f32 %v1530_v11 }
 0x957   : > { %v6083_v13 = vpop.eup %5123 }
 0x958   : > { %v5126_v25 = vpop.eup %5125  ;;  %v1562_v47 = vmul.f32 %v6083_v13, %v5964_v51 }
 0x959   : > { %v6087_v27 = vpop.eup %5127  ;;  %v1531_v33 = vadd.f32 1.0, %v5126_v25 }
 0x95a   : > { %v5130_v23 = vpop.eup %5129  ;;  %v1563_v57 = vmul.f32 %v6087_v27, %v5969_v49 }
 0x95b   : > { %v6091_v34 = vpop.eup %5131  ;;  %5141 = vrcp.f32 %v1531_v33  ;;  %v1532_v28 = vadd.f32 1.0, %v5130_v23 }
 0x95c   : > { %v5134_v16 = vpop.eup %5133  ;;  %v1564_v58 = vmul.f32 %v6091_v34, %v5974_v55 }
 0x95d   : > { %v6095_v21 = vpop.eup %5135  ;;  %5143 = vrcp.f32 %v1532_v28  ;;  %v1533_v15 = vadd.f32 1.0, %v5134_v16 }
 0x95e   : > { %v5138_v24 = vpop.eup %5137  ;;  %v1565_v51 = vmul.f32 %v6095_v21, %v5979_v52 }
 0x95f   : > { %v6099_v35 = vpop.eup %5139  ;;  %5145 = vrcp.f32 %v1533_v15  ;;  %v1534_v20 = vadd.f32 1.0, %v5138_v24 }
 0x960   : > { %v1566_v49 = vmul.f32 %v6099_v35, %v5985_v8 }
 0x961   : > { %5147 = vrcp.f32 %v1534_v20 }
 0x965   : > { %v6103_v37 = vpop.eup %5141 }
 0x966   : > { %v1567_v52 = vmul.f32 %v6103_v37, %v5991_v14 }
 0x967   : > { %v6107_v36 = vpop.eup %5143 }
 0x968   : > { %v1568_v8 = vmul.f32 %v6107_v36, %v5997_v12 }
 0x969   : > { %v6111_v41 = vpop.eup %5145 }
 0x96a   : > { %v1569_v14 = vmul.f32 %v6111_v41, %v6003_v17 }
 0x96b   : > { %v6115_v44 = vpop.eup %5147 }
 0x96c   : > { %v1570_v12 = vmul.f32 %v6115_v44, %v6009_v22 }
 0x99c   : > { %v1581_v1 = vpop.permute.xlu0 %1580 }
 0x99d   : > { %v1607_v19 = vmul.f32 %v6083_v13, %v1581_v1 }
 0x99f   : > { %1625 = vrot.lane.b32.xlu1 %v1607_v19, %s5503_s28 }
 0x9a0   : > { %v1583_v18 = vpop.permute.xlu1 %1582 }
 0x9a1   : > { %v1608_v32 = vmul.f32 %v6087_v27, %v1583_v18 }
 0x9a3   : > { %1627 = vrot.lane.b32.xlu0 %v1608_v32, %s5503_s28 }
 0x9a4   : > { %v1585_v10 = vpop.permute.xlu0 %1584 }
 0x9a5   : > { %v1609_v39 = vmul.f32 %v6091_v34, %v1585_v10 }
 0x9a7   : > { %1629 = vrot.lane.b32.xlu1 %v1609_v39, %s5503_s28 }
 0x9a8   : > { %v1587_v2 = vpop.permute.xlu1 %1586 }
 0x9a9   : > { %v1610_v43 = vmul.f32 %v6095_v21, %v1587_v2 }
 0x9ab   : > { %1631 = vrot.lane.b32.xlu0 %v1610_v43, %s5503_s28 }
 0x9ac   : > { %v1589_v9 = vpop.permute.xlu0 %1588 }
 0x9ad   : > { %v1611_v38 = vmul.f32 %v6099_v35, %v1589_v9 }
 0x9af   : > { %1633 = vrot.lane.b32.xlu1 %v1611_v38, %s5503_s28 }
 0x9b0   : > { %v1591_v29 = vpop.permute.xlu1 %1590 }
 0x9b1   : > { %v1612_v40 = vmul.f32 %v6103_v37, %v1591_v29 }
 0x9b3   : > { %1635 = vrot.lane.b32.xlu0 %v1612_v40, %s5503_s28 }
 0x9b4   : > { %v1593_v26 = vpop.permute.xlu0 %1592 }
 0x9b5   : > { %v1613_v42 = vmul.f32 %v6107_v36, %v1593_v26 }
 0x9b7   : > { %1637 = vrot.lane.b32.xlu1 %v1613_v42, %s5503_s28 }
 0x9b8   : > { %v1595_v31 = vpop.permute.xlu1 %1594 }
 0x9b9   : > { %v1614_v30 = vmul.f32 %v6111_v41, %v1595_v31 }
 0x9bb   : > { %1639 = vrot.lane.b32.xlu0 %v1614_v30, %s5503_s28 }
 0x9bc   : > { %v1597_v45 = vpop.permute.xlu0 %1596 }
 0x9bd   : > { %v1615_v46 = vmul.f32 %v6115_v44, %v1597_v45 }
 0x9bf   : > { %1641 = vrot.lane.b32.xlu1 %v1615_v46, %s5503_s28 }
 0xa11   : > { %v1626_v48 = vpop.permute.xlu1 %1625 }
 0xa12   : > { %v6121_v53 = vadd.f32 %v1626_v48, %v1562_v47 }
 0xa14   : > { %5149 = vtanh.f32 %v6121_v53 }
 0xa15   : > { %v1628_v54 = vpop.permute.xlu0 %1627 }
 0xa16   : > { %v6126_v50 = vadd.f32 %v1628_v54, %v1563_v57  ;;  %v1715_v54 = vld [vmem:[%s5601_s26 + $0x120] sm:$0xff] }
 0xa18   : > { %5151 = vtanh.f32 %v6126_v50 }
 0xa19   : > { %v1630_v0 = vpop.permute.xlu1 %1629 }
 0xa1a   : > { %v6131_v61 = vadd.f32 %v1630_v0, %v1564_v58 }
 0xa1c   : > { %5153 = vtanh.f32 %v6131_v61 }
 0xa1d   : > { %v1632_v62 = vpop.permute.xlu0 %1631 }
 0xa1e   : > { %v5150_v59 = vpop.eup %5149  ;;  %v6136_v56 = vadd.f32 %v1632_v62, %v1565_v51  ;;  %v1716_v62 = vld [vmem:[%s5601_s26 + $0x128] sm:$0xff] }
 0xa1f   : > { %1679 = vrot.lane.b32.xlu0 %v5150_v59, %s5502_s27 }
 0xa20   : > { %5155 = vtanh.f32 %v6136_v56 }
 0xa21   : > { %v1634_v55 = vpop.permute.xlu1 %1633 }
 0xa22   : > { %v5152_v60 = vpop.eup %5151  ;;  %v6142_v63 = vadd.f32 %v1634_v55, %v1566_v49 }
 0xa23   : > { %1681 = vrot.lane.b32.xlu1 %v5152_v60, %s5502_s27  ;;  %v1717_v60 = vld [vmem:[%s5601_s26 + $0x130] sm:$0xff] }
 0xa24   : > { %5157 = vtanh.f32 %v6142_v63 }
 0xa25   : > { %v1636_v1 = vpop.permute.xlu0 %1635 }
 0xa26   : > { %v5154_v5 = vpop.eup %5153  ;;  %v6148_v19 = vadd.f32 %v1636_v1, %v1567_v52 }
 0xa27   : > { %1683 = vrot.lane.b32.xlu0 %v5154_v5, %s5502_s27 }
 0xa28   : > { %5159 = vtanh.f32 %v6148_v19 }
 0xa29   : > { %v1638_v11 = vpop.permute.xlu1 %1637 }
 0xa2a   : > { %v5156_v25 = vpop.eup %5155  ;;  %v6154_v18 = vadd.f32 %v1638_v11, %v1568_v8  ;;  %v1718_v8 = vld [vmem:[%s5601_s26 + $0x138] sm:$0xff] }
 0xa2b   : > { %1685 = vrot.lane.b32.xlu1 %v5156_v25, %s5502_s27 }
 0xa2c   : > { %5161 = vtanh.f32 %v6154_v18 }
 0xa2d   : > { %v1640_v32 = vpop.permute.xlu0 %1639 }
 0xa2e   : > { %v5158_v33 = vpop.eup %5157  ;;  %v6160_v23 = vadd.f32 %v1640_v32, %v1569_v14 }
 0xa2f   : > { %1687 = vrot.lane.b32.xlu0 %v5158_v33, %s5502_s27  ;;  %v1719_v33 = vld [vmem:[%s5601_s26 + $0x140] sm:$0xff] }
 0xa30   : > { %5163 = vtanh.f32 %v6160_v23 }
 0xa31   : > { %v1642_v10 = vpop.permute.xlu1 %1641 }
 0xa32   : > { %v5160_v39 = vpop.eup %5159  ;;  %v6166_v28 = vadd.f32 %v1642_v10, %v1570_v12 }
 0xa33   : > { %1689 = vrot.lane.b32.xlu1 %v5160_v39, %s5502_s27 }
 0xa34   : > { %5165 = vtanh.f32 %v6166_v28 }
 0xa36   : > { %v5162_v17 = vpop.eup %5161 }
 0xa37   : > { %1691 = vrot.lane.b32.xlu0 %v5162_v17, %s5502_s27 }
 0xa3a   : > { %v5164_v16 = vpop.eup %5163 }
 0xa3b   : > { %1693 = vrot.lane.b32.xlu1 %v5164_v16, %s5502_s27  ;;  %v1720_v16 = vld [vmem:[%s5601_s26 + $0x148] sm:$0xff] }
 0xa3e   : > { %v5166_v2 = vpop.eup %5165 }
 0xa3f   : > { %1695 = vrot.lane.b32.xlu0 %v5166_v2, %s5502_s27 }
 0xa91   : > { %v1680_v43 = vpop.permute.xlu0 %1679 }
 0xa92   : > { %v1706_v22 = vmul.f32 %v6083_v13, %v1680_v43 }
 0xa94   : > { %1733 = vrot.lane.b32.xlu1 %v1706_v22, %s5503_s28 }
 0xa95   : > { %v1682_v15 = vpop.permute.xlu1 %1681 }
 0xa96   : > { %v1707_v24 = vmul.f32 %v6087_v27, %v1682_v15 }
 0xa98   : > { %1735 = vrot.lane.b32.xlu0 %v1707_v24, %s5503_s28  ;;  %v1721_v24 = vld [vmem:[%s5601_s26 + $0x150] sm:$0xff] }
 0xa99   : > { %v1684_v9 = vpop.permute.xlu0 %1683 }
 0xa9a   : > { %v1708_v38 = vmul.f32 %v6091_v34, %v1684_v9 }
 0xa9c   : > { %1737 = vrot.lane.b32.xlu1 %v1708_v38, %s5503_s28 }
 0xa9d   : > { %v1686_v20 = vpop.permute.xlu1 %1685 }
 0xa9e   : > { %v1709_v29 = vmul.f32 %v6095_v21, %v1686_v20 }
 0xaa0   : > { %1739 = vrot.lane.b32.xlu0 %v1709_v29, %s5503_s28 }
 0xaa1   : > { %v1688_v40 = vpop.permute.xlu0 %1687 }
 0xaa2   : > { %v1710_v13 = vmul.f32 %v6099_v35, %v1688_v40  ;;  %v1722_v40 = vld [vmem:[%s5601_s26 + $0x158] sm:$0xff] }
 0xaa4   : > { %1741 = vrot.lane.b32.xlu1 %v1710_v13, %s5503_s28 }
 0xaa5   : > { %v1690_v26 = vpop.permute.xlu1 %1689 }
 0xaa6   : > { %v1711_v27 = vmul.f32 %v6103_v37, %v1690_v26 }
 0xaa8   : > { %1743 = vrot.lane.b32.xlu0 %v1711_v27, %s5503_s28 }
 0xaa9   : > { %v1692_v42 = vpop.permute.xlu0 %1691 }
 0xaaa   : > { %v1712_v34 = vmul.f32 %v6107_v36, %v1692_v42 }
 0xaac   : > { %1745 = vrot.lane.b32.xlu1 %v1712_v34, %s5503_s28  ;;  %v1723_v34 = vld [vmem:[%s5601_s26 + $0x160] sm:$0xff] }
 0xaad   : > { %v1694_v31 = vpop.permute.xlu1 %1693 }
 0xaae   : > { %v1713_v21 = vmul.f32 %v6111_v41, %v1694_v31 }
 0xab0   : > { %1747 = vrot.lane.b32.xlu0 %v1713_v21, %s5503_s28 }
 0xab1   : > { %v1696_v30 = vpop.permute.xlu0 %1695 }
 0xab2   : > { %v1714_v35 = vmul.f32 %v6115_v44, %v1696_v30 }
 0xab4   : > { %1749 = vrot.lane.b32.xlu1 %v1714_v35, %s5503_s28 }
 0xb06   : > { %v1734_v45 = vpop.permute.xlu1 %1733 }
 0xb07   : > { %4475 = vmatmul.mubr.msk.f32.vlgmr.msra.gmra.mrb[36].mxu0 %vm209_vm1, %v1734_v45 }
 0xb08   : > { %4477 = vmatprep.mubr.msk.f32.mxu0 %vm5500_vm0, %v5501_v6  ;;  %4812 = vmatpush3.bf16.msra.mxu0 %v5545_v4 }
 0xb09   : > { %4813 = vmatprep.subr.bf16.mxu0 %v5499_v3 }
 0xb0a   : > { %v1736_v37 = vpop.permute.xlu0 %1735 }
 0xb0b   : > { %4478 = vmatmul.mubr.msk.f32.gmra.mrb[38].mxu0 %vm209_vm1, %v1736_v37 }
 0xb0c   : > { %4480 = vmatprep.mubr.msk.f32.mxu0 %vm5500_vm0, %v5501_v6  ;;  %4815 = vmatpush3.bf16.msra.mxu0 %v5556_v7 }
 0xb0d   : > { %4822 = vmatprep.subr.bf16.mxu0 %v5499_v3 }
 0xb0e   : > { %v1738_v36 = vpop.permute.xlu1 %1737 }
 0xb0f   : > { %4481 = vmatmul.mubr.msk.f32.gmra.mrb[40].mxu0 %vm209_vm1, %v1738_v36 }
 0xb10   : > { %4483 = vmatprep.mubr.msk.f32.mxu0 %vm5500_vm0, %v5501_v6 }
 0xb12   : > { %v1740_v41 = vpop.permute.xlu0 %1739 }
 0xb13   : > { %4484 = vmatmul.mubr.msk.f32.gmra.mrb[42].mxu0 %vm209_vm1, %v1740_v41 }
 0xb14   : > { %4486 = vmatprep.mubr.msk.f32.mxu0 %vm5500_vm0, %v5501_v6 }
 0xb16   : > { %v1742_v44 = vpop.permute.xlu1 %1741 }
 0xb17   : > { %4487 = vmatmul.mubr.msk.f32.gmra.mrb[44].mxu0 %vm209_vm1, %v1742_v44 }
 0xb18   : > { %4489 = vmatprep.mubr.msk.f32.mxu0 %vm5500_vm0, %v5501_v6 }
 0xb1a   : > { %v1744_v46 = vpop.permute.xlu0 %1743 }
 0xb1b   : > { %4490 = vmatmul.mubr.msk.f32.gmra.mrb[46].mxu0 %vm209_vm1, %v1744_v46 }
 0xb1c   : > { %4492 = vmatprep.mubr.msk.f32.mxu0 %vm5500_vm0, %v5501_v6 }
 0xb1e   : > { %v1746_v47 = vpop.permute.xlu1 %1745 }
 0xb1f   : > { %4493 = vmatmul.mubr.msk.f32.gmra.mrb[48].mxu0 %vm209_vm1, %v1746_v47 }
 0xb20   : > { %4495 = vmatprep.mubr.msk.f32.mxu0 %vm5500_vm0, %v5501_v6 }
 0xb22   : > { %v1748_v48 = vpop.permute.xlu0 %1747 }
 0xb23   : > { %4496 = vmatmul.mubr.msk.f32.gmra.mrb[50].mxu0 %vm209_vm1, %v1748_v48 }
 0xb24   : > { %4498 = vmatprep.mubr.msk.f32.mxu0 %vm5500_vm0, %v5501_v6 }
 0xb26   : > { %v1750_v57 = vpop.permute.xlu1 %1749 }
 0xb27   : > { %4499 = vmatmul.mubr.msk.f32.gmra.mrb[52].mxu0 %vm209_vm1, %v1750_v57 }
 0xb28   : > { %4544 = vmatprep.mubr.msk.f32.mxu0 %vm5500_vm0, %v5501_v6 }
 0xbda   : > { %v1835_v58 = vpop.f32.mrb[36].mxu0 }
 0xbdb   : > { %v1879_v0 = vadd.f32 %v1835_v58, %v1715_v54  ;;  %v4476_v51 = vpop.f32.mrb[37].mxu0 }
 0xbdd   : > { %5167 = vtanh.f32 %v1879_v0  ;;  %v4061_v41 = vmul.f32 -1.442695, %v1879_v0 }
 0xbde   : > { %v1840_v59 = vpop.f32.mrb[38].mxu0 }
 0xbdf   : > { %v1880_v49 = vadd.f32 %v1840_v59, %v1716_v62  ;;  %v4479_v55 = vpop.f32.mrb[39].mxu0 }
 0xbe1   : > { %5169 = vtanh.f32 %v1880_v49  ;;  %v4062_v44 = vmul.f32 -1.442695, %v1880_v49 }
 0xbe2   : > { %v1845_v52 = vpop.f32.mrb[40].mxu0 }
 0xbe3   : > { %v1881_v1 = vadd.f32 %v1845_v52, %v1717_v60  ;;  %v4482_v5 = vpop.f32.mrb[41].mxu0 }
 0xbe5   : > { %5171 = vtanh.f32 %v1881_v1  ;;  %v4063_v46 = vmul.f32 -1.442695, %v1881_v1 }
 0xbe6   : > { %v1850_v11 = vpop.f32.mrb[42].mxu0 }
 0xbe7   : > { %v5168_v25 = vpop.eup %5167  ;;  %v1882_v14 = vadd.f32 %v1850_v11, %v1718_v8  ;;  %v4485_v32 = vpop.f32.mrb[43].mxu0 }
 0xbe8   : > { %1969 = vrot.lane.b32.xlu0 %v5168_v25, %s5502_s27 }
 0xbe9   : > { %5173 = vtanh.f32 %v1882_v14  ;;  %v4064_v47 = vmul.f32 -1.442695, %v1882_v14 }
 0xbea   : > { %v1855_v12 = vpop.f32.mrb[44].mxu0 }
 0xbeb   : > { %v5170_v10 = vpop.eup %5169  ;;  %v1883_v39 = vadd.f32 %v1855_v12, %v1719_v33  ;;  %v4488_v17 = vpop.f32.mrb[45].mxu0 }
 0xbec   : > { %1971 = vrot.lane.b32.xlu1 %v5170_v10, %s5502_s27 }
 0xbed   : > { %5175 = vtanh.f32 %v1883_v39  ;;  %v4065_v57 = vmul.f32 -1.442695, %v1883_v39 }
 0xbee   : > { %v1860_v2 = vpop.f32.mrb[46].mxu0 }
 0xbef   : > { %v5172_v43 = vpop.eup %5171  ;;  %v1884_v22 = vadd.f32 %v1860_v2, %v1720_v16  ;;  %v4491_v15 = vpop.f32.mrb[47].mxu0 }
 0xbf0   : > { %1973 = vrot.lane.b32.xlu0 %v5172_v43, %s5502_s27 }
 0xbf1   : > { %5177 = vtanh.f32 %v1884_v22  ;;  %v4066_v51 = vmul.f32 -1.442695, %v1884_v22 }
 0xbf2   : > { %v1865_v9 = vpop.f32.mrb[48].mxu0 }
 0xbf3   : > { %v5174_v38 = vpop.eup %5173  ;;  %v1885_v20 = vadd.f32 %v1865_v9, %v1721_v24  ;;  %v4494_v29 = vpop.f32.mrb[49].mxu0 }
 0xbf4   : > { %1975 = vrot.lane.b32.xlu1 %v5174_v38, %s5502_s27 }
 0xbf5   : > { %5179 = vtanh.f32 %v1885_v20  ;;  %v4067_v55 = vmul.f32 -1.442695, %v1885_v20 }
 0xbf6   : > { %v1870_v13 = vpop.f32.mrb[50].mxu0 }
 0xbf7   : > { %v5176_v26 = vpop.eup %5175  ;;  %v1886_v27 = vadd.f32 %v1870_v13, %v1722_v40  ;;  %v4497_v42 = vpop.f32.mrb[51].mxu0 }
 0xbf8   : > { %1977 = vrot.lane.b32.xlu0 %v5176_v26, %s5502_s27 }
 0xbf9   : > { %5181 = vtanh.f32 %v1886_v27  ;;  %v4068_v49 = vmul.f32 -1.442695, %v1886_v27 }
 0xbfa   : > { %v1875_v31 = vpop.f32.mrb[52].mxu0 }
 0xbfb   : > { %v5178_v21 = vpop.eup %5177  ;;  %v1887_v30 = vadd.f32 %v1875_v31, %v1723_v34  ;;  %v4500_v35 = vpop.f32.mrb[53].mxu0 }
 0xbfc   : > { %1979 = vrot.lane.b32.xlu1 %v5178_v21, %s5502_s27 }
 0xbfd   : > { %5183 = vtanh.f32 %v1887_v30  ;;  %v4069_v11 = vmul.f32 -1.442695, %v1887_v30 }
 0xbfe   : > { %5185 = vpow2.f32 %v4061_v41 }
 0xbff   : > { %v5180_v45 = vpop.eup %5179  ;;  %5187 = vpow2.f32 %v4062_v44 }
 0xc00   : > { %1981 = vrot.lane.b32.xlu0 %v5180_v45, %s5502_s27  ;;  %5189 = vpow2.f32 %v4063_v46 }
 0xc01   : > { %5191 = vpow2.f32 %v4064_v47 }
 0xc02   : > { %5193 = vpow2.f32 %v4065_v57 }
 0xc03   : > { %v5182_v37 = vpop.eup %5181 }
 0xc04   : > { %1983 = vrot.lane.b32.xlu1 %v5182_v37, %s5502_s27 }
 0xc07   : > { %v5184_v36 = vpop.eup %5183 }
 0xc08   : > { %1985 = vrot.lane.b32.xlu0 %v5184_v36, %s5502_s27  ;;  %v5186_v48 = vpop.eup %5185 }
 0xc09   : > { %v1915_v54 = vadd.f32 1.0, %v5186_v48  ;;  %v5188_v58 = vpop.eup %5187 }
 0xc0a   : > { %v1916_v62 = vadd.f32 1.0, %v5188_v58  ;;  %v5190_v59 = vpop.eup %5189 }
 0xc0b   : > { %5195 = vrcp.f32 %v1915_v54  ;;  %v1917_v0 = vadd.f32 1.0, %v5190_v59  ;;  %v5192_v60 = vpop.eup %5191 }
 0xc0c   : > { %5197 = vpow2.f32 %v4066_v51  ;;  %v1918_v52 = vadd.f32 1.0, %v5192_v60  ;;  %v5194_v1 = vpop.eup %5193 }
 0xc0d   : > { %5199 = vrcp.f32 %v1916_v62  ;;  %v1919_v14 = vadd.f32 1.0, %v5194_v1 }
 0xc0e   : > { %5201 = vpow2.f32 %v4067_v55 }
 0xc0f   : > { %5203 = vrcp.f32 %v1917_v0 }
 0xc10   : > { %5205 = vpow2.f32 %v4068_v49 }
 0xc11   : > { %5207 = vrcp.f32 %v1918_v52 }
 0xc12   : > { %5209 = vpow2.f32 %v4069_v11 }
 0xc13   : > { %5211 = vrcp.f32 %v1919_v14 }
 0xc15   : > { %v6240_v5 = vpop.eup %5195 }
 0xc16   : > { %v5198_v32 = vpop.eup %5197  ;;  %v1951_v47 = vmul.f32 %v6240_v5, %v6121_v53 }
 0xc17   : > { %v6244_v33 = vpop.eup %5199  ;;  %v1920_v39 = vadd.f32 1.0, %v5198_v32 }
 0xc18   : > { %v5202_v17 = vpop.eup %5201  ;;  %v1952_v54 = vmul.f32 %v6244_v33, %v6126_v50 }
 0xc19   : > { %v6248_v16 = vpop.eup %5203  ;;  %5213 = vrcp.f32 %v1920_v39  ;;  %v1921_v22 = vadd.f32 1.0, %v5202_v17 }
 0xc1a   : > { %v5206_v15 = vpop.eup %5205  ;;  %v1953_v62 = vmul.f32 %v6248_v16, %v6131_v61 }
 0xc1b   : > { %v6252_v24 = vpop.eup %5207  ;;  %5215 = vrcp.f32 %v1921_v22  ;;  %v1922_v20 = vadd.f32 1.0, %v5206_v15 }
 0xc1c   : > { %v5210_v29 = vpop.eup %5209  ;;  %v1954_v53 = vmul.f32 %v6252_v24, %v6136_v56 }
 0xc1d   : > { %v6256_v40 = vpop.eup %5211  ;;  %5217 = vrcp.f32 %v1922_v20  ;;  %v1923_v27 = vadd.f32 1.0, %v5210_v29 }
 0xc1e   : > { %v1955_v50 = vmul.f32 %v6256_v40, %v6142_v63 }
 0xc1f   : > { %5219 = vrcp.f32 %v1923_v27 }
 0xc23   : > { %v6260_v42 = vpop.eup %5213 }
 0xc24   : > { %v1956_v56 = vmul.f32 %v6260_v42, %v6148_v19 }
 0xc25   : > { %v6264_v21 = vpop.eup %5215 }
 0xc26   : > { %v1957_v63 = vmul.f32 %v6264_v21, %v6154_v18 }
 0xc27   : > { %v6268_v45 = vpop.eup %5217 }
 0xc28   : > { %v1958_v19 = vmul.f32 %v6268_v45, %v6160_v23 }
 0xc29   : > { %v6272_v41 = vpop.eup %5219 }
 0xc2a   : > { %v1959_v18 = vmul.f32 %v6272_v41, %v6166_v28 }
 0xc5a   : > { %v1970_v8 = vpop.permute.xlu0 %1969 }
 0xc5b   : > { %v1996_v25 = vmul.f32 %v6240_v5, %v1970_v8 }
 0xc5d   : > { %2014 = vrot.lane.b32.xlu1 %v1996_v25, %s5503_s28 }
 0xc5e   : > { %v1972_v12 = vpop.permute.xlu1 %1971 }
 0xc5f   : > { %v1997_v10 = vmul.f32 %v6244_v33, %v1972_v12 }
 0xc61   : > { %2016 = vrot.lane.b32.xlu0 %v1997_v10, %s5503_s28 }
 0xc62   : > { %v1974_v2 = vpop.permute.xlu0 %1973 }
 0xc63   : > { %v1998_v43 = vmul.f32 %v6248_v16, %v1974_v2 }
 0xc65   : > { %2018 = vrot.lane.b32.xlu1 %v1998_v43, %s5503_s28 }
 0xc66   : > { %v1976_v9 = vpop.permute.xlu1 %1975 }
 0xc67   : > { %v1999_v38 = vmul.f32 %v6252_v24, %v1976_v9 }
 0xc69   : > { %2020 = vrot.lane.b32.xlu0 %v1999_v38, %s5503_s28 }
 0xc6a   : > { %v1978_v13 = vpop.permute.xlu0 %1977 }
 0xc6b   : > { %v2000_v26 = vmul.f32 %v6256_v40, %v1978_v13 }
 0xc6d   : > { %2022 = vrot.lane.b32.xlu1 %v2000_v26, %s5503_s28 }
 0xc6e   : > { %v1980_v34 = vpop.permute.xlu1 %1979 }
 0xc6f   : > { %v2001_v31 = vmul.f32 %v6260_v42, %v1980_v34 }
 0xc71   : > { %2024 = vrot.lane.b32.xlu0 %v2001_v31, %s5503_s28 }
 0xc72   : > { %v1982_v30 = vpop.permute.xlu0 %1981 }
 0xc73   : > { %v2002_v35 = vmul.f32 %v6264_v21, %v1982_v30 }
 0xc75   : > { %2026 = vrot.lane.b32.xlu1 %v2002_v35, %s5503_s28 }
 0xc76   : > { %v1984_v37 = vpop.permute.xlu1 %1983 }
 0xc77   : > { %v2003_v36 = vmul.f32 %v6268_v45, %v1984_v37 }
 0xc79   : > { %2028 = vrot.lane.b32.xlu0 %v2003_v36, %s5503_s28 }
 0xc7a   : > { %v1986_v44 = vpop.permute.xlu0 %1985 }
 0xc7b   : > { %v2004_v46 = vmul.f32 %v6272_v41, %v1986_v44 }
 0xc7d   : > { %2030 = vrot.lane.b32.xlu1 %v2004_v46, %s5503_s28 }
 0xccf   : > { %v2015_v48 = vpop.permute.xlu1 %2014 }
 0xcd0   : > { %v6278_v57 = vadd.f32 %v2015_v48, %v1951_v47  ;;  %v2104_v48 = vld [vmem:[%s5601_s26 + $0x168] sm:$0xff] }
 0xcd2   : > { %5221 = vtanh.f32 %v6278_v57 }
 0xcd3   : > { %v2017_v58 = vpop.permute.xlu0 %2016 }
 0xcd4   : > { %v6283_v51 = vadd.f32 %v2017_v58, %v1952_v54 }
 0xcd6   : > { %5223 = vtanh.f32 %v6283_v51 }
 0xcd7   : > { %v2019_v59 = vpop.permute.xlu1 %2018 }
 0xcd8   : > { %v6288_v55 = vadd.f32 %v2019_v59, %v1953_v62  ;;  %v2105_v59 = vld [vmem:[%s5601_s26 + $0x170] sm:$0xff] }
 0xcda   : > { %5225 = vtanh.f32 %v6288_v55 }
 0xcdb   : > { %v2021_v0 = vpop.permute.xlu0 %2020 }
 0xcdc   : > { %v5222_v60 = vpop.eup %5221  ;;  %v6293_v49 = vadd.f32 %v2021_v0, %v1954_v53 }
 0xcdd   : > { %2068 = vrot.lane.b32.xlu0 %v5222_v60, %s5502_s27 }
 0xcde   : > { %5227 = vtanh.f32 %v6293_v49 }
 0xcdf   : > { %v2023_v61 = vpop.permute.xlu1 %2022 }
 0xce0   : > { %v5224_v52 = vpop.eup %5223  ;;  %v6299_v1 = vadd.f32 %v2023_v61, %v1955_v50  ;;  %v2106_v50 = vld [vmem:[%s5601_s26 + $0x178] sm:$0xff] }
 0xce1   : > { %2070 = vrot.lane.b32.xlu1 %v5224_v52, %s5502_s27 }
 0xce2   : > { %5229 = vtanh.f32 %v6299_v1 }
 0xce3   : > { %v2025_v8 = vpop.permute.xlu0 %2024 }
 0xce4   : > { %v5226_v11 = vpop.eup %5225  ;;  %v6305_v25 = vadd.f32 %v2025_v8, %v1956_v56  ;;  %v2107_v8 = vld [vmem:[%s5601_s26 + $0x180] sm:$0xff] }
 0xce5   : > { %2072 = vrot.lane.b32.xlu0 %v5226_v11, %s5502_s27 }
 0xce6   : > { %5231 = vtanh.f32 %v6305_v25 }
 0xce7   : > { %v2027_v14 = vpop.permute.xlu1 %2026 }
 0xce8   : > { %v5228_v32 = vpop.eup %5227  ;;  %v6311_v12 = vadd.f32 %v2027_v14, %v1957_v63 }
 0xce9   : > { %2074 = vrot.lane.b32.xlu1 %v5228_v32, %s5502_s27 }
 0xcea   : > { %5233 = vtanh.f32 %v6311_v12 }
 0xceb   : > { %v2029_v10 = vpop.permute.xlu0 %2028 }
 0xcec   : > { %v5230_v39 = vpop.eup %5229  ;;  %v6317_v17 = vadd.f32 %v2029_v10, %v1958_v19  ;;  %v2108_v19 = vld [vmem:[%s5601_s26 + $0x188] sm:$0xff] }
 0xced   : > { %2076 = vrot.lane.b32.xlu0 %v5230_v39, %s5502_s27 }
 0xcee   : > { %5235 = vtanh.f32 %v6317_v17 }
 0xcef   : > { %v2031_v2 = vpop.permute.xlu1 %2030 }
 0xcf0   : > { %v5232_v43 = vpop.eup %5231  ;;  %v6323_v22 = vadd.f32 %v2031_v2, %v1959_v18 }
 0xcf1   : > { %2078 = vrot.lane.b32.xlu1 %v5232_v43, %s5502_s27  ;;  %v2109_v43 = vld [vmem:[%s5601_s26 + $0x190] sm:$0xff] }
 0xcf2   : > { %5237 = vtanh.f32 %v6323_v22 }
 0xcf4   : > { %v5234_v23 = vpop.eup %5233 }
 0xcf5   : > { %2080 = vrot.lane.b32.xlu0 %v5234_v23, %s5502_s27 }
 0xcf8   : > { %v5236_v15 = vpop.eup %5235 }
 0xcf9   : > { %2082 = vrot.lane.b32.xlu1 %v5236_v15, %s5502_s27 }
 0xcfc   : > { %v5238_v9 = vpop.eup %5237 }
 0xcfd   : > { %2084 = vrot.lane.b32.xlu0 %v5238_v9, %s5502_s27 }
 0xd4f   : > { %v2069_v38 = vpop.permute.xlu0 %2068 }
 0xd50   : > { %v2095_v28 = vmul.f32 %v6240_v5, %v2069_v38 }
 0xd52   : > { %2122 = vrot.lane.b32.xlu1 %v2095_v28, %s5503_s28  ;;  %v2110_v28 = vld [vmem:[%s5601_s26 + $0x198] sm:$0xff] }
 0xd53   : > { %v2071_v20 = vpop.permute.xlu1 %2070 }
 0xd54   : > { %v2096_v29 = vmul.f32 %v6244_v33, %v2071_v20 }
 0xd56   : > { %2124 = vrot.lane.b32.xlu0 %v2096_v29, %s5503_s28 }
 0xd57   : > { %v2073_v13 = vpop.permute.xlu0 %2072 }
 0xd58   : > { %v2097_v26 = vmul.f32 %v6248_v16, %v2073_v13 }
 0xd5a   : > { %2126 = vrot.lane.b32.xlu1 %v2097_v26, %s5503_s28 }
 0xd5b   : > { %v2075_v27 = vpop.permute.xlu1 %2074 }
 0xd5c   : > { %v2098_v34 = vmul.f32 %v6252_v24, %v2075_v27  ;;  %v2111_v27 = vld [vmem:[%s5601_s26 + $0x1a0] sm:$0xff] }
 0xd5e   : > { %2128 = vrot.lane.b32.xlu0 %v2098_v34, %s5503_s28 }
 0xd5f   : > { %v2077_v31 = vpop.permute.xlu0 %2076 }
 0xd60   : > { %v2099_v5 = vmul.f32 %v6256_v40, %v2077_v31 }
 0xd62   : > { %2130 = vrot.lane.b32.xlu1 %v2099_v5, %s5503_s28 }
 0xd63   : > { %v2079_v30 = vpop.permute.xlu1 %2078 }
 0xd64   : > { %v2100_v33 = vmul.f32 %v6260_v42, %v2079_v30 }
 0xd66   : > { %2132 = vrot.lane.b32.xlu0 %v2100_v33, %s5503_s28  ;;  %v2112_v33 = vld [vmem:[%s5601_s26 + $0x1a8] sm:$0xff] }
 0xd67   : > { %v2081_v35 = vpop.permute.xlu0 %2080 }
 0xd68   : > { %v2101_v16 = vmul.f32 %v6264_v21, %v2081_v35 }
 0xd6a   : > { %2134 = vrot.lane.b32.xlu1 %v2101_v16, %s5503_s28 }
 0xd6b   : > { %v2083_v37 = vpop.permute.xlu1 %2082 }
 0xd6c   : > { %v2102_v24 = vmul.f32 %v6268_v45, %v2083_v37 }
 0xd6e   : > { %2136 = vrot.lane.b32.xlu0 %v2102_v24, %s5503_s28 }
 0xd6f   : > { %v2085_v36 = vpop.permute.xlu0 %2084 }
 0xd70   : > { %v2103_v40 = vmul.f32 %v6272_v41, %v2085_v36 }
 0xd72   : > { %2138 = vrot.lane.b32.xlu1 %v2103_v40, %s5503_s28 }
 0xdc4   : > { %v2123_v44 = vpop.permute.xlu1 %2122 }
 0xdc5   : > { %4510 = vmatmul.mubr.msk.f32.vlgmr.msra.gmra.mrb[36].mxu1 %vm209_vm1, %v2123_v44 }
 0xdc6   : > { %4512 = vmatprep.mubr.msk.f32.mxu1 %vm5500_vm0, %v5501_v6  ;;  %4818 = vmatpush3.bf16.msra.mxu1 %v5545_v4 }
 0xdc7   : > { %4819 = vmatprep.subr.bf16.mxu1 %v5499_v3 }
 0xdc8   : > { %v2125_v42 = vpop.permute.xlu0 %2124 }
 0xdc9   : > { %4513 = vmatmul.mubr.msk.f32.gmra.mrb[38].mxu1 %vm209_vm1, %v2125_v42 }
 0xdca   : > { %4515 = vmatprep.mubr.msk.f32.mxu1 %vm5500_vm0, %v5501_v6  ;;  %4821 = vmatpush3.bf16.msra.mxu1 %v5556_v7 }
 0xdcb   : > { %4828 = vmatprep.subr.bf16.mxu1 %v5499_v3 }
 0xdcc   : > { %v2127_v21 = vpop.permute.xlu1 %2126 }
 0xdcd   : > { %4516 = vmatmul.mubr.msk.f32.gmra.mrb[40].mxu1 %vm209_vm1, %v2127_v21 }
 0xdce   : > { %4518 = vmatprep.mubr.msk.f32.mxu1 %vm5500_vm0, %v5501_v6 }
 0xdd0   : > { %v2129_v45 = vpop.permute.xlu0 %2128 }
 0xdd1   : > { %4519 = vmatmul.mubr.msk.f32.gmra.mrb[42].mxu1 %vm209_vm1, %v2129_v45 }
 0xdd2   : > { %4521 = vmatprep.mubr.msk.f32.mxu1 %vm5500_vm0, %v5501_v6 }
 0xdd4   : > { %v2131_v4 = vpop.permute.xlu1 %2130 }
 0xdd5   : > { %4522 = vmatmul.mubr.msk.f32.gmra.mrb[44].mxu1 %vm209_vm1, %v2131_v4 }
 0xdd6   : > { %4524 = vmatprep.mubr.msk.f32.mxu1 %vm5500_vm0, %v5501_v6 }
 0xdd8   : > { %v2133_v7 = vpop.permute.xlu0 %2132 }
 0xdd9   : > { %4525 = vmatmul.mubr.msk.f32.gmra.mrb[46].mxu1 %vm209_vm1, %v2133_v7 }
 0xdda   : > { %4527 = vmatprep.mubr.msk.f32.mxu1 %vm5500_vm0, %v5501_v6 }
 0xddc   : > { %v2135_v41 = vpop.permute.xlu1 %2134 }
 0xddd   : > { %4528 = vmatmul.mubr.msk.f32.gmra.mrb[48].mxu1 %vm209_vm1, %v2135_v41 }
 0xdde   : > { %4530 = vmatprep.mubr.msk.f32.mxu1 %vm5500_vm0, %v5501_v6 }
 0xde0   : > { %v2137_v46 = vpop.permute.xlu0 %2136 }
 0xde1   : > { %4531 = vmatmul.mubr.msk.f32.gmra.mrb[50].mxu1 %vm209_vm1, %v2137_v46 }
 0xde2   : > { %4533 = vmatprep.mubr.msk.f32.mxu1 %vm5500_vm0, %v5501_v6 }
 0xde4   : > { %v2139_v47 = vpop.permute.xlu1 %2138 }
 0xde5   : > { %4534 = vmatmul.mubr.msk.f32.gmra.mrb[52].mxu1 %vm209_vm1, %v2139_v47 }
 0xde6   : > { %4579 = vmatprep.mubr.msk.f32.mxu1 %vm5500_vm0, %v5501_v6 }
 0xe98   : > { %v2224_v54 = vpop.f32.mrb[36].mxu1 }
 0xe99   : > { %v2268_v58 = vadd.f32 %v2224_v54, %v2104_v48  ;;  %v4511_v62 = vpop.f32.mrb[37].mxu1 }
 0xe9b   : > { %5239 = vtanh.f32 %v2268_v58  ;;  %v4079_v42 = vmul.f32 -1.442695, %v2268_v58 }
 0xe9c   : > { %v2229_v53 = vpop.f32.mrb[38].mxu1 }
 0xe9d   : > { %v2269_v0 = vadd.f32 %v2229_v53, %v2105_v59  ;;  %v4514_v60 = vpop.f32.mrb[39].mxu1 }
 0xe9f   : > { %5241 = vtanh.f32 %v2269_v0  ;;  %v4080_v21 = vmul.f32 -1.442695, %v2269_v0 }
 0xea0   : > { %v2234_v61 = vpop.f32.mrb[40].mxu1 }
 0xea1   : > { %v2270_v52 = vadd.f32 %v2234_v61, %v2106_v50  ;;  %v4517_v56 = vpop.f32.mrb[41].mxu1 }
 0xea3   : > { %5243 = vtanh.f32 %v2270_v52  ;;  %v4081_v45 = vmul.f32 -1.442695, %v2270_v52 }
 0xea4   : > { %v2239_v11 = vpop.f32.mrb[42].mxu1 }
 0xea5   : > { %v5240_v63 = vpop.eup %5239  ;;  %v2271_v14 = vadd.f32 %v2239_v11, %v2107_v8  ;;  %v4520_v32 = vpop.f32.mrb[43].mxu1 }
 0xea6   : > { %2358 = vrot.lane.b32.xlu0 %v5240_v63, %s5502_s27 }
 0xea7   : > { %5245 = vtanh.f32 %v2271_v14  ;;  %v4082_v4 = vmul.f32 -1.442695, %v2271_v14 }
 0xea8   : > { %v2244_v10 = vpop.f32.mrb[44].mxu1 }
 0xea9   : > { %v5242_v39 = vpop.eup %5241  ;;  %v2272_v18 = vadd.f32 %v2244_v10, %v2108_v19  ;;  %v4523_v2 = vpop.f32.mrb[45].mxu1 }
 0xeaa   : > { %2360 = vrot.lane.b32.xlu1 %v5242_v39, %s5502_s27 }
 0xeab   : > { %5247 = vtanh.f32 %v2272_v18  ;;  %v4083_v41 = vmul.f32 -1.442695, %v2272_v18 }
 0xeac   : > { %v2249_v23 = vpop.f32.mrb[46].mxu1 }
 0xead   : > { %v5244_v15 = vpop.eup %5243  ;;  %v2273_v9 = vadd.f32 %v2249_v23, %v2109_v43  ;;  %v4526_v38 = vpop.f32.mrb[47].mxu1 }
 0xeae   : > { %2362 = vrot.lane.b32.xlu0 %v5244_v15, %s5502_s27 }
 0xeaf   : > { %5249 = vtanh.f32 %v2273_v9  ;;  %v4084_v48 = vmul.f32 -1.442695, %v2273_v9 }
 0xeb0   : > { %v2254_v20 = vpop.f32.mrb[48].mxu1 }
 0xeb1   : > { %v5246_v29 = vpop.eup %5245  ;;  %v2274_v13 = vadd.f32 %v2254_v20, %v2110_v28  ;;  %v4529_v26 = vpop.f32.mrb[49].mxu1 }
 0xeb2   : > { %2364 = vrot.lane.b32.xlu1 %v5246_v29, %s5502_s27 }
 0xeb3   : > { %5251 = vtanh.f32 %v2274_v13  ;;  %v4085_v59 = vmul.f32 -1.442695, %v2274_v13 }
 0xeb4   : > { %v2259_v34 = vpop.f32.mrb[50].mxu1 }
 0xeb5   : > { %v5248_v31 = vpop.eup %5247  ;;  %v2275_v5 = vadd.f32 %v2259_v34, %v2111_v27  ;;  %v4532_v30 = vpop.f32.mrb[51].mxu1 }
 0xeb6   : > { %2366 = vrot.lane.b32.xlu0 %v5248_v31, %s5502_s27 }
 0xeb7   : > { %5253 = vtanh.f32 %v2275_v5  ;;  %v4086_v0 = vmul.f32 -1.442695, %v2275_v5 }
 0xeb8   : > { %v2264_v35 = vpop.f32.mrb[52].mxu1 }
 0xeb9   : > { %v5250_v16 = vpop.eup %5249  ;;  %v2276_v37 = vadd.f32 %v2264_v35, %v2112_v33  ;;  %v4535_v24 = vpop.f32.mrb[53].mxu1 }
 0xeba   : > { %2368 = vrot.lane.b32.xlu1 %v5250_v16, %s5502_s27 }
 0xebb   : > { %5255 = vtanh.f32 %v2276_v37  ;;  %v4087_v56 = vmul.f32 -1.442695, %v2276_v37 }
 0xebc   : > { %5257 = vpow2.f32 %v4079_v42 }
 0xebd   : > { %v5252_v36 = vpop.eup %5251  ;;  %5259 = vpow2.f32 %v4080_v21 }
 0xebe   : > { %2370 = vrot.lane.b32.xlu0 %v5252_v36, %s5502_s27  ;;  %5261 = vpow2.f32 %v4081_v45 }
 0xebf   : > { %5263 = vpow2.f32 %v4082_v4 }
 0xec0   : > { %5265 = vpow2.f32 %v4083_v41 }
 0xec1   : > { %v5254_v40 = vpop.eup %5253 }
 0xec2   : > { %2372 = vrot.lane.b32.xlu1 %v5254_v40, %s5502_s27 }
 0xec5   : > { %v5256_v44 = vpop.eup %5255 }
 0xec6   : > { %2374 = vrot.lane.b32.xlu0 %v5256_v44, %s5502_s27  ;;  %v5258_v7 = vpop.eup %5257 }
 0xec7   : > { %v2304_v46 = vadd.f32 1.0, %v5258_v7  ;;  %v5260_v47 = vpop.eup %5259 }
 0xec8   : > { %v2305_v54 = vadd.f32 1.0, %v5260_v47  ;;  %v5262_v62 = vpop.eup %5261 }
 0xec9   : > { %5267 = vrcp.f32 %v2304_v46  ;;  %v2306_v58 = vadd.f32 1.0, %v5262_v62  ;;  %v5264_v53 = vpop.eup %5263 }
 0xeca   : > { %5269 = vpow2.f32 %v4084_v48  ;;  %v2307_v60 = vadd.f32 1.0, %v5264_v53  ;;  %v5266_v50 = vpop.eup %5265 }
 0xecb   : > { %5271 = vrcp.f32 %v2305_v54  ;;  %v2308_v11 = vadd.f32 1.0, %v5266_v50 }
 0xecc   : > { %5273 = vpow2.f32 %v4085_v59 }
 0xecd   : > { %5275 = vrcp.f32 %v2306_v58 }
 0xece   : > { %5277 = vpow2.f32 %v4086_v0 }
 0xecf   : > { %5279 = vrcp.f32 %v2307_v60 }
 0xed0   : > { %5281 = vpow2.f32 %v4087_v56 }
 0xed1   : > { %5283 = vrcp.f32 %v2308_v11 }
 0xed3   : > { %v6397_v61 = vpop.eup %5267 }
 0xed4   : > { %v5270_v63 = vpop.eup %5269  ;;  %v2340_v21 = vmul.f32 %v6397_v61, %v6278_v57 }
 0xed5   : > { %v6401_v14 = vpop.eup %5271  ;;  %v2309_v10 = vadd.f32 1.0, %v5270_v63 }
 0xed6   : > { %v5274_v39 = vpop.eup %5273  ;;  %v2341_v7 = vmul.f32 %v6401_v14, %v6283_v51 }
 0xed7   : > { %v6405_v18 = vpop.eup %5275  ;;  %5285 = vrcp.f32 %v2309_v10  ;;  %v2310_v23 = vadd.f32 1.0, %v5274_v39 }
 0xed8   : > { %v5278_v15 = vpop.eup %5277  ;;  %v2342_v47 = vmul.f32 %v6405_v18, %v6288_v55 }
 0xed9   : > { %v6409_v9 = vpop.eup %5279  ;;  %5287 = vrcp.f32 %v2310_v23  ;;  %v2311_v20 = vadd.f32 1.0, %v5278_v15 }
 0xeda   : > { %v5282_v29 = vpop.eup %5281  ;;  %v2343_v57 = vmul.f32 %v6409_v9, %v6293_v49 }
 0xedb   : > { %v6413_v13 = vpop.eup %5283  ;;  %5289 = vrcp.f32 %v2311_v20  ;;  %v2312_v34 = vadd.f32 1.0, %v5282_v29 }
 0xedc   : > { %v2344_v51 = vmul.f32 %v6413_v13, %v6299_v1 }
 0xedd   : > { %5291 = vrcp.f32 %v2312_v34 }
 0xee1   : > { %v6417_v31 = vpop.eup %5285 }
 0xee2   : > { %v2345_v49 = vmul.f32 %v6417_v31, %v6305_v25 }
 0xee3   : > { %v6421_v33 = vpop.eup %5287 }
 0xee4   : > { %v2346_v1 = vmul.f32 %v6421_v33, %v6311_v12 }
 0xee5   : > { %v6425_v37 = vpop.eup %5289 }
 0xee6   : > { %v2347_v25 = vmul.f32 %v6425_v37, %v6317_v17 }
 0xee7   : > { %v6429_v40 = vpop.eup %5291 }
 0xee8   : > { %v2348_v12 = vmul.f32 %v6429_v40, %v6323_v22 }
 0xf18   : > { %v2359_v52 = vpop.permute.xlu0 %2358 }
 0xf19   : > { %v2385_v8 = vmul.f32 %v6397_v61, %v2359_v52 }
 0xf1b   : > { %2403 = vrot.lane.b32.xlu1 %v2385_v8, %s5503_s28 }
 0xf1c   : > { %v2361_v32 = vpop.permute.xlu1 %2360 }
 0xf1d   : > { %v2386_v19 = vmul.f32 %v6401_v14, %v2361_v32 }
 0xf1f   : > { %2405 = vrot.lane.b32.xlu0 %v2386_v19, %s5503_s28 }
 0xf20   : > { %v2363_v2 = vpop.permute.xlu0 %2362 }
 0xf21   : > { %v2387_v43 = vmul.f32 %v6405_v18, %v2363_v2 }
 0xf23   : > { %2407 = vrot.lane.b32.xlu1 %v2387_v43, %s5503_s28 }
 0xf24   : > { %v2365_v38 = vpop.permute.xlu1 %2364 }
 0xf25   : > { %v2388_v28 = vmul.f32 %v6409_v9, %v2365_v38 }
 0xf27   : > { %2409 = vrot.lane.b32.xlu0 %v2388_v28, %s5503_s28 }
 0xf28   : > { %v2367_v26 = vpop.permute.xlu0 %2366 }
 0xf29   : > { %v2389_v27 = vmul.f32 %v6413_v13, %v2367_v26 }
 0xf2b   : > { %2411 = vrot.lane.b32.xlu1 %v2389_v27, %s5503_s28 }
 0xf2c   : > { %v2369_v5 = vpop.permute.xlu1 %2368 }
 0xf2d   : > { %v2390_v30 = vmul.f32 %v6417_v31, %v2369_v5 }
 0xf2f   : > { %2413 = vrot.lane.b32.xlu0 %v2390_v30, %s5503_s28 }
 0xf30   : > { %v2371_v35 = vpop.permute.xlu0 %2370 }
 0xf31   : > { %v2391_v16 = vmul.f32 %v6421_v33, %v2371_v35 }
 0xf33   : > { %2415 = vrot.lane.b32.xlu1 %v2391_v16, %s5503_s28 }
 0xf34   : > { %v2373_v24 = vpop.permute.xlu1 %2372 }
 0xf35   : > { %v2392_v36 = vmul.f32 %v6425_v37, %v2373_v24 }
 0xf37   : > { %2417 = vrot.lane.b32.xlu0 %v2392_v36, %s5503_s28 }
 0xf38   : > { %v2375_v44 = vpop.permute.xlu0 %2374 }
 0xf39   : > { %v2393_v42 = vmul.f32 %v6429_v40, %v2375_v44 }
 0xf3b   : > { %2419 = vrot.lane.b32.xlu1 %v2393_v42, %s5503_s28 }
 0xf8d   : > { %v2404_v45 = vpop.permute.xlu1 %2403 }
 0xf8e   : > { %v6435_v4 = vadd.f32 %v2404_v45, %v2340_v21  ;;  %v2493_v45 = vld [vmem:[%s5601_s26 + $0x1b0] sm:$0xff] }
 0xf90   : > { %5293 = vtanh.f32 %v6435_v4 }
 0xf91   : > { %v2406_v41 = vpop.permute.xlu0 %2405 }
 0xf92   : > { %v6440_v46 = vadd.f32 %v2406_v41, %v2341_v7 }
 0xf94   : > { %5295 = vtanh.f32 %v6440_v46 }
 0xf95   : > { %v2408_v48 = vpop.permute.xlu1 %2407 }
 0xf96   : > { %v6445_v54 = vadd.f32 %v2408_v48, %v2342_v47  ;;  %v2494_v48 = vld [vmem:[%s5601_s26 + $0x1b8] sm:$0xff] }
 0xf98   : > { %5297 = vtanh.f32 %v6445_v54 }
 0xf99   : > { %v2410_v62 = vpop.permute.xlu0 %2409 }
 0xf9a   : > { %v5294_v59 = vpop.eup %5293  ;;  %v6450_v58 = vadd.f32 %v2410_v62, %v2343_v57 }
 0xf9b   : > { %2457 = vrot.lane.b32.xlu0 %v5294_v59, %s5502_s27 }
 0xf9c   : > { %5299 = vtanh.f32 %v6450_v58 }
 0xf9d   : > { %v2412_v55 = vpop.permute.xlu1 %2411 }
 0xf9e   : > { %v5296_v53 = vpop.eup %5295  ;;  %v6456_v0 = vadd.f32 %v2412_v55, %v2344_v51  ;;  %v2495_v51 = vld [vmem:[%s5601_s26 + $0x1c0] sm:$0xff] }
 0xf9f   : > { %2459 = vrot.lane.b32.xlu1 %v5296_v53, %s5502_s27 }
 0xfa0   : > { %5301 = vtanh.f32 %v6456_v0 }
 0xfa1   : > { %v2414_v60 = vpop.permute.xlu0 %2413 }
 0xfa2   : > { %v5298_v50 = vpop.eup %5297  ;;  %v6462_v52 = vadd.f32 %v2414_v60, %v2345_v49  ;;  %v2496_v60 = vld [vmem:[%s5601_s26 + $0x1c8] sm:$0xff] }
 0xfa3   : > { %2461 = vrot.lane.b32.xlu0 %v5298_v50, %s5502_s27 }
 0xfa4   : > { %5303 = vtanh.f32 %v6462_v52 }
 0xfa5   : > { %v2416_v56 = vpop.permute.xlu1 %2415 }
 0xfa6   : > { %v5300_v8 = vpop.eup %5299  ;;  %v6468_v11 = vadd.f32 %v2416_v56, %v2346_v1 }
 0xfa7   : > { %2463 = vrot.lane.b32.xlu1 %v5300_v8, %s5502_s27 }
 0xfa8   : > { %5305 = vtanh.f32 %v6468_v11 }
 0xfa9   : > { %v2418_v63 = vpop.permute.xlu0 %2417 }
 0xfaa   : > { %v5302_v32 = vpop.eup %5301  ;;  %v6474_v19 = vadd.f32 %v2418_v63, %v2347_v25  ;;  %v2497_v25 = vld [vmem:[%s5601_s26 + $0x1d0] sm:$0xff] }
 0xfab   : > { %2465 = vrot.lane.b32.xlu0 %v5302_v32, %s5502_s27 }
 0xfac   : > { %5307 = vtanh.f32 %v6474_v19 }
 0xfad   : > { %v2420_v10 = vpop.permute.xlu1 %2419 }
 0xfae   : > { %v5304_v39 = vpop.eup %5303  ;;  %v6480_v2 = vadd.f32 %v2420_v10, %v2348_v12 }
 0xfaf   : > { %2467 = vrot.lane.b32.xlu1 %v5304_v39, %s5502_s27  ;;  %v2498_v39 = vld [vmem:[%s5601_s26 + $0x1d8] sm:$0xff] }
 0xfb0   : > { %5309 = vtanh.f32 %v6480_v2 }
 0xfb2   : > { %v5306_v17 = vpop.eup %5305 }
 0xfb3   : > { %2469 = vrot.lane.b32.xlu0 %v5306_v17, %s5502_s27 }
 0xfb6   : > { %v5308_v43 = vpop.eup %5307 }
 0xfb7   : > { %2471 = vrot.lane.b32.xlu1 %v5308_v43, %s5502_s27 }
 0xfba   : > { %v5310_v23 = vpop.eup %5309 }
 0xfbb   : > { %2473 = vrot.lane.b32.xlu0 %v5310_v23, %s5502_s27 }
0x100d   : > { %v2458_v15 = vpop.permute.xlu0 %2457 }
0x100e   : > { %v2484_v22 = vmul.f32 %v6397_v61, %v2458_v15 }
0x1010   : > { %2511 = vrot.lane.b32.xlu1 %v2484_v22, %s5503_s28  ;;  %v2499_v22 = vld [vmem:[%s5601_s26 + $0x1e0] sm:$0xff] }
0x1011   : > { %v2460_v38 = vpop.permute.xlu1 %2459 }
0x1012   : > { %v2485_v28 = vmul.f32 %v6401_v14, %v2460_v38 }
0x1014   : > { %2513 = vrot.lane.b32.xlu0 %v2485_v28, %s5503_s28 }
0x1015   : > { %v2462_v20 = vpop.permute.xlu0 %2461 }
0x1016   : > { %v2486_v29 = vmul.f32 %v6405_v18, %v2462_v20 }
0x1018   : > { %2515 = vrot.lane.b32.xlu1 %v2486_v29, %s5503_s28 }
0x1019   : > { %v2464_v26 = vpop.permute.xlu1 %2463 }
0x101a   : > { %v2487_v27 = vmul.f32 %v6409_v9, %v2464_v26  ;;  %v2500_v26 = vld [vmem:[%s5601_s26 + $0x1e8] sm:$0xff] }
0x101c   : > { %2517 = vrot.lane.b32.xlu0 %v2487_v27, %s5503_s28 }
0x101d   : > { %v2466_v34 = vpop.permute.xlu0 %2465 }
0x101e   : > { %v2488_v61 = vmul.f32 %v6413_v13, %v2466_v34 }
0x1020   : > { %2519 = vrot.lane.b32.xlu1 %v2488_v61, %s5503_s28 }
0x1021   : > { %v2468_v5 = vpop.permute.xlu1 %2467 }
0x1022   : > { %v2489_v14 = vmul.f32 %v6417_v31, %v2468_v5 }
0x1024   : > { %2521 = vrot.lane.b32.xlu0 %v2489_v14, %s5503_s28  ;;  %v2501_v14 = vld [vmem:[%s5601_s26 + $0x1f0] sm:$0xff] }
0x1025   : > { %v2470_v30 = vpop.permute.xlu0 %2469 }
0x1026   : > { %v2490_v18 = vmul.f32 %v6421_v33, %v2470_v30 }
0x1028   : > { %2523 = vrot.lane.b32.xlu1 %v2490_v18, %s5503_s28 }
0x1029   : > { %v2472_v35 = vpop.permute.xlu1 %2471 }
0x102a   : > { %v2491_v9 = vmul.f32 %v6425_v37, %v2472_v35 }
0x102c   : > { %2525 = vrot.lane.b32.xlu0 %v2491_v9, %s5503_s28 }
0x102d   : > { %v2474_v16 = vpop.permute.xlu0 %2473 }
0x102e   : > { %v2492_v13 = vmul.f32 %v6429_v40, %v2474_v16 }
0x1030   : > { %2527 = vrot.lane.b32.xlu1 %v2492_v13, %s5503_s28 }
0x1082   : > { %v2512_v24 = vpop.permute.xlu1 %2511 }
0x1083   : > { %4545 = vmatmul.mubr.msk.f32.vlgmr.msra.gmra.mrb[54].mxu0 %vm209_vm1, %v2512_v24 }
0x1084   : > { %4547 = vmatprep.mubr.msk.f32.mxu0 %vm5500_vm0, %v5501_v6 }
0x1086   : > { %v2514_v31 = vpop.permute.xlu0 %2513 }
0x1087   : > { %4548 = vmatmul.mubr.msk.f32.gmra.mrb[56].mxu0 %vm209_vm1, %v2514_v31 }
0x1088   : > { %4550 = vmatprep.mubr.msk.f32.mxu0 %vm5500_vm0, %v5501_v6 }
0x108a   : > { %v2516_v33 = vpop.permute.xlu1 %2515 }
0x108b   : > { %4551 = vmatmul.mubr.msk.f32.gmra.mrb[58].mxu0 %vm209_vm1, %v2516_v33 }
0x108c   : > { %4553 = vmatprep.mubr.msk.f32.mxu0 %vm5500_vm0, %v5501_v6 }
0x108e   : > { %v2518_v37 = vpop.permute.xlu0 %2517 }
0x108f   : > { %4554 = vmatmul.mubr.msk.f32.gmra.mrb[60].mxu0 %vm209_vm1, %v2518_v37 }
0x1090   : > { %4556 = vmatprep.mubr.msk.f32.mxu0 %vm5500_vm0, %v5501_v6 }
0x1092   : > { %v2520_v36 = vpop.permute.xlu1 %2519 }
0x1093   : > { %4557 = vmatmul.mubr.msk.f32.gmra.mrb[62].mxu0 %vm209_vm1, %v2520_v36 }
0x1094   : > { %4559 = vmatprep.mubr.msk.f32.mxu0 %vm5500_vm0, %v5501_v6 }
0x1096   : > { %v2522_v40 = vpop.permute.xlu0 %2521 }
0x1097   : > { %4560 = vmatmul.mubr.msk.f32.gmra.mrb[64].mxu0 %vm209_vm1, %v2522_v40 }
0x1098   : > { %4562 = vmatprep.mubr.msk.f32.mxu0 %vm5500_vm0, %v5501_v6 }
0x109a   : > { %v2524_v44 = vpop.permute.xlu1 %2523 }
0x109b   : > { %4563 = vmatmul.mubr.msk.f32.gmra.mrb[66].mxu0 %vm209_vm1, %v2524_v44 }
0x109c   : > { %4565 = vmatprep.mubr.msk.f32.mxu0 %vm5500_vm0, %v5501_v6 }
0x109e   : > { %v2526_v42 = vpop.permute.xlu0 %2525 }
0x109f   : > { %4566 = vmatmul.mubr.msk.f32.gmra.mrb[68].mxu0 %vm209_vm1, %v2526_v42 }
0x10a0   : > { %4568 = vmatprep.mubr.msk.f32.mxu0 %vm5500_vm0, %v5501_v6 }
0x10a2   : > { %v2528_v21 = vpop.permute.xlu1 %2527 }
0x10a3   : > { %4569 = vmatmul.mubr.msk.f32.gmra.mrb[70].mxu0 %vm209_vm1, %v2528_v21 }
0x10a4   : > { %4614 = vmatprep.mubr.msk.f32.mxu0 %vm5500_vm0, %v5501_v6 }
0x1156   : > { %v2613_v7 = vpop.f32.mrb[54].mxu0 }
0x1157   : > { %v2657_v41 = vadd.f32 %v2613_v7, %v2493_v45  ;;  %v4546_v47 = vpop.f32.mrb[55].mxu0 }
0x1159   : > { %5311 = vtanh.f32 %v2657_v41  ;;  %v4097_v31 = vmul.f32 -1.442695, %v2657_v41 }
0x115a   : > { %v2618_v57 = vpop.f32.mrb[56].mxu0 }
0x115b   : > { %v2658_v62 = vadd.f32 %v2618_v57, %v2494_v48  ;;  %v4549_v59 = vpop.f32.mrb[57].mxu0 }
0x115d   : > { %5313 = vtanh.f32 %v2658_v62  ;;  %v4098_v33 = vmul.f32 -1.442695, %v2658_v62 }
0x115e   : > { %v2623_v55 = vpop.f32.mrb[58].mxu0 }
0x115f   : > { %v2659_v53 = vadd.f32 %v2623_v55, %v2495_v51  ;;  %v4552_v49 = vpop.f32.mrb[59].mxu0 }
0x1161   : > { %5315 = vtanh.f32 %v2659_v53  ;;  %v4099_v37 = vmul.f32 -1.442695, %v2659_v53 }
0x1162   : > { %v2628_v50 = vpop.f32.mrb[60].mxu0 }
0x1163   : > { %v5312_v1 = vpop.eup %5311  ;;  %v2660_v56 = vadd.f32 %v2628_v50, %v2496_v60  ;;  %v4555_v8 = vpop.f32.mrb[61].mxu0 }
0x1164   : > { %2747 = vrot.lane.b32.xlu0 %v5312_v1, %s5502_s27 }
0x1165   : > { %5317 = vtanh.f32 %v2660_v56  ;;  %v4100_v36 = vmul.f32 -1.442695, %v2660_v56 }
0x1166   : > { %v2633_v63 = vpop.f32.mrb[62].mxu0 }
0x1167   : > { %v5314_v32 = vpop.eup %5313  ;;  %v2661_v12 = vadd.f32 %v2633_v63, %v2497_v25  ;;  %v4558_v10 = vpop.f32.mrb[63].mxu0 }
0x1168   : > { %2749 = vrot.lane.b32.xlu1 %v5314_v32, %s5502_s27 }
0x1169   : > { %5319 = vtanh.f32 %v2661_v12  ;;  %v4101_v44 = vmul.f32 -1.442695, %v2661_v12 }
0x116a   : > { %v2638_v17 = vpop.f32.mrb[64].mxu0 }
0x116b   : > { %v5316_v43 = vpop.eup %5315  ;;  %v2662_v23 = vadd.f32 %v2638_v17, %v2498_v39  ;;  %v4561_v15 = vpop.f32.mrb[65].mxu0 }
0x116c   : > { %2751 = vrot.lane.b32.xlu0 %v5316_v43, %s5502_s27 }
0x116d   : > { %5321 = vtanh.f32 %v2662_v23  ;;  %v4102_v45 = vmul.f32 -1.442695, %v2662_v23 }
0x116e   : > { %v2643_v38 = vpop.f32.mrb[66].mxu0 }
0x116f   : > { %v5318_v28 = vpop.eup %5317  ;;  %v2663_v20 = vadd.f32 %v2643_v38, %v2499_v22  ;;  %v4564_v29 = vpop.f32.mrb[67].mxu0 }
0x1170   : > { %2753 = vrot.lane.b32.xlu1 %v5318_v28, %s5502_s27 }
0x1171   : > { %5323 = vtanh.f32 %v2663_v20  ;;  %v4103_v48 = vmul.f32 -1.442695, %v2663_v20 }
0x1172   : > { %v2648_v27 = vpop.f32.mrb[68].mxu0 }
0x1173   : > { %v5320_v34 = vpop.eup %5319  ;;  %v2664_v61 = vadd.f32 %v2648_v27, %v2500_v26  ;;  %v4567_v5 = vpop.f32.mrb[69].mxu0 }
0x1174   : > { %2755 = vrot.lane.b32.xlu0 %v5320_v34, %s5502_s27 }
0x1175   : > { %5325 = vtanh.f32 %v2664_v61  ;;  %v4104_v62 = vmul.f32 -1.442695, %v2664_v61 }
0x1176   : > { %v2653_v30 = vpop.f32.mrb[70].mxu0 }
0x1177   : > { %v5322_v18 = vpop.eup %5321  ;;  %v2665_v35 = vadd.f32 %v2653_v30, %v2501_v14  ;;  %v4570_v9 = vpop.f32.mrb[71].mxu0 }
0x1178   : > { %2757 = vrot.lane.b32.xlu1 %v5322_v18, %s5502_s27 }
0x1179   : > { %5327 = vtanh.f32 %v2665_v35  ;;  %v4105_v49 = vmul.f32 -1.442695, %v2665_v35 }
0x117a   : > { %5329 = vpow2.f32 %v4097_v31 }
0x117b   : > { %v5324_v16 = vpop.eup %5323  ;;  %5331 = vpow2.f32 %v4098_v33 }
0x117c   : > { %2759 = vrot.lane.b32.xlu0 %v5324_v16, %s5502_s27  ;;  %5333 = vpow2.f32 %v4099_v37 }
0x117d   : > { %5335 = vpow2.f32 %v4100_v36 }
0x117e   : > { %5337 = vpow2.f32 %v4101_v44 }
0x117f   : > { %v5326_v13 = vpop.eup %5325 }
0x1180   : > { %2761 = vrot.lane.b32.xlu1 %v5326_v13, %s5502_s27 }
0x1183   : > { %v5328_v24 = vpop.eup %5327 }
0x1184   : > { %2763 = vrot.lane.b32.xlu0 %v5328_v24, %s5502_s27  ;;  %v5330_v40 = vpop.eup %5329 }
0x1185   : > { %v2693_v42 = vadd.f32 1.0, %v5330_v40  ;;  %v5332_v21 = vpop.eup %5331 }
0x1186   : > { %v2694_v7 = vadd.f32 1.0, %v5332_v21  ;;  %v5334_v47 = vpop.eup %5333 }
0x1187   : > { %5339 = vrcp.f32 %v2693_v42  ;;  %v2695_v41 = vadd.f32 1.0, %v5334_v47  ;;  %v5336_v57 = vpop.eup %5335 }
0x1188   : > { %5341 = vpow2.f32 %v4102_v45  ;;  %v2696_v59 = vadd.f32 1.0, %v5336_v57  ;;  %v5338_v51 = vpop.eup %5337 }
0x1189   : > { %5343 = vrcp.f32 %v2694_v7  ;;  %v2697_v50 = vadd.f32 1.0, %v5338_v51 }
0x118a   : > { %5345 = vpow2.f32 %v4103_v48 }
0x118b   : > { %5347 = vrcp.f32 %v2695_v41 }
0x118c   : > { %5349 = vpow2.f32 %v4104_v62 }
0x118d   : > { %5351 = vrcp.f32 %v2696_v59 }
0x118e   : > { %5353 = vpow2.f32 %v4105_v49 }
0x118f   : > { %5355 = vrcp.f32 %v2697_v50 }
0x1191   : > { %v6550_v55 = vpop.eup %5339 }
0x1192   : > { %v5342_v1 = vpop.eup %5341  ;;  %v2729_v33 = vmul.f32 %v6550_v55, %v6435_v4 }
0x1193   : > { %v6554_v56 = vpop.eup %5343  ;;  %v2698_v63 = vadd.f32 1.0, %v5342_v1 }
0x1194   : > { %v5346_v32 = vpop.eup %5345  ;;  %v2730_v40 = vmul.f32 %v6554_v56, %v6440_v46 }
0x1195   : > { %v6558_v12 = vpop.eup %5347  ;;  %5357 = vrcp.f32 %v2698_v63  ;;  %v2699_v17 = vadd.f32 1.0, %v5346_v32 }
0x1196   : > { %v5350_v43 = vpop.eup %5349  ;;  %v2731_v21 = vmul.f32 %v6558_v12, %v6445_v54 }
0x1197   : > { %v6562_v23 = vpop.eup %5351  ;;  %5359 = vrcp.f32 %v2699_v17  ;;  %v2700_v38 = vadd.f32 1.0, %v5350_v43 }
0x1198   : > { %v5354_v28 = vpop.eup %5353  ;;  %v2732_v4 = vmul.f32 %v6562_v23, %v6450_v58 }
0x1199   : > { %v6566_v20 = vpop.eup %5355  ;;  %5361 = vrcp.f32 %v2700_v38  ;;  %v2701_v27 = vadd.f32 1.0, %v5354_v28 }
0x119a   : > { %v2733_v46 = vmul.f32 %v6566_v20, %v6456_v0 }
0x119b   : > { %5363 = vrcp.f32 %v2701_v27 }
0x119f   : > { %v6570_v34 = vpop.eup %5357 }
0x11a0   : > { %v2734_v58 = vmul.f32 %v6570_v34, %v6462_v52 }
0x11a1   : > { %v6574_v14 = vpop.eup %5359 }
0x11a2   : > { %v2735_v0 = vmul.f32 %v6574_v14, %v6468_v11 }
0x11a3   : > { %v6578_v35 = vpop.eup %5361 }
0x11a4   : > { %v2736_v52 = vmul.f32 %v6578_v35, %v6474_v19 }
0x11a5   : > { %v6582_v13 = vpop.eup %5363 }
0x11a6   : > { %v2737_v11 = vmul.f32 %v6582_v13, %v6480_v2 }
0x11d6   : > { %v2748_v53 = vpop.permute.xlu0 %2747 }
0x11d7   : > { %v2774_v60 = vmul.f32 %v6550_v55, %v2748_v53 }
0x11d9   : > { %2792 = vrot.lane.b32.xlu1 %v2774_v60, %s5503_s28 }
0x11da   : > { %v2750_v8 = vpop.permute.xlu1 %2749 }
0x11db   : > { %v2775_v25 = vmul.f32 %v6554_v56, %v2750_v8 }
0x11dd   : > { %2794 = vrot.lane.b32.xlu0 %v2775_v25, %s5503_s28 }
0x11de   : > { %v2752_v10 = vpop.permute.xlu0 %2751 }
0x11df   : > { %v2776_v39 = vmul.f32 %v6558_v12, %v2752_v10 }
0x11e1   : > { %2796 = vrot.lane.b32.xlu1 %v2776_v39, %s5503_s28 }
0x11e2   : > { %v2754_v15 = vpop.permute.xlu1 %2753 }
0x11e3   : > { %v2777_v22 = vmul.f32 %v6562_v23, %v2754_v15 }
0x11e5   : > { %2798 = vrot.lane.b32.xlu0 %v2777_v22, %s5503_s28 }
0x11e6   : > { %v2756_v29 = vpop.permute.xlu0 %2755 }
0x11e7   : > { %v2778_v26 = vmul.f32 %v6566_v20, %v2756_v29 }
0x11e9   : > { %2800 = vrot.lane.b32.xlu1 %v2778_v26, %s5503_s28 }
0x11ea   : > { %v2758_v61 = vpop.permute.xlu1 %2757 }
0x11eb   : > { %v2779_v5 = vmul.f32 %v6570_v34, %v2758_v61 }
0x11ed   : > { %2802 = vrot.lane.b32.xlu0 %v2779_v5, %s5503_s28 }
0x11ee   : > { %v2760_v30 = vpop.permute.xlu0 %2759 }
0x11ef   : > { %v2780_v18 = vmul.f32 %v6574_v14, %v2760_v30 }
0x11f1   : > { %2804 = vrot.lane.b32.xlu1 %v2780_v18, %s5503_s28 }
0x11f2   : > { %v2762_v9 = vpop.permute.xlu1 %2761 }
0x11f3   : > { %v2781_v16 = vmul.f32 %v6578_v35, %v2762_v9 }
0x11f5   : > { %2806 = vrot.lane.b32.xlu0 %v2781_v16, %s5503_s28 }
0x11f6   : > { %v2764_v24 = vpop.permute.xlu0 %2763 }
0x11f7   : > { %v2782_v31 = vmul.f32 %v6582_v13, %v2764_v24 }
0x11f9   : > { %2808 = vrot.lane.b32.xlu1 %v2782_v31, %s5503_s28 }
0x124b   : > { %v2793_v37 = vpop.permute.xlu1 %2792 }
0x124c   : > { %v6588_v36 = vadd.f32 %v2793_v37, %v2729_v33  ;;  %v2882_v37 = vld [vmem:[%s5601_s26 + $0x1f8] sm:$0xff] }
0x124e   : > { %5365 = vtanh.f32 %v6588_v36 }
0x124f   : > { %v2795_v44 = vpop.permute.xlu0 %2794 }
0x1250   : > { %v6593_v42 = vadd.f32 %v2795_v44, %v2730_v40 }
0x1252   : > { %5367 = vtanh.f32 %v6593_v42 }
0x1253   : > { %v2797_v45 = vpop.permute.xlu1 %2796 }
0x1254   : > { %v6598_v7 = vadd.f32 %v2797_v45, %v2731_v21  ;;  %v2883_v45 = vld [vmem:[%s5601_s26 + $0x200] sm:$0xff] }
0x1256   : > { %5369 = vtanh.f32 %v6598_v7 }
0x1257   : > { %v2799_v47 = vpop.permute.xlu0 %2798 }
0x1258   : > { %v5366_v48 = vpop.eup %5365  ;;  %v6603_v41 = vadd.f32 %v2799_v47, %v2732_v4 }
0x1259   : > { %2846 = vrot.lane.b32.xlu0 %v5366_v48, %s5502_s27 }
0x125a   : > { %5371 = vtanh.f32 %v6603_v41 }
0x125b   : > { %v2801_v54 = vpop.permute.xlu1 %2800 }
0x125c   : > { %v5368_v57 = vpop.eup %5367  ;;  %v6609_v62 = vadd.f32 %v2801_v54, %v2733_v46  ;;  %v2884_v46 = vld [vmem:[%s5601_s26 + $0x208] sm:$0xff] }
0x125d   : > { %2848 = vrot.lane.b32.xlu1 %v5368_v57, %s5502_s27 }
0x125e   : > { %5373 = vtanh.f32 %v6609_v62 }
0x125f   : > { %v2803_v59 = vpop.permute.xlu0 %2802 }
0x1260   : > { %v5370_v51 = vpop.eup %5369  ;;  %v6615_v53 = vadd.f32 %v2803_v59, %v2734_v58  ;;  %v2885_v59 = vld [vmem:[%s5601_s26 + $0x210] sm:$0xff] }
0x1261   : > { %2850 = vrot.lane.b32.xlu0 %v5370_v51, %s5502_s27 }
0x1262   : > { %5375 = vtanh.f32 %v6615_v53 }
0x1263   : > { %v2805_v49 = vpop.permute.xlu1 %2804 }
0x1264   : > { %v5372_v60 = vpop.eup %5371  ;;  %v6621_v50 = vadd.f32 %v2805_v49, %v2735_v0 }
0x1265   : > { %2852 = vrot.lane.b32.xlu1 %v5372_v60, %s5502_s27 }
0x1266   : > { %5377 = vtanh.f32 %v6621_v50 }
0x1267   : > { %v2807_v1 = vpop.permute.xlu0 %2806 }
0x1268   : > { %v5374_v8 = vpop.eup %5373  ;;  %v6627_v25 = vadd.f32 %v2807_v1, %v2736_v52  ;;  %v2886_v52 = vld [vmem:[%s5601_s26 + $0x218] sm:$0xff] }
0x1269   : > { %2854 = vrot.lane.b32.xlu0 %v5374_v8, %s5502_s27 }
0x126a   : > { %5379 = vtanh.f32 %v6627_v25 }
0x126b   : > { %v2809_v63 = vpop.permute.xlu1 %2808 }
0x126c   : > { %v5376_v32 = vpop.eup %5375  ;;  %v6633_v10 = vadd.f32 %v2809_v63, %v2737_v11 }
0x126d   : > { %2856 = vrot.lane.b32.xlu1 %v5376_v32, %s5502_s27  ;;  %v2887_v32 = vld [vmem:[%s5601_s26 + $0x220] sm:$0xff] }
0x126e   : > { %5381 = vtanh.f32 %v6633_v10 }
0x1270   : > { %v5378_v19 = vpop.eup %5377 }
0x1271   : > { %2858 = vrot.lane.b32.xlu0 %v5378_v19, %s5502_s27 }
0x1274   : > { %v5380_v39 = vpop.eup %5379 }
0x1275   : > { %2860 = vrot.lane.b32.xlu1 %v5380_v39, %s5502_s27 }
0x1278   : > { %v5382_v17 = vpop.eup %5381 }
0x1279   : > { %2862 = vrot.lane.b32.xlu0 %v5382_v17, %s5502_s27 }
0x12cb   : > { %v2847_v43 = vpop.permute.xlu0 %2846 }
0x12cc   : > { %v2873_v2 = vmul.f32 %v6550_v55, %v2847_v43 }
0x12ce   : > { %2900 = vrot.lane.b32.xlu1 %v2873_v2, %s5503_s28  ;;  %v2888_v2 = vld [vmem:[%s5601_s26 + $0x228] sm:$0xff] }
0x12cf   : > { %v2849_v15 = vpop.permute.xlu1 %2848 }
0x12d0   : > { %v2874_v22 = vmul.f32 %v6554_v56, %v2849_v15 }
0x12d2   : > { %2902 = vrot.lane.b32.xlu0 %v2874_v22, %s5503_s28 }
0x12d3   : > { %v2851_v38 = vpop.permute.xlu0 %2850 }
0x12d4   : > { %v2875_v28 = vmul.f32 %v6558_v12, %v2851_v38 }
0x12d6   : > { %2904 = vrot.lane.b32.xlu1 %v2875_v28, %s5503_s28 }
0x12d7   : > { %v2853_v29 = vpop.permute.xlu1 %2852 }
0x12d8   : > { %v2876_v26 = vmul.f32 %v6562_v23, %v2853_v29  ;;  %v2889_v29 = vld [vmem:[%s5601_s26 + $0x230] sm:$0xff] }
0x12da   : > { %2906 = vrot.lane.b32.xlu0 %v2876_v26, %s5503_s28 }
0x12db   : > { %v2855_v27 = vpop.permute.xlu0 %2854 }
0x12dc   : > { %v2877_v55 = vmul.f32 %v6566_v20, %v2855_v27 }
0x12de   : > { %2908 = vrot.lane.b32.xlu1 %v2877_v55, %s5503_s28 }
0x12df   : > { %v2857_v61 = vpop.permute.xlu1 %2856 }
0x12e0   : > { %v2878_v56 = vmul.f32 %v6570_v34, %v2857_v61 }
0x12e2   : > { %2910 = vrot.lane.b32.xlu0 %v2878_v56, %s5503_s28  ;;  %v2890_v56 = vld [vmem:[%s5601_s26 + $0x238] sm:$0xff] }
0x12e3   : > { %v2859_v5 = vpop.permute.xlu0 %2858 }
0x12e4   : > { %v2879_v12 = vmul.f32 %v6574_v14, %v2859_v5 }
0x12e6   : > { %2912 = vrot.lane.b32.xlu1 %v2879_v12, %s5503_s28 }
0x12e7   : > { %v2861_v30 = vpop.permute.xlu1 %2860 }
0x12e8   : > { %v2880_v23 = vmul.f32 %v6578_v35, %v2861_v30 }
0x12ea   : > { %2914 = vrot.lane.b32.xlu0 %v2880_v23, %s5503_s28 }
0x12eb   : > { %v2863_v18 = vpop.permute.xlu0 %2862 }
0x12ec   : > { %v2881_v20 = vmul.f32 %v6582_v13, %v2863_v18 }
0x12ee   : > { %2916 = vrot.lane.b32.xlu1 %v2881_v20, %s5503_s28 }
0x1340   : > { %v2901_v9 = vpop.permute.xlu1 %2900 }
0x1341   : > { %4580 = vmatmul.mubr.msk.f32.vlgmr.msra.gmra.mrb[54].mxu1 %vm209_vm1, %v2901_v9 }
0x1342   : > { %4582 = vmatprep.mubr.msk.f32.mxu1 %vm5500_vm0, %v5501_v6 }
0x1344   : > { %v2903_v34 = vpop.permute.xlu0 %2902 }
0x1345   : > { %4583 = vmatmul.mubr.msk.f32.gmra.mrb[56].mxu1 %vm209_vm1, %v2903_v34 }
0x1346   : > { %4585 = vmatprep.mubr.msk.f32.mxu1 %vm5500_vm0, %v5501_v6 }
0x1348   : > { %v2905_v14 = vpop.permute.xlu1 %2904 }
0x1349   : > { %4586 = vmatmul.mubr.msk.f32.gmra.mrb[58].mxu1 %vm209_vm1, %v2905_v14 }
0x134a   : > { %4588 = vmatprep.mubr.msk.f32.mxu1 %vm5500_vm0, %v5501_v6 }
0x134c   : > { %v2907_v35 = vpop.permute.xlu0 %2906 }
0x134d   : > { %4589 = vmatmul.mubr.msk.f32.gmra.mrb[60].mxu1 %vm209_vm1, %v2907_v35 }
0x134e   : > { %4591 = vmatprep.mubr.msk.f32.mxu1 %vm5500_vm0, %v5501_v6 }
0x1350   : > { %v2909_v16 = vpop.permute.xlu1 %2908 }
0x1351   : > { %4592 = vmatmul.mubr.msk.f32.gmra.mrb[62].mxu1 %vm209_vm1, %v2909_v16 }
0x1352   : > { %4594 = vmatprep.mubr.msk.f32.mxu1 %vm5500_vm0, %v5501_v6 }
0x1354   : > { %v2911_v13 = vpop.permute.xlu0 %2910 }
0x1355   : > { %4595 = vmatmul.mubr.msk.f32.gmra.mrb[64].mxu1 %vm209_vm1, %v2911_v13 }
0x1356   : > { %4597 = vmatprep.mubr.msk.f32.mxu1 %vm5500_vm0, %v5501_v6 }
0x1358   : > { %v2913_v24 = vpop.permute.xlu1 %2912 }
0x1359   : > { %4598 = vmatmul.mubr.msk.f32.gmra.mrb[66].mxu1 %vm209_vm1, %v2913_v24 }
0x135a   : > { %4600 = vmatprep.mubr.msk.f32.mxu1 %vm5500_vm0, %v5501_v6 }
0x135c   : > { %v2915_v31 = vpop.permute.xlu0 %2914 }
0x135d   : > { %4601 = vmatmul.mubr.msk.f32.gmra.mrb[68].mxu1 %vm209_vm1, %v2915_v31 }
0x135e   : > { %4603 = vmatprep.mubr.msk.f32.mxu1 %vm5500_vm0, %v5501_v6 }
0x1360   : > { %v2917_v33 = vpop.permute.xlu1 %2916 }
0x1361   : > { %4604 = vmatmul.mubr.msk.f32.gmra.mrb[70].mxu1 %vm209_vm1, %v2917_v33 }
0x1362   : > { %4673 = vmatprep.mubr.msk.f32.mxu1 %vm5500_vm0, %v5501_v6 }
0x1414   : > { %v3002_v40 = vpop.f32.mrb[54].mxu1 }
0x1415   : > { %v3046_v44 = vadd.f32 %v3002_v40, %v2882_v37  ;;  %v4581_v21 = vpop.f32.mrb[55].mxu1 }
0x1417   : > { %5383 = vtanh.f32 %v3046_v44  ;;  %v4115_v34 = vmul.f32 -1.442695, %v3046_v44 }
0x1418   : > { %v3007_v4 = vpop.f32.mrb[56].mxu1 }
0x1419   : > { %v3047_v47 = vadd.f32 %v3007_v4, %v2883_v45  ;;  %v4584_v48 = vpop.f32.mrb[57].mxu1 }
0x141b   : > { %5385 = vtanh.f32 %v3047_v47  ;;  %v4116_v14 = vmul.f32 -1.442695, %v3047_v47 }
0x141c   : > { %v3012_v54 = vpop.f32.mrb[58].mxu1 }
0x141d   : > { %v3048_v57 = vadd.f32 %v3012_v54, %v2884_v46  ;;  %v4587_v58 = vpop.f32.mrb[59].mxu1 }
0x141f   : > { %5387 = vtanh.f32 %v3048_v57  ;;  %v4117_v35 = vmul.f32 -1.442695, %v3048_v57 }
0x1420   : > { %v3017_v51 = vpop.f32.mrb[60].mxu1 }
0x1421   : > { %v5384_v0 = vpop.eup %5383  ;;  %v3049_v49 = vadd.f32 %v3017_v51, %v2885_v59  ;;  %v4590_v60 = vpop.f32.mrb[61].mxu1 }
0x1422   : > { %3136 = vrot.lane.b32.xlu0 %v5384_v0, %s5502_s27 }
0x1423   : > { %5389 = vtanh.f32 %v3049_v49  ;;  %v4118_v16 = vmul.f32 -1.442695, %v3049_v49 }
0x1424   : > { %v3022_v1 = vpop.f32.mrb[62].mxu1 }
0x1425   : > { %v5386_v8 = vpop.eup %5385  ;;  %v3050_v11 = vadd.f32 %v3022_v1, %v2886_v52  ;;  %v4593_v63 = vpop.f32.mrb[63].mxu1 }
0x1426   : > { %3138 = vrot.lane.b32.xlu1 %v5386_v8, %s5502_s27 }
0x1427   : > { %5391 = vtanh.f32 %v3050_v11  ;;  %v4119_v24 = vmul.f32 -1.442695, %v3050_v11 }
0x1428   : > { %v3027_v19 = vpop.f32.mrb[64].mxu1 }
0x1429   : > { %v5388_v39 = vpop.eup %5387  ;;  %v3051_v17 = vadd.f32 %v3027_v19, %v2887_v32  ;;  %v4596_v43 = vpop.f32.mrb[65].mxu1 }
0x142a   : > { %3140 = vrot.lane.b32.xlu0 %v5388_v39, %s5502_s27 }
0x142b   : > { %5393 = vtanh.f32 %v3051_v17  ;;  %v4120_v37 = vmul.f32 -1.442695, %v3051_v17 }
0x142c   : > { %v3032_v15 = vpop.f32.mrb[66].mxu1 }
0x142d   : > { %v5390_v22 = vpop.eup %5389  ;;  %v3052_v38 = vadd.f32 %v3032_v15, %v2888_v2  ;;  %v4599_v28 = vpop.f32.mrb[67].mxu1 }
0x142e   : > { %3142 = vrot.lane.b32.xlu1 %v5390_v22, %s5502_s27 }
0x142f   : > { %5395 = vtanh.f32 %v3052_v38  ;;  %v4121_v45 = vmul.f32 -1.442695, %v3052_v38 }
0x1430   : > { %v3037_v26 = vpop.f32.mrb[68].mxu1 }
0x1431   : > { %v5392_v27 = vpop.eup %5391  ;;  %v3053_v55 = vadd.f32 %v3037_v26, %v2889_v29  ;;  %v4602_v61 = vpop.f32.mrb[69].mxu1 }
0x1432   : > { %3144 = vrot.lane.b32.xlu0 %v5392_v27, %s5502_s27 }
0x1433   : > { %5397 = vtanh.f32 %v3053_v55  ;;  %v4122_v47 = vmul.f32 -1.442695, %v3053_v55 }
0x1434   : > { %v3042_v5 = vpop.f32.mrb[70].mxu1 }
0x1435   : > { %v5394_v12 = vpop.eup %5393  ;;  %v3054_v30 = vadd.f32 %v3042_v5, %v2890_v56  ;;  %v4605_v23 = vpop.f32.mrb[71].mxu1 }
0x1436   : > { %3146 = vrot.lane.b32.xlu1 %v5394_v12, %s5502_s27 }
0x1437   : > { %5399 = vtanh.f32 %v3054_v30  ;;  %v4123_v58 = vmul.f32 -1.442695, %v3054_v30 }
0x1438   : > { %5401 = vpow2.f32 %v4115_v34 }
0x1439   : > { %v5396_v18 = vpop.eup %5395  ;;  %5403 = vpow2.f32 %v4116_v14 }
0x143a   : > { %3148 = vrot.lane.b32.xlu0 %v5396_v18, %s5502_s27  ;;  %5405 = vpow2.f32 %v4117_v35 }
0x143b   : > { %5407 = vpow2.f32 %v4118_v16 }
0x143c   : > { %5409 = vpow2.f32 %v4119_v24 }
0x143d   : > { %v5398_v20 = vpop.eup %5397 }
0x143e   : > { %3150 = vrot.lane.b32.xlu1 %v5398_v20, %s5502_s27 }
0x1441   : > { %v5400_v9 = vpop.eup %5399 }
0x1442   : > { %3152 = vrot.lane.b32.xlu0 %v5400_v9, %s5502_s27  ;;  %v5402_v13 = vpop.eup %5401 }
0x1443   : > { %v3082_v31 = vadd.f32 1.0, %v5402_v13  ;;  %v5404_v33 = vpop.eup %5403 }
0x1444   : > { %v3083_v40 = vadd.f32 1.0, %v5404_v33  ;;  %v5406_v21 = vpop.eup %5405 }
0x1445   : > { %5411 = vrcp.f32 %v3082_v31  ;;  %v3084_v44 = vadd.f32 1.0, %v5406_v21  ;;  %v5408_v4 = vpop.eup %5407 }
0x1446   : > { %5413 = vpow2.f32 %v4120_v37  ;;  %v3085_v48 = vadd.f32 1.0, %v5408_v4  ;;  %v5410_v46 = vpop.eup %5409 }
0x1447   : > { %5415 = vrcp.f32 %v3083_v40  ;;  %v3086_v51 = vadd.f32 1.0, %v5410_v46 }
0x1448   : > { %5417 = vpow2.f32 %v4121_v45 }
0x1449   : > { %5419 = vrcp.f32 %v3084_v44 }
0x144a   : > { %5421 = vpow2.f32 %v4122_v47 }
0x144b   : > { %5423 = vrcp.f32 %v3085_v48 }
0x144c   : > { %5425 = vpow2.f32 %v4123_v58 }
0x144d   : > { %5427 = vrcp.f32 %v3086_v51 }
0x144f   : > { %v6703_v54 = vpop.eup %5411 }
0x1450   : > { %v5414_v0 = vpop.eup %5413  ;;  %v3118_v14 = vmul.f32 %v6703_v54, %v6588_v36 }
0x1451   : > { %v6707_v49 = vpop.eup %5415  ;;  %v3087_v1 = vadd.f32 1.0, %v5414_v0 }
0x1452   : > { %v5418_v8 = vpop.eup %5417  ;;  %v3119_v13 = vmul.f32 %v6707_v49, %v6593_v42 }
0x1453   : > { %v6711_v11 = vpop.eup %5419  ;;  %5429 = vrcp.f32 %v3087_v1  ;;  %v3088_v19 = vadd.f32 1.0, %v5418_v8 }
0x1454   : > { %v5422_v39 = vpop.eup %5421  ;;  %v3120_v33 = vmul.f32 %v6711_v11, %v6598_v7 }
0x1455   : > { %v6715_v17 = vpop.eup %5423  ;;  %5431 = vrcp.f32 %v3088_v19  ;;  %v3089_v15 = vadd.f32 1.0, %v5422_v39  ;;  %v178_v19 = vld [vmem:[%s7074_s1 + $0x30] sm:$0xff] }
0x1456   : > { %v5426_v22 = vpop.eup %5425  ;;  %v3121_v21 = vmul.f32 %v6715_v17, %v6603_v41 }
0x1457   : > { %v6719_v38 = vpop.eup %5427  ;;  %5433 = vrcp.f32 %v3089_v15  ;;  %v3090_v26 = vadd.f32 1.0, %v5426_v22 }
0x1458   : > { %v3122_v42 = vmul.f32 %v6719_v38, %v6609_v62 }
0x1459   : > { %5435 = vrcp.f32 %v3090_v26 }
0x145d   : > { %v6723_v27 = vpop.eup %5429 }
0x145e   : > { %v3123_v7 = vmul.f32 %v6723_v27, %v6615_v53 }
0x145f   : > { %v6727_v56 = vpop.eup %5431 }
0x1460   : > { %v3124_v58 = vmul.f32 %v6727_v56, %v6621_v50 }
0x1461   : > { %v6731_v30 = vpop.eup %5433 }
0x1462   : > { %v3125_v0 = vmul.f32 %v6731_v30, %v6627_v25  ;;  %v177_v25 = vld [vmem:[%s7074_s1 + $0x28] sm:$0xff] }
0x1463   : > { %v6735_v20 = vpop.eup %5435 }
0x1464   : > { %v3126_v1 = vmul.f32 %v6735_v20, %v6633_v10  ;;  %v179_v10 = vld [vmem:[%s7074_s1 + $0x38] sm:$0xff] }
0x1494   : > { %v3137_v57 = vpop.permute.xlu0 %3136 }
0x1495   : > { %v3163_v59 = vmul.f32 %v6703_v54, %v3137_v57 }
0x1497   : > { %3181 = vrot.lane.b32.xlu1 %v3163_v59, %s5503_s28 }
0x1498   : > { %v3139_v60 = vpop.permute.xlu1 %3138 }
0x1499   : > { %v3164_v52 = vmul.f32 %v6707_v49, %v3139_v60 }
0x149b   : > { %3183 = vrot.lane.b32.xlu0 %v3164_v52, %s5503_s28 }
0x149c   : > { %v3141_v63 = vpop.permute.xlu0 %3140 }
0x149d   : > { %v3165_v32 = vmul.f32 %v6711_v11, %v3141_v63 }
0x149f   : > { %3185 = vrot.lane.b32.xlu1 %v3165_v32, %s5503_s28  ;;  %v176_v32 = vld [vmem:[%s7074_s1 + $0x20] sm:$0xff] }
0x14a0   : > { %v3143_v43 = vpop.permute.xlu1 %3142  ;;  %v4823_v39 = vpack.c.bf16 %v177_v25, %v176_v32 }
0x14a1   : > { %v3166_v2 = vmul.f32 %v6715_v17, %v3143_v43 }
0x14a2   : > { %4824 = vmatpush3.bf16.msra.mxu0 %v4823_v39 }
0x14a3   : > { %3187 = vrot.lane.b32.xlu0 %v3166_v2, %s5503_s28  ;;  %v4826_v2 = vpack.c.bf16 %v179_v10, %v178_v19  ;;  %4825 = vmatprep.subr.bf16.mxu0 %v5499_v3 }
0x14a4   : > { %v3145_v28 = vpop.permute.xlu0 %3144 }
0x14a5   : > { %v3167_v29 = vmul.f32 %v6719_v38, %v3145_v28 }
0x14a6   : > { %4827 = vmatpush3.bf16.msra.mxu0 %v4826_v2 }
0x14a7   : > { %3189 = vrot.lane.b32.xlu1 %v3167_v29, %s5503_s28  ;;  %4852 = vmatprep.subr.bf16.mxu0 %v5499_v3 }
0x14a8   : > { %v3147_v55 = vpop.permute.xlu1 %3146 }
0x14a9   : > { %v3168_v61 = vmul.f32 %v6723_v27, %v3147_v55 }
0x14ab   : > { %3191 = vrot.lane.b32.xlu0 %v3168_v61, %s5503_s28 }
0x14ac   : > { %v3149_v5 = vpop.permute.xlu0 %3148 }
0x14ad   : > { %v3169_v12 = vmul.f32 %v6727_v56, %v3149_v5 }
0x14af   : > { %3193 = vrot.lane.b32.xlu1 %v3169_v12, %s5503_s28 }
0x14b0   : > { %v3151_v23 = vpop.permute.xlu1 %3150 }
0x14b1   : > { %v3170_v18 = vmul.f32 %v6731_v30, %v3151_v23 }
0x14b3   : > { %3195 = vrot.lane.b32.xlu0 %v3170_v18, %s5503_s28 }
0x14b4   : > { %v3153_v9 = vpop.permute.xlu0 %3152 }
0x14b5   : > { %v3171_v34 = vmul.f32 %v6735_v20, %v3153_v9 }
0x14b7   : > { %3197 = vrot.lane.b32.xlu1 %v3171_v34, %s5503_s28  ;;  %v184_v34 = vld [vmem:[%s7074_s1 + $0x60] sm:$0xff] }
0x1509   : > { %v3182_v35 = vpop.permute.xlu1 %3181 }
0x150a   : > { %v3208_v16 = vadd.f32 %v3182_v35, %v3118_v14  ;;  %v187_v14 = vld [vmem:[%s7074_s1 + $0x78] sm:$0xff] }
0x150c   : > { %5437 = vtanh.f32 %v3208_v16 }
0x150d   : > { %v3184_v24 = vpop.permute.xlu0 %3183 }
0x150e   : > { %v3209_v31 = vadd.f32 %v3184_v24, %v3119_v13  ;;  %v188_v13 = vld [vmem:[%s7074_s1 + $0x80] sm:$0xff]  ;;  %v189_v24 = vld [vmem:[%s7074_s1 + $0x88] sm:$0xff] }
0x1510   : > { %5439 = vtanh.f32 %v3209_v31 }
0x1511   : > { %v3186_v37 = vpop.permute.xlu1 %3185 }
0x1512   : > { %v3210_v40 = vadd.f32 %v3186_v37, %v3120_v33  ;;  %v4835_v37 = vpack.c.bf16 %v189_v24, %v188_v13 }
0x1514   : > { %5441 = vtanh.f32 %v3210_v40  ;;  %v191_v40 = vld [vmem:[%s7074_s1 + $0x98] sm:$0xff] }
0x1515   : > { %v3188_v45 = vpop.permute.xlu0 %3187 }
0x1516   : > { %v5438_v36 = vpop.eup %5437  ;;  %v3211_v44 = vadd.f32 %v3188_v45, %v3121_v21 }
0x1517   : > { %3235 = vrot.lane.b32.xlu0 %v5438_v36, %s5502_s27 }
0x1518   : > { %5443 = vtanh.f32 %v3211_v44  ;;  %v193_v44 = vld [vmem:[%s7074_s1 + $0xa8] sm:$0xff] }
0x1519   : > { %v3190_v4 = vpop.permute.xlu1 %3189 }
0x151a   : > { %v5440_v47 = vpop.eup %5439  ;;  %v3212_v48 = vadd.f32 %v3190_v4, %v3122_v42 }
0x151b   : > { %3237 = vrot.lane.b32.xlu1 %v5440_v47, %s5502_s27 }
0x151c   : > { %5445 = vtanh.f32 %v3212_v48 }
0x151d   : > { %v3192_v46 = vpop.permute.xlu0 %3191 }
0x151e   : > { %v5442_v41 = vpop.eup %5441  ;;  %v3213_v57 = vadd.f32 %v3192_v46, %v3123_v7 }
0x151f   : > { %3239 = vrot.lane.b32.xlu0 %v5442_v41, %s5502_s27 }
0x1520   : > { %5447 = vtanh.f32 %v3213_v57 }
0x1521   : > { %v3194_v59 = vpop.permute.xlu1 %3193 }
0x1522   : > { %v5444_v62 = vpop.eup %5443  ;;  %v3214_v51 = vadd.f32 %v3194_v59, %v3124_v58  ;;  %v194_v59 = vld [vmem:[%s7074_s1 + $0xb0] sm:$0xff] }
0x1523   : > { %3241 = vrot.lane.b32.xlu1 %v5444_v62, %s5502_s27  ;;  %v195_v62 = vld [vmem:[%s7074_s1 + $0xb8] sm:$0xff] }
0x1524   : > { %5449 = vtanh.f32 %v3214_v51  ;;  %v4844_v51 = vpack.c.bf16 %v195_v62, %v194_v59 }
0x1525   : > { %v3196_v60 = vpop.permute.xlu0 %3195 }
0x1526   : > { %v5446_v53 = vpop.eup %5445  ;;  %v3215_v52 = vadd.f32 %v3196_v60, %v3125_v0  ;;  %v196_v0 = vld [vmem:[%s7074_s1 + $0xc0] sm:$0xff]  ;;  %v197_v60 = vld [vmem:[%s7074_s1 + $0xc8] sm:$0xff] }
0x1527   : > { %3243 = vrot.lane.b32.xlu0 %v5446_v53, %s5502_s27  ;;  %v4847_v53 = vpack.c.bf16 %v197_v60, %v196_v0 }
0x1528   : > { %5451 = vtanh.f32 %v3215_v52  ;;  %v198_v52 = vld [vmem:[%s7074_s1 + $0xd0] sm:$0xff] }
0x1529   : > { %v3198_v8 = vpop.permute.xlu1 %3197 }
0x152a   : > { %v5448_v50 = vpop.eup %5447  ;;  %v3216_v63 = vadd.f32 %v3198_v8, %v3126_v1  ;;  %v199_v1 = vld [vmem:[%s7074_s1 + $0xd8] sm:$0xff] }
0x152b   : > { %3245 = vrot.lane.b32.xlu1 %v5448_v50, %s5502_s27  ;;  %v4850_v8 = vpack.c.bf16 %v199_v1, %v198_v52  ;;  %v4124_v50 = vld [vmem:[%s7074_s1 + $0x40] ss:$0 sm:$0xff]  ;;  %v3551_v1 = vld [vmem:[%s7075_s2 + $0x10] sm:$0xff] }
0x152c   : > { %5453 = vtanh.f32 %v3216_v63  ;;  %v3549_v52 = vld [vmem:[%s7075_s2] sm:$0xff] }
0x152e   : > { %v5450_v43 = vpop.eup %5449 }
0x152f   : > { %3247 = vrot.lane.b32.xlu0 %v5450_v43, %s5502_s27 }
0x1532   : > { %v5452_v15 = vpop.eup %5451 }
0x1533   : > { %3249 = vrot.lane.b32.xlu1 %v5452_v15, %s5502_s27 }
0x1536   : > { %v5454_v22 = vpop.eup %5453 }
0x1537   : > { %3251 = vrot.lane.b32.xlu0 %v5454_v22, %s5502_s27 }
0x1589   : > { %v3236_v28 = vpop.permute.xlu0 %3235 }
0x158a   : > { %v3262_v29 = vmul.f32 %v6703_v54, %v3236_v28 }
0x158c   : > { %3284 = vrot.lane.b32.xlu1 %v3262_v29, %s5503_s28 }
0x158d   : > { %v3238_v26 = vpop.permute.xlu1 %3237 }
0x158e   : > { %v3263_v55 = vmul.f32 %v6707_v49, %v3238_v26 }
0x1590   : > { %3286 = vrot.lane.b32.xlu0 %v3263_v55, %s5503_s28 }
0x1591   : > { %v3240_v61 = vpop.permute.xlu0 %3239 }
0x1592   : > { %v3264_v5 = vmul.f32 %v6711_v11, %v3240_v61  ;;  %v185_v11 = vld [vmem:[%s7074_s1 + $0x68] sm:$0xff] }
0x1594   : > { %3288 = vrot.lane.b32.xlu1 %v3264_v5, %s5503_s28 }
0x1595   : > { %v3242_v12 = vpop.permute.xlu1 %3241 }
0x1596   : > { %v3265_v23 = vmul.f32 %v6715_v17, %v3242_v12  ;;  %v186_v17 = vld [vmem:[%s7074_s1 + $0x70] sm:$0xff] }
0x1597   : > { %v4832_v16 = vpack.c.bf16 %v187_v14, %v186_v17 }
0x1598   : > { %3290 = vrot.lane.b32.xlu0 %v3265_v23, %s5503_s28 }
0x1599   : > { %v3244_v18 = vpop.permute.xlu0 %3243 }
0x159a   : > { %v3266_v54 = vmul.f32 %v6719_v38, %v3244_v18  ;;  %v4829_v38 = vpack.c.bf16 %v185_v11, %v184_v34 }
0x159c   : > { %3292 = vrot.lane.b32.xlu1 %v3266_v54, %s5503_s28  ;;  %4830 = vmatpush3.bf16.msra.mxu1 %v4829_v38 }
0x159d   : > { %v3246_v9 = vpop.permute.xlu1 %3245  ;;  %4831 = vmatprep.subr.bf16.mxu1 %v5499_v3 }
0x159e   : > { %v3267_v49 = vmul.f32 %v6723_v27, %v3246_v9 }
0x15a0   : > { %3294 = vrot.lane.b32.xlu0 %v3267_v49, %s5503_s28  ;;  %4833 = vmatpush3.bf16.msra.mxu1 %v4832_v16 }
0x15a1   : > { %v3248_v27 = vpop.permute.xlu0 %3247  ;;  %4834 = vmatprep.subr.bf16.mxu1 %v5499_v3 }
0x15a2   : > { %v3268_v35 = vmul.f32 %v6727_v56, %v3248_v27  ;;  %v190_v56 = vld [vmem:[%s7074_s1 + $0x90] sm:$0xff] }
0x15a3   : > { %v4838_v36 = vpack.c.bf16 %v191_v40, %v190_v56 }
0x15a4   : > { %3296 = vrot.lane.b32.xlu1 %v3268_v35, %s5503_s28  ;;  %4836 = vmatpush3.bf16.msra.mxu1 %v4835_v37 }
0x15a5   : > { %v3250_v31 = vpop.permute.xlu1 %3249  ;;  %4837 = vmatprep.subr.bf16.mxu1 %v5499_v3 }
0x15a6   : > { %v3269_v33 = vmul.f32 %v6731_v30, %v3250_v31  ;;  %v192_v30 = vld [vmem:[%s7074_s1 + $0xa0] sm:$0xff] }
0x15a7   : > { %v4841_v42 = vpack.c.bf16 %v193_v44, %v192_v30 }
0x15a8   : > { %3298 = vrot.lane.b32.xlu0 %v3269_v33, %s5503_s28  ;;  %4839 = vmatpush3.bf16.msra.mxu1 %v4838_v36 }
0x15a9   : > { %v3252_v21 = vpop.permute.xlu0 %3251  ;;  %4840 = vmatprep.subr.bf16.mxu1 %v5499_v3 }
0x15aa   : > { %v3270_v45 = vmul.f32 %v6735_v20, %v3252_v21 }
0x15ac   : > { %3300 = vrot.lane.b32.xlu1 %v3270_v45, %s5503_s28  ;;  %4842 = vmatpush3.bf16.msra.mxu1 %v4841_v42 }
0x15ad   : > { %4843 = vmatprep.subr.bf16.mxu1 %v5499_v3 }
0x15b0   : > { %4845 = vmatpush3.bf16.msra.mxu1 %v4844_v51 }
0x15b1   : > { %4846 = vmatprep.subr.bf16.mxu1 %v5499_v3 }
0x15b4   : > { %4848 = vmatpush3.bf16.msra.mxu1 %v4847_v53 }
0x15b5   : > { %4849 = vmatprep.subr.bf16.mxu1 %v5499_v3 }
0x15b8   : > { %4851 = vmatpush3.bf16.msra.mxu1 %v4850_v8  ;;  %v3552_v8 = vld [vmem:[%s7075_s2 + $0x18] sm:$0xff] }
0x15b9   : > { %4745 = vmatprep.subr.mxu1 %v5501_v6 }
0x15fe   : > { %v3285_v20 = vpop.permute.xlu1 %3284 }
0x15ff   : > { %4615 = vmatmul.mubr.msk.f32.vlgmr.msra.gmra.mrb[72].mxu0 %vm209_vm1, %v3285_v20 }
0x1600   : > { %4617 = vmatprep.mubr.msk.f32.mxu0 %vm5500_vm0, %v5501_v6 }
0x1602   : > { %v3287_v4 = vpop.permute.xlu0 %3286 }
0x1603   : > { %4618 = vmatmul.mubr.msk.f32.gmra.mrb[74].mxu0 %vm209_vm1, %v3287_v4 }
0x1604   : > { %4620 = vmatprep.mubr.msk.f32.mxu0 %vm5500_vm0, %v5501_v6 }
0x1606   : > { %v3289_v47 = vpop.permute.xlu1 %3288 }
0x1607   : > { %4621 = vmatmul.mubr.msk.f32.gmra.mrb[76].mxu0 %vm209_vm1, %v3289_v47 }
0x1608   : > { %4623 = vmatprep.mubr.msk.f32.mxu0 %vm5500_vm0, %v5501_v6 }
0x160a   : > { %v3291_v48 = vpop.permute.xlu0 %3290 }
0x160b   : > { %4624 = vmatmul.mubr.msk.f32.gmra.mrb[78].mxu0 %vm209_vm1, %v3291_v48 }
0x160c   : > { %4626 = vmatprep.mubr.msk.f32.mxu0 %vm5500_vm0, %v5501_v6 }
0x160e   : > { %v3293_v7 = vpop.permute.xlu1 %3292 }
0x160f   : > { %4627 = vmatmul.mubr.msk.f32.gmra.mrb[80].mxu0 %vm209_vm1, %v3293_v7 }
0x1610   : > { %4629 = vmatprep.mubr.msk.f32.mxu0 %vm5500_vm0, %v5501_v6 }
0x1612   : > { %v3295_v46 = vpop.permute.xlu0 %3294 }
0x1613   : > { %4630 = vmatmul.mubr.msk.f32.gmra.mrb[82].mxu0 %vm209_vm1, %v3295_v46 }
0x1614   : > { %4632 = vmatprep.mubr.msk.f32.mxu0 %vm5500_vm0, %v5501_v6 }
0x1616   : > { %v3297_v41 = vpop.permute.xlu1 %3296 }
0x1617   : > { %4633 = vmatmul.mubr.msk.f32.gmra.mrb[84].mxu0 %vm209_vm1, %v3297_v41 }
0x1618   : > { %4635 = vmatprep.mubr.msk.f32.mxu0 %vm5500_vm0, %v5501_v6 }
0x161a   : > { %v3299_v57 = vpop.permute.xlu0 %3298 }
0x161b   : > { %4636 = vmatmul.mubr.msk.f32.gmra.mrb[86].mxu0 %vm209_vm1, %v3299_v57 }
0x161c   : > { %4638 = vmatprep.mubr.msk.f32.mxu0 %vm5500_vm0, %v5501_v6 }
0x161e   : > { %v3301_v58 = vpop.permute.xlu1 %3300 }
0x161f   : > { %4639 = vmatmul.mubr.msk.f32.gmra.mrb[88].mxu0 %vm209_vm1, %v3301_v58 }
0x1620   : > { %4718 = vmatprep.mubr.msk.f32.mxu0 %vm5500_vm0, %v5501_v6 }
0x16d2   : > { %v3386_v63 = vpop.f32.mrb[72].mxu0 }
0x16d3   : > { %v3387_v32 = vadd.f32 %v4124_v50, %v3386_v63  ;;  %v4616_v25 = vpop.f32.mrb[73].mxu0  ;;  %v3554_v63 = vld [vmem:[%s7075_s2 + $0x28] sm:$0xff] }
0x16d4   : > { %v3556_v25 = vld [vmem:[%s7075_s2 + $0x38] sm:$0xff] }
0x16d5   : > { %5455 = vtanh.f32 %v3387_v32  ;;  %v3555_v32 = vld [vmem:[%s7075_s2 + $0x30] sm:$0xff] }
0x16d6   : > { %v3391_v19 = vpop.f32.mrb[74].mxu0 }
0x16d7   : > { %v3392_v39 = vadd.f32 %v4124_v50, %v3391_v19  ;;  %v4619_v10 = vpop.f32.mrb[75].mxu0  ;;  %v3557_v19 = vld [vmem:[%s7075_s2 + $0x40] sm:$0xff] }
0x16d8   : > { %v3696_v10 = vlaneseq }
0x16d9   : > { %5457 = vtanh.f32 %v3392_v39  ;;  %v183_v39 = vld [vmem:[%s7074_s1 + $0x58] sm:$0xff] }
0x16da   : > { %v3396_v43 = vpop.f32.mrb[76].mxu0 }
0x16db   : > { %v3397_v2 = vadd.f32 %v4124_v50, %v3396_v43  ;;  %v4622_v15 = vpop.f32.mrb[77].mxu0  ;;  %v3697_v43 = vand.u32 127, %v3696_v10 }
0x16dd   : > { %5459 = vtanh.f32 %v3397_v2  ;;  %vm3698_vm3 = vcmp.lt.s32.totalorder %v3697_v43, 8  ;;  %v4143_v2 = vld [vmem:[%s7074_s1 + $0x48] ss:$0 sm:$0xff] }
0x16de   : > { %v3401_v22 = vpop.f32.mrb[78].mxu0 }
0x16df   : > { %v5456_v28 = vpop.eup %5455  ;;  %v3402_v29 = vadd.f32 %v4124_v50, %v3401_v22  ;;  %v4625_v26 = vpop.f32.mrb[79].mxu0 }
0x16e0   : > { %4674 = vmatmul.mubr.f32.vlgmr.msra.gmra.mrb[72].mxu1 %v5456_v28 }
0x16e1   : > { %5461 = vtanh.f32 %v3402_v29  ;;  %4676 = vmatprep.mubr.msk.f32.mxu1 %vm5500_vm0, %v5501_v6  ;;  %4746 = vmatpush3.msra.mxu1 %v183_v39 }
0x16e2   : > { %v3406_v55 = vpop.f32.mrb[80].mxu0 }
0x16e3   : > { %v5458_v61 = vpop.eup %5457  ;;  %v3407_v5 = vadd.f32 %v4124_v50, %v3406_v55  ;;  %v4628_v12 = vpop.f32.mrb[81].mxu0 }
0x16e4   : > { %4677 = vmatmul.mubr.f32.gmra.mrb[74].mxu1 %v5458_v61 }
0x16e5   : > { %5463 = vtanh.f32 %v3407_v5  ;;  %4679 = vmatprep.mubr.msk.f32.mxu1 %vm5500_vm0, %v5501_v6 }
0x16e6   : > { %v3411_v23 = vpop.f32.mrb[82].mxu0 }
0x16e7   : > { %v5460_v18 = vpop.eup %5459  ;;  %v3412_v54 = vadd.f32 %v4124_v50, %v3411_v23  ;;  %v4631_v9 = vpop.f32.mrb[83].mxu0 }
0x16e8   : > { %4680 = vmatmul.mubr.f32.gmra.mrb[76].mxu1 %v5460_v18 }
0x16e9   : > { %5465 = vtanh.f32 %v3412_v54  ;;  %4682 = vmatprep.mubr.msk.f32.mxu1 %vm5500_vm0, %v5501_v6 }
0x16ea   : > { %v3416_v49 = vpop.f32.mrb[84].mxu0 }
0x16eb   : > { %v5462_v34 = vpop.eup %5461  ;;  %v3417_v11 = vadd.f32 %v4124_v50, %v3416_v49  ;;  %v4634_v17 = vpop.f32.mrb[85].mxu0 }
0x16ec   : > { %4683 = vmatmul.mubr.f32.gmra.mrb[78].mxu1 %v5462_v34 }
0x16ed   : > { %5467 = vtanh.f32 %v3417_v11  ;;  %4685 = vmatprep.mubr.msk.f32.mxu1 %vm5500_vm0, %v5501_v6 }
0x16ee   : > { %v3421_v38 = vpop.f32.mrb[86].mxu0 }
0x16ef   : > { %v5464_v14 = vpop.eup %5463  ;;  %v3422_v27 = vadd.f32 %v4124_v50, %v3421_v38  ;;  %v4637_v35 = vpop.f32.mrb[87].mxu0 }
0x16f0   : > { %4686 = vmatmul.mubr.f32.gmra.mrb[80].mxu1 %v5464_v14 }
0x16f1   : > { %5469 = vtanh.f32 %v3422_v27  ;;  %4688 = vmatprep.mubr.msk.f32.mxu1 %vm5500_vm0, %v5501_v6 }
0x16f2   : > { %v3426_v16 = vpop.f32.mrb[88].mxu0 }
0x16f3   : > { %v5466_v13 = vpop.eup %5465  ;;  %v3427_v24 = vadd.f32 %v4124_v50, %v3426_v16  ;;  %v4640_v31 = vpop.f32.mrb[89].mxu0  ;;  %v3553_v50 = vld [vmem:[%s7075_s2 + $0x20] sm:$0xff] }
0x16f4   : > { %4689 = vmatmul.mubr.f32.gmra.mrb[82].mxu1 %v5466_v13 }
0x16f5   : > { %5471 = vtanh.f32 %v3427_v24  ;;  %4691 = vmatprep.mubr.msk.f32.mxu1 %vm5500_vm0, %v5501_v6 }
0x16f7   : > { %v5468_v33 = vpop.eup %5467 }
0x16f8   : > { %4692 = vmatmul.mubr.f32.gmra.mrb[84].mxu1 %v5468_v33 }
0x16f9   : > { %4694 = vmatprep.mubr.msk.f32.mxu1 %vm5500_vm0, %v5501_v6 }
0x16fb   : > { %v5470_v37 = vpop.eup %5469 }
0x16fc   : > { %4695 = vmatmul.mubr.f32.gmra.mrb[86].mxu1 %v5470_v37 }
0x16fd   : > { %4697 = vmatprep.mubr.msk.f32.mxu1 %vm5500_vm0, %v5501_v6 }
0x16ff   : > { %v5472_v56 = vpop.eup %5471 }
0x1700   : > { %4698 = vmatmul.mubr.f32.gmra.mrb[88].mxu1 %v5472_v56 }
0x1701   : > { %4747 = vmatprep.mubr.msk.f32.mxu1 %vm5500_vm0, %v5501_v6 }
0x17b3   : > { %v6902_v40 = vpop.f32.mrb[72].mxu1 }
0x17b4   : > { %v4675_v21 = vpop.f32.mrb[73].mxu1 }
0x17b7   : > { %v6904_v45 = vpop.f32.mrb[74].mxu1 }
0x17b8   : > { %v4853_v36 = vpack.c.bf16 %v6904_v45, %v6902_v40  ;;  %v4678_v30 = vpop.f32.mrb[75].mxu1 }
0x17ba   : > { %4854 = vmatpush3.bf16.msra.mxu0 %v4853_v36 }
0x17bb   : > { %v6908_v44 = vpop.f32.mrb[76].mxu1  ;;  %4855 = vmatprep.subr.bf16.mxu0 %v5499_v3 }
0x17bc   : > { %v4681_v42 = vpop.f32.mrb[77].mxu1 }
0x17bf   : > { %v6911_v20 = vpop.f32.mrb[78].mxu1 }
0x17c0   : > { %v4856_v4 = vpack.c.bf16 %v6911_v20, %v6908_v44  ;;  %v4684_v47 = vpop.f32.mrb[79].mxu1 }
0x17c2   : > { %4857 = vmatpush3.bf16.msra.mxu0 %v4856_v4 }
0x17c3   : > { %v6915_v48 = vpop.f32.mrb[80].mxu1  ;;  %4858 = vmatprep.subr.bf16.mxu0 %v5499_v3 }
0x17c4   : > { %v4687_v7 = vpop.f32.mrb[81].mxu1 }
0x17c7   : > { %v6918_v46 = vpop.f32.mrb[82].mxu1 }
0x17c8   : > { %v4859_v41 = vpack.c.bf16 %v6918_v46, %v6915_v48  ;;  %v4690_v57 = vpop.f32.mrb[83].mxu1 }
0x17ca   : > { %4860 = vmatpush3.bf16.msra.mxu0 %v4859_v41 }
0x17cb   : > { %v6922_v58 = vpop.f32.mrb[84].mxu1  ;;  %4861 = vmatprep.subr.bf16.mxu0 %v5499_v3  ;;  %v3550_v3 = vld [vmem:[%s7075_s2 + $0x8] sm:$0xff] }
0x17cc   : > { %v4693_v59 = vpop.f32.mrb[85].mxu1 }
0x17cf   : > { %v6925_v62 = vpop.f32.mrb[86].mxu1 }
0x17d0   : > { %v4862_v51 = vpack.c.bf16 %v6925_v62, %v6922_v58  ;;  %v4696_v0 = vpop.f32.mrb[87].mxu1 }
0x17d2   : > { %4863 = vmatpush3.bf16.msra.mxu0 %v4862_v51 }
0x17d3   : > { %v6929_v60 = vpop.f32.mrb[88].mxu1  ;;  %4716 = vmatprep.subr.mxu0 %v5501_v6 }
0x17d4   : > { %v4699_v53 = vpop.f32.mrb[89].mxu1 }
0x17d6   : > { %4717 = vmatpush3.msra.mxu0 %v6929_v60 }
0x17d7   : > { %4719 = vmatmul.mubr.msk.f32.vlgmr.msra.gmra.mrb[90].mxu0 %vm3558_vm2, %v3549_v52 }
0x17d8   : > { %4721 = vmatprep.mubr.msk.f32.mxu0 %vm5500_vm0, %v5501_v6 }
0x17db   : > { %4722 = vmatmul.mubr.msk.f32.gmra.mrb[92].mxu0 %vm3558_vm2, %v3550_v3 }
0x17dc   : > { %4724 = vmatprep.mubr.msk.f32.mxu0 %vm5500_vm0, %v5501_v6 }
0x17df   : > { %4725 = vmatmul.mubr.msk.f32.gmra.mrb[94].mxu0 %vm3558_vm2, %v3551_v1 }
0x17e0   : > { %4727 = vmatprep.mubr.msk.f32.mxu0 %vm5500_vm0, %v5501_v6 }
0x17e3   : > { %4728 = vmatmul.mubr.msk.f32.gmra.mrb[96].mxu0 %vm3558_vm2, %v3552_v8 }
0x17e4   : > { %4730 = vmatprep.mubr.msk.f32.mxu0 %vm5500_vm0, %v5501_v6 }
0x17e7   : > { %4731 = vmatmul.mubr.msk.f32.gmra.mrb[98].mxu0 %vm3558_vm2, %v3553_v50 }
0x17e8   : > { %4733 = vmatprep.mubr.msk.f32.mxu0 %vm5500_vm0, %v5501_v6 }
0x17eb   : > { %4734 = vmatmul.mubr.msk.f32.gmra.mrb[100].mxu0 %vm3558_vm2, %v3554_v63 }
0x17ec   : > { %4736 = vmatprep.mubr.msk.f32.mxu0 %vm5500_vm0, %v5501_v6 }
0x17ef   : > { %4737 = vmatmul.mubr.msk.f32.gmra.mrb[102].mxu0 %vm3558_vm2, %v3555_v32 }
0x17f0   : > { %4739 = vmatprep.mubr.msk.f32.mxu0 %vm5500_vm0, %v5501_v6 }
0x17f3   : > { %4740 = vmatmul.mubr.msk.f32.gmra.mrb[104].mxu0 %vm3558_vm2, %v3556_v25 }
0x17f4   : > { %4742 = vmatprep.mubr.msk.f32.mxu0 %vm5500_vm0, %v5501_v6 }
0x17f7   : > { %4743 = vmatmul.mubr.msk.f32.gmra.mrb[106].mxu0 %vm3558_vm2, %v3557_v19 }
0x18aa   : > { %v3652_v15 = vpop.f32.mrb[90].mxu0 }
0x18ab   : > { %v3699_v22 = vsel %vm3698_vm3, %v6902_v40, %v3652_v15  ;;  %v4720_v28 = vpop.f32.mrb[91].mxu0  ;;  %v4144_v15 = vld [vmem:[%s7074_s1 + $0x50] ss:$0 sm:$0xff] }
0x18ac   : > { %v3712_v29 = vadd.f32 %v4143_v2, %v3699_v22 }
0x18ae   : > { %5473 = vtanh.f32 %v3712_v29  ;;  %v3657_v26 = vpop.f32.mrb[92].mxu0 }
0x18af   : > { %v3700_v55 = vsel %vm3698_vm3, %v6904_v45, %v3657_v26  ;;  %v4723_v61 = vpop.f32.mrb[93].mxu0 }
0x18b0   : > { %v3713_v5 = vadd.f32 %v4143_v2, %v3700_v55 }
0x18b2   : > { %5475 = vtanh.f32 %v3713_v5  ;;  %v3662_v12 = vpop.f32.mrb[94].mxu0 }
0x18b3   : > { %v3701_v23 = vsel %vm3698_vm3, %v6908_v44, %v3662_v12  ;;  %v4726_v18 = vpop.f32.mrb[95].mxu0 }
0x18b4   : > { %v3714_v54 = vadd.f32 %v4143_v2, %v3701_v23 }
0x18b6   : > { %5477 = vtanh.f32 %v3714_v54  ;;  %v3667_v9 = vpop.f32.mrb[96].mxu0 }
0x18b7   : > { %v3702_v49 = vsel %vm3698_vm3, %v6911_v20, %v3667_v9  ;;  %v4729_v34 = vpop.f32.mrb[97].mxu0 }
0x18b8   : > { %v5474_v11 = vpop.eup %5473  ;;  %v3715_v17 = vadd.f32 %v4143_v2, %v3702_v49 }
0x18b9   : > { %3739 = vrot.lane.b32.xlu0 %v5474_v11, %s5504_s18 }
0x18ba   : > { %5479 = vtanh.f32 %v3715_v17  ;;  %v3672_v38 = vpop.f32.mrb[98].mxu0 }
0x18bb   : > { %v3703_v14 = vsel %vm3698_vm3, %v6915_v48, %v3672_v38  ;;  %v4732_v27 = vpop.f32.mrb[99].mxu0 }
0x18bc   : > { %v5476_v35 = vpop.eup %5475  ;;  %v3716_v16 = vadd.f32 %v4143_v2, %v3703_v14 }
0x18bd   : > { %3741 = vrot.lane.b32.xlu1 %v5476_v35, %s5504_s18 }
0x18be   : > { %5481 = vtanh.f32 %v3716_v16  ;;  %v3677_v13 = vpop.f32.mrb[100].mxu0 }
0x18bf   : > { %v3704_v24 = vsel %vm3698_vm3, %v6918_v46, %v3677_v13  ;;  %v4735_v31 = vpop.f32.mrb[101].mxu0 }
0x18c0   : > { %v5478_v33 = vpop.eup %5477  ;;  %v3717_v37 = vadd.f32 %v4143_v2, %v3704_v24 }
0x18c1   : > { %3743 = vrot.lane.b32.xlu0 %v5478_v33, %s5504_s18 }
0x18c2   : > { %5483 = vtanh.f32 %v3717_v37  ;;  %v3682_v56 = vpop.f32.mrb[102].mxu0 }
0x18c3   : > { %v3705_v40 = vsel %vm3698_vm3, %v6922_v58, %v3682_v56  ;;  %v4738_v21 = vpop.f32.mrb[103].mxu0 }
0x18c4   : > { %v5480_v45 = vpop.eup %5479  ;;  %v3718_v36 = vadd.f32 %v4143_v2, %v3705_v40 }
0x18c5   : > { %3745 = vrot.lane.b32.xlu1 %v5480_v45, %s5504_s18 }
0x18c6   : > { %5485 = vtanh.f32 %v3718_v36  ;;  %v3687_v30 = vpop.f32.mrb[104].mxu0 }
0x18c7   : > { %v3706_v44 = vsel %vm3698_vm3, %v6925_v62, %v3687_v30  ;;  %v4741_v42 = vpop.f32.mrb[105].mxu0 }
0x18c8   : > { %v5482_v20 = vpop.eup %5481  ;;  %v3719_v4 = vadd.f32 %v4143_v2, %v3706_v44 }
0x18c9   : > { %3747 = vrot.lane.b32.xlu0 %v5482_v20, %s5504_s18 }
0x18ca   : > { %5487 = vtanh.f32 %v3719_v4  ;;  %v3692_v47 = vpop.f32.mrb[106].mxu0 }
0x18cb   : > { %v3707_v48 = vsel %vm3698_vm3, %v6929_v60, %v3692_v47  ;;  %v4744_v7 = vpop.f32.mrb[107].mxu0 }
0x18cc   : > { %v5484_v46 = vpop.eup %5483  ;;  %v3720_v41 = vadd.f32 %v4143_v2, %v3707_v48 }
0x18cd   : > { %3749 = vrot.lane.b32.xlu1 %v5484_v46, %s5504_s18 }
0x18ce   : > { %5489 = vtanh.f32 %v3720_v41 }
0x18d0   : > { %v5486_v57 = vpop.eup %5485 }
0x18d1   : > { %3751 = vrot.lane.b32.xlu0 %v5486_v57, %s5504_s18 }
0x18d4   : > { %v5488_v58 = vpop.eup %5487 }
0x18d5   : > { %3753 = vrot.lane.b32.xlu1 %v5488_v58, %s5504_s18 }
0x18d8   : > { %v5490_v59 = vpop.eup %5489 }
0x18d9   : > { %3755 = vrot.lane.b32.xlu0 %v5490_v59, %s5504_s18 }
0x192b   : > { %v3740_v62 = vpop.permute.xlu0 %3739 }
0x192c   : > { %v3766_v51 = vmul.f32 %v5474_v11, %v3740_v62 }
0x192e   : > { %4748 = vmatmul.mubr.msk.f32.vlgmr.msra.gmra.mrb[90].mxu1 %vm3779_vm4, %v3766_v51 }
0x192f   : > { %v3742_v0 = vpop.permute.xlu1 %3741  ;;  %4750 = vmatprep.mubr.msk.f32.mxu1 %vm5500_vm0, %v5501_v6 }
0x1930   : > { %v3767_v60 = vmul.f32 %v5476_v35, %v3742_v0 }
0x1932   : > { %4751 = vmatmul.mubr.msk.f32.gmra.mrb[92].mxu1 %vm3779_vm4, %v3767_v60 }
0x1933   : > { %v3744_v53 = vpop.permute.xlu0 %3743  ;;  %4753 = vmatprep.mubr.msk.f32.mxu1 %vm5500_vm0, %v5501_v6 }
0x1934   : > { %v3768_v52 = vmul.f32 %v5478_v33, %v3744_v53 }
0x1936   : > { %4754 = vmatmul.mubr.msk.f32.gmra.mrb[94].mxu1 %vm3779_vm4, %v3768_v52 }
0x1937   : > { %v3746_v3 = vpop.permute.xlu1 %3745  ;;  %4756 = vmatprep.mubr.msk.f32.mxu1 %vm5500_vm0, %v5501_v6 }
0x1938   : > { %v3769_v1 = vmul.f32 %v5480_v45, %v3746_v3 }
0x193a   : > { %4757 = vmatmul.mubr.msk.f32.gmra.mrb[96].mxu1 %vm3779_vm4, %v3769_v1 }
0x193b   : > { %v3748_v8 = vpop.permute.xlu0 %3747  ;;  %4759 = vmatprep.mubr.msk.f32.mxu1 %vm5500_vm0, %v5501_v6 }
0x193c   : > { %v3770_v50 = vmul.f32 %v5482_v20, %v3748_v8 }
0x193e   : > { %4760 = vmatmul.mubr.msk.f32.gmra.mrb[98].mxu1 %vm3779_vm4, %v3770_v50 }
0x193f   : > { %v3750_v63 = vpop.permute.xlu1 %3749  ;;  %4762 = vmatprep.mubr.msk.f32.mxu1 %vm5500_vm0, %v5501_v6 }
0x1940   : > { %v3771_v32 = vmul.f32 %v5484_v46, %v3750_v63 }
0x1942   : > { %4763 = vmatmul.mubr.msk.f32.gmra.mrb[100].mxu1 %vm3779_vm4, %v3771_v32 }
0x1943   : > { %v3752_v25 = vpop.permute.xlu0 %3751  ;;  %4765 = vmatprep.mubr.msk.f32.mxu1 %vm5500_vm0, %v5501_v6 }
0x1944   : > { %v3772_v19 = vmul.f32 %v5486_v57, %v3752_v25 }
0x1946   : > { %4766 = vmatmul.mubr.msk.f32.gmra.mrb[102].mxu1 %vm3779_vm4, %v3772_v19 }
0x1947   : > { %v3754_v39 = vpop.permute.xlu1 %3753  ;;  %4768 = vmatprep.mubr.msk.f32.mxu1 %vm5500_vm0, %v5501_v6 }
0x1948   : > { %v3773_v10 = vmul.f32 %v5488_v58, %v3754_v39 }
0x194a   : > { %4769 = vmatmul.mubr.msk.f32.gmra.mrb[104].mxu1 %vm3779_vm4, %v3773_v10 }
0x194b   : > { %v3756_v43 = vpop.permute.xlu0 %3755  ;;  %4771 = vmatprep.mubr.msk.f32.mxu1 %vm5500_vm0, %v5501_v6 }
0x194c   : > { %v3774_v2 = vmul.f32 %v5490_v59, %v3756_v43 }
0x194e   : > { %4772 = vmatmul.mubr.msk.f32.gmra.mrb[106].mxu1 %vm3779_vm4, %v3774_v2 }
0x1a01   : > { %v3873_v6 = vpop.f32.mrb[90].mxu1 }
0x1a02   : > { %v3874_v22 = vadd.f32 %v4144_v15, %v3873_v6  ;;  %v4749_v28 = vpop.f32.mrb[91].mxu1 }
0x1a04   : > { %3917 = vst.msk [vmem:[%s7050_s25] sm:$0xff] %vm3779_vm4, %v3874_v22 }
0x1a05   : > { %v3878_v29 = vpop.f32.mrb[92].mxu1 }
0x1a06   : > { %v3879_v26 = vadd.f32 %v4144_v15, %v3878_v29  ;;  %v4752_v55 = vpop.f32.mrb[93].mxu1 }
0x1a08   : > { %3918 = vst.msk [vmem:[%s7050_s25 + $0x8] sm:$0xff] %vm3779_vm4, %v3879_v26 }
0x1a09   : > { %v3883_v61 = vpop.f32.mrb[94].mxu1 }
0x1a0a   : > { %v3884_v5 = vadd.f32 %v4144_v15, %v3883_v61  ;;  %v4755_v12 = vpop.f32.mrb[95].mxu1 }
0x1a0c   : > { %3919 = vst.msk [vmem:[%s7050_s25 + $0x10] sm:$0xff] %vm3779_vm4, %v3884_v5 }
0x1a0d   : > { %v3888_v23 = vpop.f32.mrb[96].mxu1 }
0x1a0e   : > { %v3889_v18 = vadd.f32 %v4144_v15, %v3888_v23  ;;  %v4758_v54 = vpop.f32.mrb[97].mxu1 }
0x1a10   : > { %3920 = vst.msk [vmem:[%s7050_s25 + $0x18] sm:$0xff] %vm3779_vm4, %v3889_v18 }
0x1a11   : > { %v3893_v9 = vpop.f32.mrb[98].mxu1 }
0x1a12   : > { %v3894_v49 = vadd.f32 %v4144_v15, %v3893_v9  ;;  %v4761_v34 = vpop.f32.mrb[99].mxu1 }
0x1a14   : > { %3921 = vst.msk [vmem:[%s7050_s25 + $0x20] sm:$0xff] %vm3779_vm4, %v3894_v49 }
0x1a15   : > { %v3898_v11 = vpop.f32.mrb[100].mxu1 }
0x1a16   : > { %v3899_v17 = vadd.f32 %v4144_v15, %v3898_v11  ;;  %v4764_v38 = vpop.f32.mrb[101].mxu1 }
0x1a18   : > { %3922 = vst.msk [vmem:[%s7050_s25 + $0x28] sm:$0xff] %vm3779_vm4, %v3899_v17 }
0x1a19   : > { %v3903_v14 = vpop.f32.mrb[102].mxu1 }
0x1a1a   : > { %v3904_v27 = vadd.f32 %v4144_v15, %v3903_v14  ;;  %v4767_v35 = vpop.f32.mrb[103].mxu1 }
0x1a1c   : > { %3923 = vst.msk [vmem:[%s7050_s25 + $0x30] sm:$0xff] %vm3779_vm4, %v3904_v27 }
0x1a1d   : > { %v3908_v16 = vpop.f32.mrb[104].mxu1 }
0x1a1e   : > { %v3909_v13 = vadd.f32 %v4144_v15, %v3908_v16  ;;  %v4770_v24 = vpop.f32.mrb[105].mxu1 }
0x1a20   : > { %3924 = vst.msk [vmem:[%s7050_s25 + $0x38] sm:$0xff] %vm3779_vm4, %v3909_v13 }
0x1a21   : > { %v3913_v31 = vpop.f32.mrb[106].mxu1 }
0x1a22   : > { %v3914_v33 = vadd.f32 %v4144_v15, %v3913_v31  ;;  %v4773_v37 = vpop.f32.mrb[107].mxu1 }
0x1a24   : > { %3925 = vst.msk [vmem:[%s7050_s25 + $0x40] sm:$0xff] %vm3779_vm4, %v3914_v33 }
0x1a25 PF: > { %s13_s12 = sadd.s32 1, %s5497_s12  }
0x1a26   : > { %p10_p5 = scmp.ge.s32.totalorder %s13_s12, 4  }
0x1a28   :  { %12 = sbr.rel (!%p10_p5) target bundleno = 1 (0x1), region = 62 }

</bundles_post_ra>
